<compile_context>
chip_gen: v6e
topology: v6e:2x2x1
jax: 0.10.0
libtpu: 0.0.40
codegen_flags: <defaults>
</compile_context>

<pallas_src>
import jax
import jax.numpy as jnp
from jax.experimental import pallas as pl
from jax.experimental.pallas import tpu as pltpu


def _round_up(x, m):
    return (x + m - 1) // m * m


def decoder_kernel(x_ref, w1_ref, w2_ref, w3_ref, w4_ref, b_ref, o_ref):
    # Padded widths (static, from the Ref shapes).
    h1w = w1_ref.shape[1]
    h2w = w2_ref.shape[1]
    h3w = w3_ref.shape[1]
    h4w = w4_ref.shape[1]

    # x arrives as padded f32; cast to bf16 on-chip (hidden under the MXU).
    x = x_ref[...].astype(jnp.bfloat16)

    # Layer 1: Linear + ReLU (bf16 operands, f32 accumulation on the MXU).
    h = jnp.dot(x, w1_ref[...], preferred_element_type=jnp.float32)
    h = jnp.maximum(h + b_ref[0:1, 0:h1w], 0.0)

    # Layer 2: Linear + ReLU.
    h = jnp.dot(h.astype(jnp.bfloat16), w2_ref[...],
                preferred_element_type=jnp.float32)
    h = jnp.maximum(h + b_ref[1:2, 0:h2w], 0.0)

    # Layer 3: Linear + ReLU.
    h = jnp.dot(h.astype(jnp.bfloat16), w3_ref[...],
                preferred_element_type=jnp.float32)
    h = jnp.maximum(h + b_ref[2:3, 0:h3w], 0.0)

    # Layer 4: Linear (no activation).
    h = jnp.dot(h.astype(jnp.bfloat16), w4_ref[...],
                preferred_element_type=jnp.float32)
    o_ref[...] = h + b_ref[3:4, 0:h4w]


def prepare_params(params):
    """One-time preprocessing: pad/cast weights to bf16, pack biases."""
    w1, b1 = params["w1"], params["b1"]   # (feature_dim, 2000), (2000,)
    w2, b2 = params["w2"], params["b2"]   # (2000, 500), (500,)
    w3, b3 = params["w3"], params["b3"]   # (500, 500), (500,)
    w4, b4 = params["w4"], params["b4"]   # (500, input_dim), (input_dim,)

    din, h1 = w1.shape
    h2, h3, dout = w2.shape[1], w3.shape[1], w4.shape[1]
    dp = _round_up(din, 128)
    h1p = _round_up(h1, 128)
    h2p = _round_up(h2, 128)
    h3p = _round_up(h3, 128)
    dop = _round_up(dout, 128)

    bf16, f32 = jnp.bfloat16, jnp.float32
    w1p = jnp.pad(w1, ((0, dp - din), (0, h1p - h1))).astype(bf16)
    w2p = jnp.pad(w2, ((0, h1p - h1), (0, h2p - h2))).astype(bf16)
    w3p = jnp.pad(w3, ((0, h2p - h2), (0, h3p - h3))).astype(bf16)
    w4p = jnp.pad(w4, ((0, h3p - h3), (0, dop - dout))).astype(bf16)

    # Pack the 4 biases into a single (8, h1p) f32 slab (one VMEM input/DMA).
    bias = jnp.zeros((8, h1p), f32)
    bias = bias.at[0, :h1].set(b1.astype(f32))
    bias = bias.at[1, :h2].set(b2.astype(f32))
    bias = bias.at[2, :h3].set(b3.astype(f32))
    bias = bias.at[3, :dout].set(b4.astype(f32))

    return {"w1": w1p, "w2": w2p, "w3": w3p, "w4": w4p, "bias": bias,
            "dims": (din, h1, h2, h3, dout)}


def decoder_forward(x, prep, *, block_rows=512):
    """x: (B, feature_dim) f32 -> (B, input_dim) f32, using prepared params."""
    B, din = x.shape
    w1p, w2p, w3p, w4p = prep["w1"], prep["w2"], prep["w3"], prep["w4"]
    bias = prep["bias"]
    din_p, h1p = w1p.shape
    h2p, h3p, dop = w2p.shape[1], w3p.shape[1], w4p.shape[1]
    dout = prep["dims"][4]
    assert din == prep["dims"][0], "x feature_dim mismatch with params"
    dp = din_p

    # Row-block tiling: multiples of 16 (bf16 packs 2 rows/sublane), and prefer
    # >= 2 blocks when the batch allows so the parallel grid axis can shard
    # across both v7x TensorCores (neutral on v5e/v6e).
    b16 = _round_up(B, 16)
    tb_cap = min(_round_up(block_rows, 16), b16)
    n_blocks = pl.cdiv(b16, tb_cap)
    if n_blocks < 2 and b16 >= 32:
        n_blocks = 2
    tb = _round_up(pl.cdiv(b16, n_blocks), 16)
    bp = n_blocks * tb

    # Pad x (stays f32; bf16 cast happens inside the kernel).
    xp = jnp.pad(x, ((0, bp - B), (0, dp - din)))

    resident = lambda i: (0, 0)   # weights/biases stay put across the grid
    single = pl.Buffered(1)       # invariant inputs: no duplicate VMEM buffer

    # VMEM budget: single-buffered weights + double-buffered x/out blocks +
    # f32/bf16 activation intermediates, with slack.
    w_bytes = (w1p.size + w2p.size + w3p.size + w4p.size) * 2 + bias.size * 4
    vmem_bytes = (w_bytes
                  + 2 * tb * dp * 4
                  + 2 * tb * dop * 4
                  + tb * (h1p + h2p + h3p + dop) * 6
                  + (2 << 20))
    vmem_limit = int(min(max(vmem_bytes, 16 << 20), 64 << 20))

    flops = 2 * bp * (dp * h1p + h1p * h2p + h2p * h3p + h3p * dop)
    bytes_accessed = xp.size * 4 + w_bytes + bp * dop * 4

    out = pl.pallas_call(
        decoder_kernel,
        out_shape=jax.ShapeDtypeStruct((bp, dop), jnp.float32),
        grid=(n_blocks,),
        in_specs=[
            pl.BlockSpec((tb, dp), lambda i: (i, 0)),                       # x rows
            pl.BlockSpec((dp, h1p), resident, pipeline_mode=single),        # W1
            pl.BlockSpec((h1p, h2p), resident, pipeline_mode=single),       # W2
            pl.BlockSpec((h2p, h3p), resident, pipeline_mode=single),       # W3
            pl.BlockSpec((h3p, dop), resident, pipeline_mode=single),       # W4
            pl.BlockSpec((8, h1p), resident, pipeline_mode=single),         # biases
        ],
        out_specs=pl.BlockSpec((tb, dop), lambda i: (i, 0)),
        compiler_params=pltpu.CompilerParams(
            dimension_semantics=("parallel",),
            vmem_limit_bytes=vmem_limit),
        cost_estimate=pl.CostEstimate(
            flops=flops, transcendentals=0, bytes_accessed=bytes_accessed),
    )(xp, w1p, w2p, w3p, w4p, bias)

    return out[:B, :dout]


def decoder_reference(x, params):
    h = jnp.maximum(x @ params["w1"] + params["b1"], 0.0)
    h = jnp.maximum(h @ params["w2"] + params["b2"], 0.0)
    h = jnp.maximum(h @ params["w3"] + params["b3"], 0.0)
    return h @ params["w4"] + params["b4"]


def init_params(key, input_dim, feature_dim):
    # Weights stored pre-transposed as (in, out) so the kernel does x @ W.
    h1, h2, h3 = 2000, 500, 500
    ks = jax.random.split(key, 8)
    s = 0.05
    f32 = jnp.float32
    return {
        "w1": s * jax.random.normal(ks[0], (feature_dim, h1), f32),
        "b1": s * jax.random.normal(ks[1], (h1,), f32),
        "w2": s * jax.random.normal(ks[2], (h1, h2), f32),
        "b2": s * jax.random.normal(ks[3], (h2,), f32),
        "w3": s * jax.random.normal(ks[4], (h2, h3), f32),
        "b3": s * jax.random.normal(ks[5], (h3,), f32),
        "w4": s * jax.random.normal(ks[6], (h3, input_dim), f32),
        "b4": s * jax.random.normal(ks[7], (input_dim,), f32),
    }


if __name__ == "__main__":
    BATCH, FEATURE_DIM, INPUT_DIM = 48, 32, 64  # small demo shapes

    key = jax.random.PRNGKey(0)
    k_x, k_p = jax.random.split(key)
    x = jax.random.normal(k_x, (BATCH, FEATURE_DIM), jnp.float32)
    params = init_params(k_p, INPUT_DIM, FEATURE_DIM)

    # One-time preprocessing (pad/cast weights, pack biases).
    prep = prepare_params(params)

    # block_rows=16 at this tiny batch exercises a multi-block parallel grid
    # (3 row blocks of 16); use the default 512 for real batches.
    y = decoder_forward(x, prep, block_rows=16)
    y = jax.block_until_ready(y)

    assert y.shape == (BATCH, INPUT_DIM)
    assert bool(jnp.all(jnp.isfinite(y)))

    y_ref = decoder_reference(x, params)
    # bf16 MXU operands -> compare against the f32 reference with a loose tol.
    assert bool(jnp.allclose(y, y_ref, atol=5e-2, rtol=5e-2))

    print("KERNEL_OK")
</pallas_src>

<mosaic_0001>
module attributes {stable_mosaic.version = 11 : i64} {
  func.func @decoder_kernel(%arg0: i32, %arg1: memref<16x128xf32, #tpu.memory_space<vmem>>, %arg2: memref<128x2048xbf16, #tpu.memory_space<vmem>>, %arg3: memref<2048x512xbf16, #tpu.memory_space<vmem>>, %arg4: memref<512x512xbf16, #tpu.memory_space<vmem>>, %arg5: memref<512x128xbf16, #tpu.memory_space<vmem>>, %arg6: memref<8x2048xf32, #tpu.memory_space<vmem>>, %arg7: memref<16x128xf32, #tpu.memory_space<vmem>>) attributes {dimension_semantics = [#tpu.dimension_semantics<parallel>], iteration_bounds = array<i64: 3>, scalar_prefetch = 0 : i64, scratch_operands = 0 : i64, tpu.core_type = #tpu.core_type<tc>, window_params = [{transform_indices = @transform_0, window_bounds = array<i64: 16, 128>}, {pipeline_mode = #tpu.pipeline_mode<synchronous>, transform_indices = @transform_1, window_bounds = array<i64: 128, 2048>}, {pipeline_mode = #tpu.pipeline_mode<synchronous>, transform_indices = @transform_2, window_bounds = array<i64: 2048, 512>}, {pipeline_mode = #tpu.pipeline_mode<synchronous>, transform_indices = @transform_3, window_bounds = array<i64: 512, 512>}, {pipeline_mode = #tpu.pipeline_mode<synchronous>, transform_indices = @transform_4, window_bounds = array<i64: 512, 128>}, {pipeline_mode = #tpu.pipeline_mode<synchronous>, transform_indices = @transform_5, window_bounds = array<i64: 8, 2048>}, {transform_indices = @transform_6, window_bounds = array<i64: 16, 128>}]} {
    %c0 = arith.constant 0 : index
    %c0_0 = arith.constant 0 : index
    %0 = vector.load %arg1[%c0, %c0_0] : memref<16x128xf32, #tpu.memory_space<vmem>>, vector<16x128xf32>
    %1 = arith.truncf %0 : vector<16x128xf32> to vector<16x128xbf16>
    %c0_1 = arith.constant 0 : index
    %c0_2 = arith.constant 0 : index
    %2 = vector.load %arg2[%c0_1, %c0_2] : memref<128x2048xbf16, #tpu.memory_space<vmem>>, vector<128x2048xbf16>
    %cst = arith.constant dense<0.000000e+00> : vector<16x2048xf32>
    %3 = tpu.matmul %1, %2, %cst {dimension_numbers = #tpu.dot_dimension_numbers<[1], [0], [0], [1], [0, 0, 1, 1], [], []>} : vector<16x128xbf16>, vector<128x2048xbf16>, vector<16x2048xf32> -> vector<16x2048xf32>
    %c0_3 = arith.constant 0 : index
    %c0_4 = arith.constant 0 : index
    %4 = vector.load %arg6[%c0_3, %c0_4] : memref<8x2048xf32, #tpu.memory_space<vmem>>, vector<1x2048xf32>
    %5 = vector.broadcast %4 : vector<1x2048xf32> to vector<16x2048xf32>
    %6 = arith.addf %3, %5 : vector<16x2048xf32>
    %cst_5 = arith.constant 0.000000e+00 : f32
    %7 = vector.broadcast %cst_5 : f32 to vector<16x2048xf32>
    %8 = arith.maximumf %6, %7 : vector<16x2048xf32>
    %9 = arith.truncf %8 : vector<16x2048xf32> to vector<16x2048xbf16>
    %c0_6 = arith.constant 0 : index
    %c0_7 = arith.constant 0 : index
    %10 = vector.load %arg3[%c0_6, %c0_7] : memref<2048x512xbf16, #tpu.memory_space<vmem>>, vector<2048x512xbf16>
    %cst_8 = arith.constant dense<0.000000e+00> : vector<16x512xf32>
    %11 = tpu.matmul %9, %10, %cst_8 {dimension_numbers = #tpu.dot_dimension_numbers<[1], [0], [0], [1], [0, 0, 1, 1], [], []>} : vector<16x2048xbf16>, vector<2048x512xbf16>, vector<16x512xf32> -> vector<16x512xf32>
    %c1 = arith.constant 1 : index
    %c0_9 = arith.constant 0 : index
    %12 = vector.load %arg6[%c1, %c0_9] : memref<8x2048xf32, #tpu.memory_space<vmem>>, vector<1x512xf32>
    %13 = vector.broadcast %12 : vector<1x512xf32> to vector<16x512xf32>
    %14 = arith.addf %11, %13 : vector<16x512xf32>
    %cst_10 = arith.constant 0.000000e+00 : f32
    %15 = vector.broadcast %cst_10 : f32 to vector<16x512xf32>
    %16 = arith.maximumf %14, %15 : vector<16x512xf32>
    %17 = arith.truncf %16 : vector<16x512xf32> to vector<16x512xbf16>
    %c0_11 = arith.constant 0 : index
    %c0_12 = arith.constant 0 : index
    %18 = vector.load %arg4[%c0_11, %c0_12] : memref<512x512xbf16, #tpu.memory_space<vmem>>, vector<512x512xbf16>
    %cst_13 = arith.constant dense<0.000000e+00> : vector<16x512xf32>
    %19 = tpu.matmul %17, %18, %cst_13 {dimension_numbers = #tpu.dot_dimension_numbers<[1], [0], [0], [1], [0, 0, 1, 1], [], []>} : vector<16x512xbf16>, vector<512x512xbf16>, vector<16x512xf32> -> vector<16x512xf32>
    %c2 = arith.constant 2 : index
    %c0_14 = arith.constant 0 : index
    %20 = vector.load %arg6[%c2, %c0_14] : memref<8x2048xf32, #tpu.memory_space<vmem>>, vector<1x512xf32>
    %21 = vector.broadcast %20 : vector<1x512xf32> to vector<16x512xf32>
    %22 = arith.addf %19, %21 : vector<16x512xf32>
    %cst_15 = arith.constant 0.000000e+00 : f32
    %23 = vector.broadcast %cst_15 : f32 to vector<16x512xf32>
    %24 = arith.maximumf %22, %23 : vector<16x512xf32>
    %25 = arith.truncf %24 : vector<16x512xf32> to vector<16x512xbf16>
    %c0_16 = arith.constant 0 : index
    %c0_17 = arith.constant 0 : index
    %26 = vector.load %arg5[%c0_16, %c0_17] : memref<512x128xbf16, #tpu.memory_space<vmem>>, vector<512x128xbf16>
    %cst_18 = arith.constant dense<0.000000e+00> : vector<16x128xf32>
    %27 = tpu.matmul %25, %26, %cst_18 {dimension_numbers = #tpu.dot_dimension_numbers<[1], [0], [0], [1], [0, 0, 1, 1], [], []>} : vector<16x512xbf16>, vector<512x128xbf16>, vector<16x128xf32> -> vector<16x128xf32>
    %c3 = arith.constant 3 : index
    %c0_19 = arith.constant 0 : index
    %28 = vector.load %arg6[%c3, %c0_19] : memref<8x2048xf32, #tpu.memory_space<vmem>>, vector<1x128xf32>
    %29 = vector.broadcast %28 : vector<1x128xf32> to vector<16x128xf32>
    %30 = arith.addf %27, %29 : vector<16x128xf32>
    %c0_20 = arith.constant 0 : index
    %c0_21 = arith.constant 0 : index
    %31 = vector.load %arg7[%c0_20, %c0_21] : memref<16x128xf32, #tpu.memory_space<vmem>>, vector<16x128xf32>
    tpu.vector_store %arg7[%c0_20, %c0_21], %30 {strides = array<i32>} : memref<16x128xf32, #tpu.memory_space<vmem>>, vector<16x128xf32>,
    return
  }
  func.func @transform_0(%arg0: i32) -> (i32, i32) {
    %c0_i32 = arith.constant 0 : i32
    %c0_i32_0 = arith.constant 0 : i32
    return %arg0, %c0_i32 : i32, i32
  }
  func.func @transform_1(%arg0: i32) -> (i32, i32) {
    %c0_i32 = arith.constant 0 : i32
    %c0_i32_0 = arith.constant 0 : i32
    %c0_i32_1 = arith.constant 0 : i32
    return %c0_i32, %c0_i32_0 : i32, i32
  }
  func.func @transform_2(%arg0: i32) -> (i32, i32) {
    %c0_i32 = arith.constant 0 : i32
    %c0_i32_0 = arith.constant 0 : i32
    %c0_i32_1 = arith.constant 0 : i32
    return %c0_i32, %c0_i32_0 : i32, i32
  }
  func.func @transform_3(%arg0: i32) -> (i32, i32) {
    %c0_i32 = arith.constant 0 : i32
    %c0_i32_0 = arith.constant 0 : i32
    %c0_i32_1 = arith.constant 0 : i32
    return %c0_i32, %c0_i32_0 : i32, i32
  }
  func.func @transform_4(%arg0: i32) -> (i32, i32) {
    %c0_i32 = arith.constant 0 : i32
    %c0_i32_0 = arith.constant 0 : i32
    %c0_i32_1 = arith.constant 0 : i32
    return %c0_i32, %c0_i32_0 : i32, i32
  }
  func.func @transform_5(%arg0: i32) -> (i32, i32) {
    %c0_i32 = arith.constant 0 : i32
    %c0_i32_0 = arith.constant 0 : i32
    %c0_i32_1 = arith.constant 0 : i32
    return %c0_i32, %c0_i32_0 : i32, i32
  }
  func.func @transform_6(%arg0: i32) -> (i32, i32) {
    %c0_i32 = arith.constant 0 : i32
    %c0_i32_0 = arith.constant 0 : i32
    return %arg0, %c0_i32 : i32, i32
  }
}

</mosaic_0001>

<bundles_post_ra>
// kernel: tpu_custom_call.1
= control target key start
LH: loop header
LB: loop body
LE: loop exit
PB: predicated region body
PF: predicated region fallthrough
CT: control target
= control target key end

     0   :  { %11 = vsyncpa [#allocation3], 0  ;;  %s9601_s0 = inlined_call_operand.hbm [shape: f32[48,128], index: 0, kind: input, shape index: {}]   ;;  %s9602_s1 = inlined_call_operand.hbm [shape: bf16[128,2048], index: 1, kind: input, shape index: {}]   ;;  %s9603_s2 = inlined_call_operand.hbm [shape: bf16[2048,512], index: 2, kind: input, shape index: {}]   ;;  %s9604_s3 = inlined_call_operand.hbm [shape: bf16[512,512], index: 3, kind: input, shape index: {}]   ;;  %s9605_s4 = inlined_call_operand.hbm [shape: bf16[512,128], index: 4, kind: input, shape index: {}]   ;;  %s9606_s5 = inlined_call_operand.hbm [shape: f32[8,2048], index: 5, kind: input, shape index: {}]   ;;  %s9607_s6 = inlined_call_operand.hbm [shape: f32[48,128], index: 6, kind: output, shape index: {}]  }
   0x1   :  { %13 = vsyncpa [#allocation3 + $0x1], 0 }
   0x2   :  { %14 = vsyncpa [#allocation6], 0 }
   0x3   :  { %15 = vsyncpa [#allocation9], 0 }
   0x4   :  { %16 = vsyncpa [#allocation12], 0 }
   0x5   :  { %17 = vsyncpa [#allocation4], 0 }
   0x6   :  { %19 = vsyncpa [#allocation4 + $0x1], 0  ;;  %s9100_s21 = smov 0   ;;  %s9102_s22 = smov 0  }
   0x7   :  { %s9104_s23 = smov 0   ;;  %s9106_s24 = smov 0  }
   0x8 LB: > { %s9048_s25 = smov [#allocation5]   ;;  %s9121_s27 = sadd.s32 4294967295, %s9046_s24   ;;  %s9046_s24 = sphi %s9106_s24, %s9633_s24   ;;  %s9042_s23 = sphi %s9104_s23, %s9632_s23   ;;  %s9038_s22 = sphi %s9102_s22, %s9631_s22   ;;  %s9034_s21 = sphi %s9100_s21, %s9630_s21  }
   0x9   : > { %s199_s26 = sshll.u32 %s9048_s25, 4  ;;  %p6843_p0 = scmp.ge.s32.totalorder %s9046_s24, 1  ;;  %s200_s26 = int_to_ptr.vmem [resolvable:$true] %s199_s26 }
   0xa   : > { %p9608_p1 = scmp.eq.s32.totalorder %s9121_s27, 0  ;;  %p187_p2 = scmp.lt.s32.totalorder %s9046_s24, 4 }
   0xb   : > { %s9049_s30 = smov [#allocation8]   ;;  %s9050_s8 = smov [#allocation7]  }
   0xc   : > { %p9126_p3 = pnand %p6843_p0, %p187_p2  ;;  %s225_s7 = sshll.u32 %s9049_s30, 4  ;;  %s9138_s7 = int_to_ptr.vmem [resolvable:$true] %s225_s7 }
   0xd   : > { %s9140_s9 = sshll.u32 %s9050_s8, 4  ;;  %s8823_s11 = scalar_lea.vmem %s200_s26, 16384  ;;  %s213_s9 = int_to_ptr.vmem [resolvable:$true] %s9140_s9 }
   0xe   : > { %s9612_s28 = scalar_select %p9126_p3, 1, 0 }
   0xf   : > { %p7736_p4 = pneg %p9126_p3  ;;  %p8824_p7 = scmp.ne.s32.totalorder %s200_s26, %s8823_s11 }
  0x10   : > { %p8831_p10 = scmp.lt.s32.totalorder %s200_s26, %s200_s26  ;;  %p8832_p11 = scmp.lt.s32.totalorder %s8823_s11, %s8823_s11 }
  0x11   : > { %p9134_p5 = pnand %p7736_p4, %p9608_p1 }
  0x12   : > { %p8833_p12 = por %p8832_p11, %p8831_p10 }
  0x13   : > { %p9144_p6 = pneg %p9134_p5 }
  0x15   : > { %p8826_p8 = pnand %p8824_p7, %p9144_p6 }
  0x17   : > { %p8827_p9 = pneg %p8826_p8 }
  0x19   : > { %p8834_p13 = pnand %p8833_p12, %p8827_p9 }
  0x1b   : > { %8837 = shalt.err (!%p8834_p13)
}
  0x1c   : > { %s9051_s12 = smov 1024   ;;  %s9052_s13 = smov 64  }
  0x1d   : > { %7739 = dma.hbm_to_vmem [thread:$0]  (!%p9134_p5), %s9602_s1, 16384, %s200_s26, [#allocation6], %s9051_s12, %s9051_s12, %s9052_s13  }
  0x1e   : > { %s8849_s16 = scalar_lea.vmem %s9138_s7, 16384  ;;  %p8857_p7 = scmp.lt.s32.totalorder %s9138_s7, %s9138_s7 }
  0x1f   : > { %p8850_p0 = scmp.ne.s32.totalorder %s9138_s7, %s8849_s16  ;;  %p8858_p8 = scmp.lt.s32.totalorder %s8849_s16, %s8849_s16 }
  0x21   : > { %p8852_p2 = pnand %p8850_p0, %p9144_p6  ;;  %p8859_p9 = por %p8858_p8, %p8857_p7 }
  0x23   : > { %p8853_p4 = pneg %p8852_p2 }
  0x25   : > { %p8860_p10 = pnand %p8859_p9, %p8853_p4 }
  0x27   : > { %8863 = shalt.err (!%p8860_p10)
}
  0x28   : > { %s9053_s17 = smov 256   ;;  %s9054_s18 = smov 16  }
  0x29   : > { %7745 = dma.hbm_to_vmem [thread:$0]  (!%p9134_p5), %s9604_s3, 16384, %s9138_s7, [#allocation9], %s9053_s17, %s9053_s17, %s9054_s18  }
  0x2a   : > { %s8875_s25 = scalar_lea.vmem %s213_s9, 65536  ;;  %p8883_p0 = scmp.lt.s32.totalorder %s213_s9, %s213_s9 }
  0x2b   : > { %p8876_p11 = scmp.ne.s32.totalorder %s213_s9, %s8875_s25  ;;  %p8884_p2 = scmp.lt.s32.totalorder %s8875_s25, %s8875_s25 }
  0x2d   : > { %p8878_p12 = pnand %p8876_p11, %p9144_p6  ;;  %p8885_p4 = por %p8884_p2, %p8883_p0 }
  0x2f   : > { %p8879_p13 = pneg %p8878_p12 }
  0x31   : > { %p8886_p7 = pnand %p8885_p4, %p8879_p13 }
  0x33   : > { %8889 = shalt.err (!%p8886_p7)
}
  0x34   : > { %7742 = dma.hbm_to_vmem [thread:$0]  (!%p9134_p5), %s9603_s2, 65536, %s213_s9, [#allocation6], %s9053_s17, %s9053_s17, %s9054_s18  }
  0x35   : > { %s9055_s8 = smov [#allocation10]  }
  0x36   : > { %s238_s7 = sshll.u32 %s9055_s8, 4  ;;  %s239_s7 = int_to_ptr.vmem [resolvable:$true] %s238_s7 }
  0x37   : > { %s8901_s11 = scalar_lea.vmem %s239_s7, 4096  ;;  %p8909_p11 = scmp.lt.s32.totalorder %s239_s7, %s239_s7 }
  0x38   : > { %p8902_p8 = scmp.ne.s32.totalorder %s239_s7, %s8901_s11  ;;  %p8910_p12 = scmp.lt.s32.totalorder %s8901_s11, %s8901_s11 }
  0x3a   : > { %p8904_p9 = pnand %p8902_p8, %p9144_p6  ;;  %p8911_p0 = por %p8910_p12, %p8909_p11 }
  0x3c   : > { %p8905_p10 = pneg %p8904_p9 }
  0x3e   : > { %p8912_p13 = pnand %p8911_p0, %p8905_p10 }
  0x40   : > { %8915 = shalt.err (!%p8912_p13)
}
  0x41   : > { %s9056_s12 = smov 4   ;;  %s9057_s15 = smov [#allocation11]  }
  0x42   : > { %7748 = dma.hbm_to_vmem [thread:$0]  (!%p9134_p5), %s9605_s4, 4096, %s239_s7, [#allocation9], %s9052_s13, %s9052_s13, %s9056_s12  }
  0x43   : > { %s252_s16 = sshll.u32 %s9057_s15, 4  ;;  %s253_s16 = int_to_ptr.vmem [resolvable:$true] %s252_s16 }
  0x44   : > { %s8927_s17 = scalar_lea.vmem %s253_s16, 2048  ;;  %p8935_p8 = scmp.lt.s32.totalorder %s253_s16, %s253_s16 }
  0x45   : > { %p8928_p2 = scmp.ne.s32.totalorder %s253_s16, %s8927_s17  ;;  %p8936_p9 = scmp.lt.s32.totalorder %s8927_s17, %s8927_s17 }
  0x47   : > { %p8930_p4 = pnand %p8928_p2, %p9144_p6  ;;  %p8937_p10 = por %p8936_p9, %p8935_p8 }
  0x49   : > { %p8931_p7 = pneg %p8930_p4 }
  0x4b   : > { %p8938_p11 = pnand %p8937_p10, %p8931_p7 }
  0x4d   : > { %8941 = shalt.err (!%p8938_p11)
}
  0x4e   : > { %7751 = dma.hbm_to_vmem [thread:$0]  (!%p9134_p5), %s9606_s5, 2048, %s253_s16, [#allocation12]  }
  0x4f   : > { %s6842_s10 = sadd.s32 4294967294, %s9046_s24   ;;  %s9194_s29 = sadd.s32 1, %s9046_s24  }
  0x50   : > { %s29_s13 = ssub.s32 %s9046_s24, %s9194_s29  ;;  %s32_s20 = sadd.s32 1, %s9042_s23 }
  0x51   : > { %p30_p6 = scmp.eq.s32.totalorder %s29_s13, 0  ;;  %p39_p12 = scmp.ne.s32.totalorder %s9042_s23, %s9038_s22 }
  0x52   : > { %p40_p0 = scmp.eq.s32.totalorder %s9046_s24, 0  ;;  %p45_p13 = scmp.ne.s32.totalorder %s9038_s22, %s9034_s21 }
  0x53   : > { %s9205_s25 = scalar_select %p30_p6, %s9042_s23, %s32_s20  }
  0x54   : > { %p9207_p2 = por %p40_p0, %p39_p12  ;;  %p9213_p5 = por %p9608_p1, %p45_p13 }
  0x55   : > { %p174_p4 = scmp.eq.s32.totalorder %s9121_s27, 2  ;;  %p180_p7 = scmp.eq.s32.totalorder %s6842_s10, 2 }
  0x56   : > { %s9616_s30 = scalar_select %p9213_p5, 1, 0 }
  0x57   : > { %p7765_p8 = scmp.lt.s32.totalorder %s9046_s24, 3  ;;  %s263_s8 = sand.u32 1, %s9042_s23  }
  0x58   : > { %p9220_p9 = por %p174_p4, %p39_p12  ;;  %p9224_p10 = por %p180_p7, %p45_p13 }
  0x59   : > { %s6850_s12 = sshll.u32 %s263_s8, 4  ;;  %s7666_s14 = sshll.u32 %s9046_s24, 8 }
  0x5a   : > { %s9617_s7 = scalar_select %p9220_p9, 1, 0 }
  0x5b   : > { %s9618_s11 = scalar_select %p9224_p10, 1, 0 }
  0x5c   : > { %s9232_s16 = scalar_lea.hbm %s9601_s0, %s7666_s14  ;;  %s267_s17 = scalar_lea.vmem [#allocation2], %s6850_s12 }
  0x5d   : > { %s274_s18 = sshll.u32 %s267_s17, 4  ;;  %p9238_p11 = pnand %p7765_p8, %p9207_p2  ;;  %s9234_s18 = int_to_ptr.vmem [resolvable:$true] %s274_s18 }
  0x5e   : > { %s9242_s10 = scalar_lea.sflag [#allocation3], %s263_s8  ;;  %s8942_s13 = scalar_lea.hbm %s9232_s16, 256 }
  0x5f   : > { %p8943_p6 = scmp.ne.s32.totalorder %s9232_s16, %s8942_s13  ;;  %p8944_p12 = pneg %p9238_p11 }
  0x60   : > { %s8947_s12 = scalar_lea.hbm %s9601_s0, 768  ;;  %p8948_p2 = scmp.lt.s32.totalorder %s9232_s16, %s9601_s0 }
  0x61   : > { %p8945_p0 = pnand %p8944_p12, %p8943_p6  ;;  %p8949_p4 = scmp.lt.s32.totalorder %s8947_s12, %s8942_s13 }
  0x63   : > { %p8946_p13 = pneg %p8945_p0  ;;  %p8950_p7 = por %p8949_p4, %p8948_p2 }
  0x65   : > { %p8951_p8 = pnand %p8950_p7, %p8946_p13 }
  0x67   : > { %8954 = shalt.err (!%p8951_p8)
}
  0x68   : > { %s8955_s26 = scalar_lea.vmem %s9234_s18, 256  ;;  %s9058_s8 = smov [#allocation2]  }
  0x69   : > { %p8956_p1 = scmp.ne.s32.totalorder %s9234_s18, %s8955_s26  ;;  %s8960_s17 = sshll.u32 %s9058_s8, 4  ;;  %s8961_s17 = int_to_ptr.vmem [resolvable:$false] %s8960_s17 }
  0x6a   : > { %s8962_s20 = scalar_lea.vmem %s8961_s17, 512  ;;  %p8963_p0 = scmp.lt.s32.totalorder %s9234_s18, %s8961_s17 }
  0x6b   : > { %p8958_p10 = pnand %p8956_p1, %p8944_p12  ;;  %p8964_p9 = scmp.lt.s32.totalorder %s8962_s20, %s8955_s26 }
  0x6d   : > { %p8959_p6 = pneg %p8958_p10  ;;  %p8965_p5 = por %p8964_p9, %p8963_p0 }
  0x6f   : > { %p8966_p3 = pnand %p8965_p5, %p8959_p6 }
  0x71   : > { %8969 = shalt.err (!%p8966_p3)
}
  0x72   : > { %s9059_s13 = smov 128   ;;  %s9060_s14 = smov 8  }
  0x73   : > { %7755 = dma.hbm_to_vmem [thread:$0]  (!%p9238_p11), %s9232_s16, 256, %s9234_s18, %s9242_s10, %s9059_s13, %s9059_s13, %s9060_s14  }
  0x74   : > { %p9620_p1 = scmp.ne.s32.totalorder %s9612_s28, 0 }
  0x75   : > { %s9266_s12 = sand.u32 (!%p9620_p1), 1, %s9038_s22   ;;  %p9621_p3 = scmp.ne.s32.totalorder (!%p9620_p1), %s9616_s30, 0 }
  0x76   : > { %286 = sbr.rel (%p9620_p1) target bundleno = 1518 (0x5ee), region = 44  ;;  %s6854_s9 = sshll.u32 (!%p9620_p1), %s9266_s12, 4 }
  0x77   : > { %s289_s15 = scalar_lea.sflag (!%p9620_p1), [#allocation3], %s9266_s12  ;;  %s9272_s26 = scalar_lea.vmem (!%p9620_p1), [#allocation2], %s6854_s9 }
  0x7b   : > { %9013 = dma.done.wait (%p9621_p3), %s289_s15, 256  }
  0x7c   : > { %9015 = vsyncadd (%p9621_p3), %s289_s15, 4294967040  ;;  %p9622_p5 = scmp.eq.s32.totalorder %s9121_s27, 0 }
  0x7e   : > { %9017 = dma.done.wait (%p9622_p5), [#allocation6], 81920   ;;  %p9623_p9 = pmov %p9622_p5 }
  0x7f   : > { %p9624_p10 = pmov %p9622_p5 }
  0x80   : > { %9019 = vsyncadd (%p9623_p9), [#allocation6], 4294885376 }
  0x81   : > { %9021 = dma.done.wait (%p9624_p10), [#allocation9], 20480   ;;  %p9625_p11 = pmov %p9622_p5 }
  0x82   : > { %p9626_p12 = pmov %p9622_p5 }
  0x83   : > { %9023 = vsyncadd (%p9625_p11), [#allocation9], 4294946816 }
  0x84   : > { %9025 = dma.done.wait (%p9626_p12), [#allocation12], 2048   ;;  %p9627_p13 = pmov %p9622_p5 }
  0x85   : > { %v9061_v0 = vmov 0   ;;  %v459_v1 = vld [vmem:[#allocation5 + $0x380] sm:$0xff]  ;;  %v460_v3 = vld [vmem:[#allocation5 + $0x388] sm:$0xff]  ;;  %v461_v63 = vld [vmem:[#allocation5 + $0x390] sm:$0xff]  ;;  %s340_s28 = scalar_lea.vmem [#allocation13], %s6854_s9  ;;  %s7667_s16 = sshll.u32 %s9121_s27, 8 }
  0x86   : > { %9027 = vsyncadd (%p9627_p13), [#allocation12], 4294965248  ;;  %1236 = vmatprep.mubr.bf16.mxu0 %v9061_v0  ;;  %1279 = vmatprep.mubr.bf16.mxu1 %v9061_v0  ;;  %v467_v2 = vld [vmem:[#allocation5 + $0x3c0] sm:$0xff]  ;;  %v468_v5 = vld [vmem:[#allocation5 + $0x3c8] sm:$0xff]  ;;  %s6721_s30 = sshll.u32 %s340_s28, 4  ;;  %s9559_s10 = scalar_lea.hbm %s9607_s6, %s7667_s16  ;;  %s9554_s30 = int_to_ptr.vmem [resolvable:$true] %s6721_s30 }
  0x87   : > { %v6974_v4 = vcombine.high %v459_v1, %v467_v2  ;;  %v6973_v6 = vcombine.low %v459_v1, %v467_v2  ;;  %v443_v7 = vld [vmem:[#allocation5 + $0x300] sm:$0xff]  ;;  %v6976_v9 = vcombine.high %v460_v3, %v468_v5  ;;  %v6975_v10 = vcombine.low %v460_v3, %v468_v5  ;;  %v444_v12 = vld [vmem:[#allocation5 + $0x308] sm:$0xff]  ;;  %v469_v1 = vld [vmem:[#allocation5 + $0x3d0] sm:$0xff]  ;;  %s6708_s8 = scalar_lea.sflag [#allocation4], %s9266_s12  ;;  %s8970_s17 = scalar_lea.vmem %s9554_s30, 256 }
  0x88   : > { %v451_v8 = vld [vmem:[#allocation5 + $0x340] sm:$0xff]  ;;  %v452_v13 = vld [vmem:[#allocation5 + $0x348] sm:$0xff]  ;;  %v462_v2 = vld [vmem:[#allocation5 + $0x398] sm:$0xff]  ;;  %p8971_p2 = scmp.ne.s32.totalorder %s9554_s30, %s8970_s17  ;;  %p9628_p4 = scmp.ne.s32.totalorder %s9617_s7, 0 }
  0x89   : > { %v6958_v11 = vcombine.high %v443_v7, %v451_v8  ;;  %v427_v14 = vld [vmem:[#allocation5 + $0x280] sm:$0xff]  ;;  %1204 = vmatprep.subr.bf16.mxu0 %v6974_v4  ;;  %v6960_v15 = vcombine.high %v444_v12, %v452_v13  ;;  %v428_v17 = vld [vmem:[#allocation5 + $0x288] sm:$0xff]  ;;  %1247 = vmatprep.subr.bf16.mxu1 %v6976_v9  ;;  %v6957_v19 = vcombine.low %v443_v7, %v451_v8  ;;  %v470_v3 = vld [vmem:[#allocation5 + $0x3d8] sm:$0xff]  ;;  %s9062_s27 = smov [#allocation13]  }
  0x8a   : > { %v435_v16 = vld [vmem:[#allocation5 + $0x2c0] sm:$0xff]  ;;  %v436_v18 = vld [vmem:[#allocation5 + $0x2c8] sm:$0xff]  ;;  %1205 = vmatpush1.bf16.msra.mxu0 %v6973_v6  ;;  %1248 = vmatpush1.bf16.msra.mxu1 %v6975_v10  ;;  %v6959_v20 = vcombine.low %v444_v12, %v452_v13  ;;  %v6978_v8 = vcombine.high %v461_v63, %v469_v1  ;;  %v6980_v9 = vcombine.high %v462_v2, %v470_v3  ;;  %v445_v10 = vld [vmem:[#allocation5 + $0x310] sm:$0xff]  ;;  %p8972_p7 = pnand %p8971_p2, %p9628_p4  ;;  %s8974_s20 = sshll.u32 %s9062_s27, 4  ;;  %s8975_s20 = int_to_ptr.vmem [resolvable:$false] %s8974_s20 }
  0x8b   : > { %1206 = vmatprep.subr.bf16.mxu0 %v6958_v11  ;;  %v6942_v21 = vcombine.high %v427_v14, %v435_v16  ;;  %1249 = vmatprep.subr.bf16.mxu1 %v6960_v15  ;;  %v6944_v22 = vcombine.high %v428_v17, %v436_v18  ;;  %v411_v23 = vld [vmem:[#allocation5 + $0x200] sm:$0xff]  ;;  %v412_v25 = vld [vmem:[#allocation5 + $0x208] sm:$0xff]  ;;  %v6941_v27 = vcombine.low %v427_v14, %v435_v16  ;;  %v453_v11 = vld [vmem:[#allocation5 + $0x350] sm:$0xff]  ;;  %s8976_s13 = scalar_lea.vmem %s8975_s20, 512  ;;  %p8977_p6 = scmp.lt.s32.totalorder %s9554_s30, %s8975_s20 }
  0x8c   : > { %v419_v24 = vld [vmem:[#allocation5 + $0x240] sm:$0xff]  ;;  %v420_v26 = vld [vmem:[#allocation5 + $0x248] sm:$0xff]  ;;  %v6943_v28 = vcombine.low %v428_v17, %v436_v18  ;;  %v446_v13 = vld [vmem:[#allocation5 + $0x318] sm:$0xff]  ;;  %v6977_v15 = vcombine.low %v461_v63, %v469_v1  ;;  %v6979_v16 = vcombine.low %v462_v2, %v470_v3  ;;  %v6962_v17 = vcombine.high %v445_v10, %v453_v11  ;;  %p8973_p8 = pneg %p8972_p7  ;;  %p8978_p0 = scmp.lt.s32.totalorder %s8976_s13, %s8970_s17 }
  0x8d   : > { %v6926_v29 = vcombine.high %v411_v23, %v419_v24  ;;  %v6928_v30 = vcombine.high %v412_v25, %v420_v26  ;;  %v395_v31 = vld [vmem:[#allocation5 + $0x180] sm:$0xff]  ;;  %v396_v33 = vld [vmem:[#allocation5 + $0x188] sm:$0xff]  ;;  %v6925_v35 = vcombine.low %v411_v23, %v419_v24  ;;  %v6927_v36 = vcombine.low %v412_v25, %v420_v26  ;;  %v454_v14 = vld [vmem:[#allocation5 + $0x358] sm:$0xff] }
  0x8e   : > { %1207 = vmatpush1.bf16.msra.mxu0 %v6957_v19  ;;  %1250 = vmatpush1.bf16.msra.mxu1 %v6959_v20  ;;  %v403_v32 = vld [vmem:[#allocation5 + $0x1c0] sm:$0xff]  ;;  %v404_v34 = vld [vmem:[#allocation5 + $0x1c8] sm:$0xff]  ;;  %v6964_v18 = vcombine.high %v446_v13, %v454_v14  ;;  %v429_v19 = vld [vmem:[#allocation5 + $0x290] sm:$0xff]  ;;  %v6961_v23 = vcombine.low %v445_v10, %v453_v11  ;;  %v6963_v24 = vcombine.low %v446_v13, %v454_v14  ;;  %p8979_p1 = por %p8978_p0, %p8977_p6 }
  0x8f   : > { %1208 = vmatprep.subr.bf16.mxu0 %v6942_v21  ;;  %1251 = vmatprep.subr.bf16.mxu1 %v6944_v22  ;;  %v6910_v37 = vcombine.high %v395_v31, %v403_v32  ;;  %v6912_v38 = vcombine.high %v396_v33, %v404_v34  ;;  %v379_v39 = vld [vmem:[#allocation5 + $0x100] sm:$0xff]  ;;  %v380_v41 = vld [vmem:[#allocation5 + $0x108] sm:$0xff]  ;;  %v6909_v43 = vcombine.low %v395_v31, %v403_v32  ;;  %v437_v20 = vld [vmem:[#allocation5 + $0x2d0] sm:$0xff] }
  0x90   : > { %v387_v40 = vld [vmem:[#allocation5 + $0x140] sm:$0xff]  ;;  %v388_v42 = vld [vmem:[#allocation5 + $0x148] sm:$0xff]  ;;  %v6911_v44 = vcombine.low %v396_v33, %v404_v34  ;;  %v430_v21 = vld [vmem:[#allocation5 + $0x298] sm:$0xff]  ;;  %v6946_v25 = vcombine.high %v429_v19, %v437_v20  ;;  %v6945_v31 = vcombine.low %v429_v19, %v437_v20  ;;  %p8980_p3 = pnand %p8979_p1, %p8973_p8 }
  0x91   : > { %v6894_v45 = vcombine.high %v379_v39, %v387_v40  ;;  %v6896_v46 = vcombine.high %v380_v41, %v388_v42  ;;  %v363_v47 = vld [vmem:[#allocation5 + $0x80] sm:$0xff]  ;;  %v364_v49 = vld [vmem:[#allocation5 + $0x88] sm:$0xff]  ;;  %v6893_v51 = vcombine.low %v379_v39, %v387_v40  ;;  %v6895_v52 = vcombine.low %v380_v41, %v388_v42  ;;  %v438_v22 = vld [vmem:[#allocation5 + $0x2d8] sm:$0xff] }
  0x92   : > { %1209 = vmatpush1.bf16.msra.mxu0 %v6941_v27  ;;  %1252 = vmatpush1.bf16.msra.mxu1 %v6943_v28  ;;  %v371_v48 = vld [vmem:[#allocation5 + $0xc0] sm:$0xff]  ;;  %v372_v50 = vld [vmem:[#allocation5 + $0xc8] sm:$0xff]  ;;  %v6948_v26 = vcombine.high %v430_v21, %v438_v22  ;;  %v413_v27 = vld [vmem:[#allocation5 + $0x210] sm:$0xff]  ;;  %v6947_v32 = vcombine.low %v430_v21, %v438_v22 }
  0x93   : > { %1210 = vmatprep.subr.bf16.mxu0 %v6926_v29  ;;  %1253 = vmatprep.subr.bf16.mxu1 %v6928_v30  ;;  %v6878_v53 = vcombine.high %v363_v47, %v371_v48  ;;  %v6880_v54 = vcombine.high %v364_v49, %v372_v50  ;;  %v347_v55 = vld [vmem:[#allocation5] sm:$0xff]  ;;  %v348_v57 = vld [vmem:[#allocation5 + $0x8] sm:$0xff]  ;;  %v6877_v59 = vcombine.low %v363_v47, %v371_v48  ;;  %v421_v28 = vld [vmem:[#allocation5 + $0x250] sm:$0xff] }
  0x94   : > { %v355_v56 = vld [vmem:[#allocation5 + $0x40] sm:$0xff]  ;;  %v356_v58 = vld [vmem:[#allocation5 + $0x48] sm:$0xff]  ;;  %v6879_v60 = vcombine.low %v364_v49, %v372_v50  ;;  %v414_v29 = vld [vmem:[#allocation5 + $0x218] sm:$0xff]  ;;  %v6930_v33 = vcombine.high %v413_v27, %v421_v28  ;;  %v6929_v39 = vcombine.low %v413_v27, %v421_v28 }
  0x95   : > { %v6862_v61 = vcombine.high %v347_v55, %v355_v56  ;;  %v6864_v62 = vcombine.high %v348_v57, %v356_v58  ;;  %v6861_v4 = vcombine.low %v347_v55, %v355_v56  ;;  %v344_v5 = vld [vmem:[%s9272_s26] sm:$0xff]  ;;  %v345_v6 = vld [vmem:[%s9272_s26 + $0x8] sm:$0xff]  ;;  %v6863_v7 = vcombine.low %v348_v57, %v356_v58 }
  0x96   : > { %1211 = vmatpush1.bf16.msra.mxu0 %v6925_v35  ;;  %1254 = vmatpush1.bf16.msra.mxu1 %v6927_v36  ;;  %v9294_v12 = vpack.c.bf16 %v345_v6, %v344_v5  ;;  %v422_v30 = vld [vmem:[#allocation5 + $0x258] sm:$0xff]  ;;  %v397_v35 = vld [vmem:[#allocation5 + $0x190] sm:$0xff]  ;;  %v463_v3 = vld [vmem:[#allocation5 + $0x3a0] sm:$0xff] }
  0x97   : > { %1212 = vmatprep.subr.bf16.mxu0 %v6910_v37  ;;  %1255 = vmatprep.subr.bf16.mxu1 %v6912_v38  ;;  %v6932_v34 = vcombine.high %v414_v29, %v422_v30  ;;  %v405_v36 = vld [vmem:[#allocation5 + $0x1d0] sm:$0xff]  ;;  %v398_v37 = vld [vmem:[#allocation5 + $0x198] sm:$0xff]  ;;  %v6931_v40 = vcombine.low %v414_v29, %v422_v30  ;;  %v464_v6 = vld [vmem:[#allocation5 + $0x3a8] sm:$0xff] }
  0x98   : > { %v406_v38 = vld [vmem:[#allocation5 + $0x1d8] sm:$0xff]  ;;  %v6914_v41 = vcombine.high %v397_v35, %v405_v36  ;;  %v381_v42 = vld [vmem:[#allocation5 + $0x110] sm:$0xff]  ;;  %v6913_v47 = vcombine.low %v397_v35, %v405_v36  ;;  %v447_v11 = vld [vmem:[#allocation5 + $0x320] sm:$0xff] }
  0x99   : > { %v6915_v48 = vcombine.low %v398_v37, %v406_v38  ;;  %v365_v50 = vld [vmem:[#allocation5 + $0x90] sm:$0xff]  ;;  %v455_v13 = vld [vmem:[#allocation5 + $0x360] sm:$0xff] }
  0x9a   : > { %1213 = vmatpush1.bf16.msra.mxu0 %v6909_v43  ;;  %1256 = vmatpush1.bf16.msra.mxu1 %v6911_v44  ;;  %v389_v43 = vld [vmem:[#allocation5 + $0x150] sm:$0xff]  ;;  %v6916_v44 = vcombine.high %v398_v37, %v406_v38  ;;  %v6966_v19 = vcombine.high %v447_v11, %v455_v13  ;;  %v431_v20 = vld [vmem:[#allocation5 + $0x2a0] sm:$0xff] }
  0x9b   : > { %1214 = vmatprep.subr.bf16.mxu0 %v6894_v45  ;;  %1257 = vmatprep.subr.bf16.mxu1 %v6896_v46  ;;  %v382_v45 = vld [vmem:[#allocation5 + $0x118] sm:$0xff]  ;;  %v6898_v49 = vcombine.high %v381_v42, %v389_v43  ;;  %v6897_v55 = vcombine.low %v381_v42, %v389_v43  ;;  %v349_v58 = vld [vmem:[#allocation5 + $0x10] sm:$0xff]  ;;  %v439_v21 = vld [vmem:[#allocation5 + $0x2e0] sm:$0xff] }
  0x9c   : > { %v390_v46 = vld [vmem:[#allocation5 + $0x158] sm:$0xff]  ;;  %v6950_v27 = vcombine.high %v431_v20, %v439_v21  ;;  %v415_v28 = vld [vmem:[#allocation5 + $0x220] sm:$0xff] }
  0x9d   : > { %v6899_v56 = vcombine.low %v382_v45, %v390_v46  ;;  %v423_v29 = vld [vmem:[#allocation5 + $0x260] sm:$0xff] }
  0x9e   : > { %1215 = vmatpush1.bf16.msra.mxu0 %v6893_v51  ;;  %1258 = vmatpush1.bf16.msra.mxu1 %v6895_v52  ;;  %v373_v51 = vld [vmem:[#allocation5 + $0xd0] sm:$0xff]  ;;  %v6900_v52 = vcombine.high %v382_v45, %v390_v46  ;;  %v6934_v35 = vcombine.high %v415_v28, %v423_v29  ;;  %v399_v36 = vld [vmem:[#allocation5 + $0x1a0] sm:$0xff] }
  0x9f   : > { %1216 = vmatprep.subr.bf16.mxu0 %v6878_v53  ;;  %1259 = vmatprep.subr.bf16.mxu1 %v6880_v54  ;;  %v366_v53 = vld [vmem:[#allocation5 + $0x98] sm:$0xff]  ;;  %v6882_v57 = vcombine.high %v365_v50, %v373_v51  ;;  %v6881_v63 = vcombine.low %v365_v50, %v373_v51  ;;  %v407_v37 = vld [vmem:[#allocation5 + $0x1e0] sm:$0xff] }
  0xa0   : > { %v374_v54 = vld [vmem:[#allocation5 + $0xd8] sm:$0xff]  ;;  %v6918_v43 = vcombine.high %v399_v36, %v407_v37  ;;  %v391_v46 = vld [vmem:[#allocation5 + $0x160] sm:$0xff] }
  0xa1   : > { %v6883_v1 = vcombine.low %v366_v53, %v374_v54  ;;  %v367_v50 = vld [vmem:[#allocation5 + $0xa0] sm:$0xff] }
  0xa2   : > { %1217 = vmatpush1.bf16.msra.mxu0 %v6877_v59  ;;  %1260 = vmatpush1.bf16.msra.mxu1 %v6879_v60  ;;  %v357_v59 = vld [vmem:[#allocation5 + $0x50] sm:$0xff]  ;;  %v6884_v60 = vcombine.high %v366_v53, %v374_v54  ;;  %v375_v51 = vld [vmem:[#allocation5 + $0xe0] sm:$0xff]  ;;  %v368_v54 = vld [vmem:[#allocation5 + $0xa8] sm:$0xff] }
  0xa3   : > { %1218 = vmatprep.subr.bf16.mxu0 %v6862_v61  ;;  %1261 = vmatprep.subr.bf16.mxu1 %v6864_v62  ;;  %v350_v61 = vld [vmem:[#allocation5 + $0x18] sm:$0xff]  ;;  %v6866_v2 = vcombine.high %v349_v58, %v357_v59 }
  0xa4   : > { %v358_v62 = vld [vmem:[#allocation5 + $0x58] sm:$0xff] }
  0xa5   : > { %v6868_v5 = vcombine.high %v350_v61, %v358_v62 }
  0xa6   : > { %1219 = vmatpush1.bf16.msra.mxu0 %v6861_v4  ;;  %1262 = vmatpush1.bf16.msra.mxu1 %v6863_v7  ;;  %v471_v4 = vld [vmem:[#allocation5 + $0x3e0] sm:$0xff]  ;;  %v472_v7 = vld [vmem:[#allocation5 + $0x3e8] sm:$0xff] }
  0xa7   : > { %1290 = vmatprep.subr.bf16.mxu0 %v6978_v8  ;;  %1333 = vmatprep.subr.bf16.mxu1 %v6980_v9  ;;  %v6865_v8 = vcombine.low %v349_v58, %v357_v59  ;;  %v6867_v9 = vcombine.low %v350_v61, %v358_v62  ;;  %v6982_v10 = vcombine.high %v463_v3, %v471_v4  ;;  %v351_v58 = vld [vmem:[#allocation5 + $0x20] sm:$0xff]  ;;  %v352_v62 = vld [vmem:[#allocation5 + $0x28] sm:$0xff] }
  0xa8   : > { %v6984_v14 = vcombine.high %v464_v6, %v472_v7  ;;  %v359_v59 = vld [vmem:[#allocation5 + $0x60] sm:$0xff]  ;;  %v6886_v61 = vcombine.high %v367_v50, %v375_v51 }
  0xa9   : > { %1237 = vmatmul.mubr.bf16.vlgmr.msra.gmra.mxu0 %v9294_v12  ;;  %1280 = vmatmul.mubr.bf16.vlgmr.msra.gmra.mxu1 %v9294_v12 }
  0xaa   : > { %1291 = vmatpush1.bf16.msra.mxu0 %v6977_v15  ;;  %1334 = vmatpush1.bf16.msra.mxu1 %v6979_v16  ;;  %v448_v15 = vld [vmem:[#allocation5 + $0x328] sm:$0xff] }
  0xab   : > { %1292 = vmatprep.subr.bf16.mxu0 %v6962_v17  ;;  %1335 = vmatprep.subr.bf16.mxu1 %v6964_v18  ;;  %v456_v16 = vld [vmem:[#allocation5 + $0x368] sm:$0xff]  ;;  %v6981_v17 = vcombine.low %v463_v3, %v471_v4  ;;  %v6983_v18 = vcombine.low %v464_v6, %v472_v7  ;;  %v465_v3 = vld [vmem:[#allocation5 + $0x3b0] sm:$0xff]  ;;  %v6870_v6 = vcombine.high %v351_v58, %v359_v59  ;;  %v466_v7 = vld [vmem:[#allocation5 + $0x3b8] sm:$0xff] }
  0xac   : > { %1322 = vmatprep.mubr.bf16.mxu0 %v9061_v0  ;;  %1365 = vmatprep.mubr.bf16.mxu1 %v9061_v0  ;;  %v6968_v22 = vcombine.high %v448_v15, %v456_v16  ;;  %v473_v4 = vld [vmem:[#allocation5 + $0x3f0] sm:$0xff] }
  0xae   : > { %1293 = vmatpush1.bf16.msra.mxu0 %v6961_v23  ;;  %1336 = vmatpush1.bf16.msra.mxu1 %v6963_v24  ;;  %v432_v23 = vld [vmem:[#allocation5 + $0x2a8] sm:$0xff] }
  0xaf   : > { %1294 = vmatprep.subr.bf16.mxu0 %v6946_v25  ;;  %1337 = vmatprep.subr.bf16.mxu1 %v6948_v26  ;;  %v440_v24 = vld [vmem:[#allocation5 + $0x2e8] sm:$0xff]  ;;  %v6965_v25 = vcombine.low %v447_v11, %v455_v13  ;;  %v6967_v26 = vcombine.low %v448_v15, %v456_v16  ;;  %v449_v11 = vld [vmem:[#allocation5 + $0x330] sm:$0xff]  ;;  %v6986_v15 = vcombine.high %v465_v3, %v473_v4  ;;  %v450_v16 = vld [vmem:[#allocation5 + $0x338] sm:$0xff] }
  0xb0   : > { %v6952_v30 = vcombine.high %v432_v23, %v440_v24  ;;  %v457_v13 = vld [vmem:[#allocation5 + $0x370] sm:$0xff] }
  0xb2   : > { %1295 = vmatpush1.bf16.msra.mxu0 %v6945_v31  ;;  %1338 = vmatpush1.bf16.msra.mxu1 %v6947_v32  ;;  %v416_v31 = vld [vmem:[#allocation5 + $0x228] sm:$0xff] }
  0xb3   : > { %1296 = vmatprep.subr.bf16.mxu0 %v6930_v33  ;;  %1339 = vmatprep.subr.bf16.mxu1 %v6932_v34  ;;  %v424_v32 = vld [vmem:[#allocation5 + $0x268] sm:$0xff]  ;;  %v6949_v33 = vcombine.low %v431_v20, %v439_v21  ;;  %v6951_v34 = vcombine.low %v432_v23, %v440_v24  ;;  %v433_v20 = vld [vmem:[#allocation5 + $0x2b0] sm:$0xff]  ;;  %v6970_v23 = vcombine.high %v449_v11, %v457_v13 }
  0xb4   : > { %v6936_v38 = vcombine.high %v416_v31, %v424_v32  ;;  %v6935_v42 = vcombine.low %v416_v31, %v424_v32  ;;  %v441_v21 = vld [vmem:[#allocation5 + $0x2f0] sm:$0xff] }
  0xb5   : > { %v6954_v31 = vcombine.high %v433_v20, %v441_v21 }
  0xb6   : > { %1297 = vmatpush1.bf16.msra.mxu0 %v6929_v39  ;;  %1340 = vmatpush1.bf16.msra.mxu1 %v6931_v40  ;;  %v400_v39 = vld [vmem:[#allocation5 + $0x1a8] sm:$0xff] }
  0xb7   : > { %1298 = vmatprep.subr.bf16.mxu0 %v6914_v41  ;;  %1341 = vmatprep.subr.bf16.mxu1 %v6916_v44  ;;  %v408_v40 = vld [vmem:[#allocation5 + $0x1e8] sm:$0xff]  ;;  %v6933_v41 = vcombine.low %v415_v28, %v423_v29  ;;  %v383_v44 = vld [vmem:[#allocation5 + $0x120] sm:$0xff]  ;;  %v417_v28 = vld [vmem:[#allocation5 + $0x230] sm:$0xff] }
  0xb8   : > { %v6920_v45 = vcombine.high %v400_v39, %v408_v40  ;;  %v6902_v53 = vcombine.high %v383_v44, %v391_v46  ;;  %v425_v29 = vld [vmem:[#allocation5 + $0x270] sm:$0xff] }
  0xba   : > { %1299 = vmatpush1.bf16.msra.mxu0 %v6913_v47  ;;  %1342 = vmatpush1.bf16.msra.mxu1 %v6915_v48  ;;  %v384_v47 = vld [vmem:[#allocation5 + $0x128] sm:$0xff] }
  0xbb   : > { %1300 = vmatprep.subr.bf16.mxu0 %v6898_v49  ;;  %1343 = vmatprep.subr.bf16.mxu1 %v6900_v52  ;;  %v392_v48 = vld [vmem:[#allocation5 + $0x168] sm:$0xff]  ;;  %v6917_v49 = vcombine.low %v399_v36, %v407_v37  ;;  %v6919_v52 = vcombine.low %v400_v39, %v408_v40  ;;  %v401_v36 = vld [vmem:[#allocation5 + $0x1b0] sm:$0xff]  ;;  %v6938_v39 = vcombine.high %v417_v28, %v425_v29 }
  0xbc   : > { %v409_v37 = vld [vmem:[#allocation5 + $0x1f0] sm:$0xff] }
  0xbe   : > { %1301 = vmatpush1.bf16.msra.mxu0 %v6897_v55  ;;  %1344 = vmatpush1.bf16.msra.mxu1 %v6899_v56  ;;  %v376_v55 = vld [vmem:[#allocation5 + $0xe8] sm:$0xff]  ;;  %v6904_v56 = vcombine.high %v384_v47, %v392_v48 }
  0xbf   : > { %1302 = vmatprep.subr.bf16.mxu0 %v6882_v57  ;;  %1345 = vmatprep.subr.bf16.mxu1 %v6884_v60  ;;  %v6901_v57 = vcombine.low %v383_v44, %v391_v46  ;;  %v6903_v60 = vcombine.low %v384_v47, %v392_v48  ;;  %v385_v44 = vld [vmem:[#allocation5 + $0x130] sm:$0xff]  ;;  %v386_v48 = vld [vmem:[#allocation5 + $0x138] sm:$0xff] }
  0xc2   : > { %1303 = vmatpush1.bf16.msra.mxu0 %v6881_v63  ;;  %1346 = vmatpush1.bf16.msra.mxu1 %v6883_v1  ;;  %v360_v63 = vld [vmem:[#allocation5 + $0x68] sm:$0xff]  ;;  %v6888_v1 = vcombine.high %v368_v54, %v376_v55 }
  0xc3   : > { %1304 = vmatprep.subr.bf16.mxu0 %v6866_v2  ;;  %1347 = vmatprep.subr.bf16.mxu1 %v6868_v5  ;;  %v6885_v2 = vcombine.low %v367_v50, %v375_v51  ;;  %v6887_v5 = vcombine.low %v368_v54, %v376_v55  ;;  %v6921_v50 = vcombine.low %v401_v36, %v409_v37  ;;  %v369_v51 = vld [vmem:[#allocation5 + $0xb0] sm:$0xff] }
  0xc6   : > { %1305 = vmatpush1.bf16.msra.mxu0 %v6865_v8  ;;  %1348 = vmatpush1.bf16.msra.mxu1 %v6867_v9  ;;  %v474_v8 = vld [vmem:[#allocation5 + $0x3f8] sm:$0xff]  ;;  %v6872_v9 = vcombine.high %v352_v62, %v360_v63 }
  0xc7   : > { %1376 = vmatprep.subr.bf16.mxu0 %v6982_v10  ;;  %1419 = vmatprep.subr.bf16.mxu1 %v6984_v14  ;;  %v6869_v10 = vcombine.low %v351_v58, %v359_v59  ;;  %v6871_v14 = vcombine.low %v352_v62, %v360_v63  ;;  %v353_v59 = vld [vmem:[#allocation5 + $0x30] sm:$0xff] }
  0xc9   : > { %1323 = vmatmul.mubr.bf16.vlgmr.msra.gmra.mxu0 %v9294_v12  ;;  %1366 = vmatmul.mubr.bf16.vlgmr.msra.gmra.mxu1 %v9294_v12 }
  0xca   : > { %1377 = vmatpush1.bf16.msra.mxu0 %v6981_v17  ;;  %1420 = vmatpush1.bf16.msra.mxu1 %v6983_v18  ;;  %v458_v17 = vld [vmem:[#allocation5 + $0x378] sm:$0xff]  ;;  %v6988_v18 = vcombine.high %v466_v7, %v474_v8 }
  0xcb   : > { %1378 = vmatprep.subr.bf16.mxu0 %v6966_v19  ;;  %1421 = vmatprep.subr.bf16.mxu1 %v6968_v22  ;;  %v6985_v19 = vcombine.low %v465_v3, %v473_v4  ;;  %v6987_v22 = vcombine.low %v466_v7, %v474_v8  ;;  %v6972_v24 = vcombine.high %v450_v16, %v458_v17  ;;  %v7821_v7 = vld [vmem:[#allocation7 + $0xe4] ss:$16 sps:$4 sm:$0xff]  }
  0xcc   : > { %1408 = vmatprep.mubr.bf16.mxu0 %v9061_v0  ;;  %1451 = vmatprep.mubr.bf16.mxu1 %v9061_v0 }
  0xce   : > { %1379 = vmatpush1.bf16.msra.mxu0 %v6965_v25  ;;  %1422 = vmatpush1.bf16.msra.mxu1 %v6967_v26  ;;  %v434_v25 = vld [vmem:[#allocation5 + $0x2b8] sm:$0xff] }
  0xcf   : > { %1380 = vmatprep.subr.bf16.mxu0 %v6950_v27  ;;  %1423 = vmatprep.subr.bf16.mxu1 %v6952_v30  ;;  %v442_v26 = vld [vmem:[#allocation5 + $0x2f8] sm:$0xff]  ;;  %v6969_v27 = vcombine.low %v449_v11, %v457_v13  ;;  %v6971_v30 = vcombine.low %v450_v16, %v458_v17  ;;  %v7819_v11 = vld [vmem:[#allocation7 + $0xe0] ss:$16 sps:$4 sm:$0xff]  }
  0xd0   : > { %v6956_v32 = vcombine.high %v434_v25, %v442_v26  ;;  %v7822_v13 = vld [vmem:[#allocation7 + $0x2e0] ss:$16 sps:$4 sm:$0xff]  }
  0xd1   : > { %v7825_v16 = vld [vmem:[#allocation7 + $0xc0] ss:$16 sps:$4 sm:$0xff]  }
  0xd2   : > { %1381 = vmatpush1.bf16.msra.mxu0 %v6949_v33  ;;  %1424 = vmatpush1.bf16.msra.mxu1 %v6951_v34  ;;  %v418_v33 = vld [vmem:[#allocation5 + $0x238] sm:$0xff]  ;;  %v7828_v17 = vld [vmem:[#allocation7 + $0x2c0] ss:$16 sps:$4 sm:$0xff]  }
  0xd3   : > { %1382 = vmatprep.subr.bf16.mxu0 %v6934_v35  ;;  %1425 = vmatprep.subr.bf16.mxu1 %v6936_v38  ;;  %v426_v34 = vld [vmem:[#allocation5 + $0x278] sm:$0xff]  ;;  %v6953_v35 = vcombine.low %v433_v20, %v441_v21  ;;  %v6955_v38 = vcombine.low %v434_v25, %v442_v26  ;;  %v7831_v20 = vld [vmem:[#allocation7 + $0xa0] ss:$16 sps:$4 sm:$0xff]   ;;  %v7845_v26 = vld [vmem:[#allocation7 + $0x64] ss:$16 sps:$4 sm:$0xff]  }
  0xd4   : > { %v6940_v40 = vcombine.high %v418_v33, %v426_v34  ;;  %v6939_v46 = vcombine.low %v418_v33, %v426_v34  ;;  %v7834_v21 = vld [vmem:[#allocation7 + $0x2a0] ss:$16 sps:$4 sm:$0xff]   ;;  %v7857_v33 = vld [vmem:[#allocation7 + $0x24] ss:$16 sps:$4 sm:$0xff]  }
  0xd5   : > { %v7840_v25 = vld [vmem:[#allocation7 + $0x280] ss:$16 sps:$4 sm:$0xff]   ;;  %v7860_v34 = vld [vmem:[#allocation7 + $0x224] ss:$16 sps:$4 sm:$0xff]  }
  0xd6   : > { %1383 = vmatpush1.bf16.msra.mxu0 %v6933_v41  ;;  %1426 = vmatpush1.bf16.msra.mxu1 %v6935_v42  ;;  %v402_v41 = vld [vmem:[#allocation5 + $0x1b8] sm:$0xff] }
  0xd7   : > { %1384 = vmatprep.subr.bf16.mxu0 %v6918_v43  ;;  %1427 = vmatprep.subr.bf16.mxu1 %v6920_v45  ;;  %v410_v42 = vld [vmem:[#allocation5 + $0x1f8] sm:$0xff]  ;;  %v6937_v43 = vcombine.low %v417_v28, %v425_v29  ;;  %v393_v45 = vld [vmem:[#allocation5 + $0x170] sm:$0xff] }
  0xd8   : > { %v6924_v47 = vcombine.high %v402_v41, %v410_v42  ;;  %v6906_v54 = vcombine.high %v385_v44, %v393_v45  ;;  %v6905_v58 = vcombine.low %v385_v44, %v393_v45  ;;  %v7846_v28 = vld [vmem:[#allocation7 + $0x260] ss:$16 sps:$4 sm:$0xff]   ;;  %v7851_v29 = vld [vmem:[#allocation7 + $0x44] ss:$16 sps:$4 sm:$0xff]  }
  0xd9   : > { %v7870_v44 = vld [vmem:[#allocation7 + $0x3e0] ss:$16 sps:$4 sm:$0xff]   ;;  %v7875_v45 = vld [vmem:[#allocation7 + $0x1c4] ss:$16 sps:$4 sm:$0xff]  }
  0xda   : > { %1385 = vmatpush1.bf16.msra.mxu0 %v6917_v49  ;;  %1428 = vmatpush1.bf16.msra.mxu1 %v6919_v52  ;;  %v394_v49 = vld [vmem:[#allocation5 + $0x178] sm:$0xff]  ;;  %v377_v52 = vld [vmem:[#allocation5 + $0xf0] sm:$0xff] }
  0xdb   : > { %1386 = vmatprep.subr.bf16.mxu0 %v6902_v53  ;;  %1429 = vmatprep.subr.bf16.mxu1 %v6904_v56  ;;  %v6923_v53 = vcombine.low %v402_v41, %v410_v42  ;;  %v6908_v55 = vcombine.high %v386_v48, %v394_v49  ;;  %v370_v56 = vld [vmem:[#allocation5 + $0xb8] sm:$0xff]  ;;  %v6890_v62 = vcombine.high %v369_v51, %v377_v52  ;;  %v7869_v41 = vld [vmem:[#allocation7 + $0x1e4] ss:$16 sps:$4 sm:$0xff]  }
  0xdc   : > { %v6889_v3 = vcombine.low %v369_v51, %v377_v52  ;;  %v7872_v42 = vld [vmem:[#allocation7 + $0x3e4] ss:$16 sps:$4 sm:$0xff]   ;;  %v7882_v51 = vld [vmem:[#allocation7 + $0x3a0] ss:$16 sps:$4 sm:$0xff]  }
  0xdd   : > { %v7887_v52 = vld [vmem:[#allocation7 + $0x184] ss:$16 sps:$4 sm:$0xff]  }
  0xde   : > { %1387 = vmatpush1.bf16.msra.mxu0 %v6901_v57  ;;  %1430 = vmatpush1.bf16.msra.mxu1 %v6903_v60  ;;  %v378_v57 = vld [vmem:[#allocation5 + $0xf8] sm:$0xff]  ;;  %v361_v60 = vld [vmem:[#allocation5 + $0x70] sm:$0xff] }
  0xdf   : > { %1388 = vmatprep.subr.bf16.mxu0 %v6886_v61  ;;  %1431 = vmatprep.subr.bf16.mxu1 %v6888_v1  ;;  %v6907_v61 = vcombine.low %v386_v48, %v394_v49  ;;  %v6892_v63 = vcombine.high %v370_v56, %v378_v57  ;;  %v354_v1 = vld [vmem:[#allocation5 + $0x38] sm:$0xff]  ;;  %v6891_v4 = vcombine.low %v370_v56, %v378_v57  ;;  %v7881_v48 = vld [vmem:[#allocation7 + $0x1a4] ss:$16 sps:$4 sm:$0xff]  }
  0xe0   : > { %v6873_v8 = vcombine.low %v353_v59, %v361_v60  ;;  %v7884_v49 = vld [vmem:[#allocation7 + $0x3a4] ss:$16 sps:$4 sm:$0xff]  }
  0xe1   : > { %v7893_v56 = vld [vmem:[#allocation7 + $0x164] ss:$16 sps:$4 sm:$0xff]  }
  0xe2   : > { %1389 = vmatpush1.bf16.msra.mxu0 %v6885_v2  ;;  %1432 = vmatpush1.bf16.msra.mxu1 %v6887_v5  ;;  %v362_v2 = vld [vmem:[#allocation5 + $0x78] sm:$0xff]  ;;  %v6874_v5 = vcombine.high %v353_v59, %v361_v60  ;;  %v7896_v57 = vld [vmem:[#allocation7 + $0x364] ss:$16 sps:$4 sm:$0xff]   ;;  %v7894_v59 = vld [vmem:[#allocation7 + $0x360] ss:$16 sps:$4 sm:$0xff]  }
  0xe3   : > { %1390 = vmatprep.subr.bf16.mxu0 %v6870_v6  ;;  %1433 = vmatprep.subr.bf16.mxu1 %v6872_v9  ;;  %v6876_v6 = vcombine.high %v354_v1, %v362_v2  ;;  %v7824_v9 = vld [vmem:[#allocation7 + $0x2e4] ss:$16 sps:$4 sm:$0xff]  }
  0xe4   : > { %v7899_v60 = vld [vmem:[#allocation7 + $0x144] ss:$16 sps:$4 sm:$0xff]  }
  0xe6   : > { %1391 = vmatpush1.bf16.msra.mxu0 %v6869_v10  ;;  %1434 = vmatpush1.bf16.msra.mxu1 %v6871_v14  ;;  %v6875_v10 = vcombine.low %v354_v1, %v362_v2  ;;  %v7827_v14 = vld [vmem:[#allocation7 + $0xc4] ss:$16 sps:$4 sm:$0xff]  }
  0xe7   : > { %1462 = vmatprep.subr.bf16.mxu0 %v6986_v15  ;;  %1505 = vmatprep.subr.bf16.mxu1 %v6988_v18  ;;  %v7830_v15 = vld [vmem:[#allocation7 + $0x2c4] ss:$16 sps:$4 sm:$0xff]  }
  0xe8   : > { %v7833_v18 = vld [vmem:[#allocation7 + $0xa4] ss:$16 sps:$4 sm:$0xff]  }
  0xe9   : > { %1409 = vmatmul.mubr.bf16.vlgmr.msra.gmra.mxu0 %v9294_v12  ;;  %1452 = vmatmul.mubr.bf16.vlgmr.msra.gmra.mxu1 %v9294_v12  ;;  %v7905_v1 = vld [vmem:[#allocation7 + $0x124] ss:$16 sps:$4 sm:$0xff]  }
  0xea   : > { %1463 = vmatpush1.bf16.msra.mxu0 %v6985_v19  ;;  %1506 = vmatpush1.bf16.msra.mxu1 %v6987_v22  ;;  %v7836_v19 = vld [vmem:[#allocation7 + $0x2a4] ss:$16 sps:$4 sm:$0xff]  }
  0xeb   : > { %1464 = vmatprep.subr.bf16.mxu0 %v6970_v23  ;;  %1507 = vmatprep.subr.bf16.mxu1 %v6972_v24  ;;  %v7839_v22 = vld [vmem:[#allocation7 + $0x84] ss:$16 sps:$4 sm:$0xff]   ;;  %v7837_v24 = vld [vmem:[#allocation7 + $0x80] ss:$16 sps:$4 sm:$0xff]  }
  0xec   : > { %1494 = vmatprep.mubr.bf16.mxu0 %v9061_v0  ;;  %1537 = vmatprep.mubr.bf16.mxu1 %v9061_v0  ;;  %v6922_v0 = vcombine.high %v401_v36, %v409_v37  ;;  %v7842_v23 = vld [vmem:[#allocation7 + $0x284] ss:$16 sps:$4 sm:$0xff]   ;;  %v7858_v36 = vld [vmem:[#allocation7 + $0x220] ss:$16 sps:$4 sm:$0xff]  }
  0xed   : > { %v7863_v37 = vld [vmem:[#allocation7 + $0x4] ss:$16 sps:$4 sm:$0xff]  }
  0xee   : > { %1465 = vmatpush1.bf16.msra.mxu0 %v6969_v27  ;;  %1508 = vmatpush1.bf16.msra.mxu1 %v6971_v30  ;;  %v7848_v27 = vld [vmem:[#allocation7 + $0x264] ss:$16 sps:$4 sm:$0xff]  }
  0xef   : > { %1466 = vmatprep.subr.bf16.mxu0 %v6954_v31  ;;  %1509 = vmatprep.subr.bf16.mxu1 %v6956_v32  ;;  %v7854_v30 = vld [vmem:[#allocation7 + $0x244] ss:$16 sps:$4 sm:$0xff]   ;;  %v7849_v31 = vld [vmem:[#allocation7 + $0x40] ss:$16 sps:$4 sm:$0xff]  }
  0xf0   : > { %v7852_v32 = vld [vmem:[#allocation7 + $0x240] ss:$16 sps:$4 sm:$0xff]   ;;  %v7908_v2 = vld [vmem:[#allocation7 + $0x324] ss:$16 sps:$4 sm:$0xff]  }
  0xf2   : > { %1467 = vmatpush1.bf16.msra.mxu0 %v6953_v35  ;;  %1510 = vmatpush1.bf16.msra.mxu1 %v6955_v38  ;;  %v7855_v35 = vld [vmem:[#allocation7 + $0x20] ss:$16 sps:$4 sm:$0xff]   ;;  %v7866_v38 = vld [vmem:[#allocation7 + $0x204] ss:$16 sps:$4 sm:$0xff]  }
  0xf3   : > { %1468 = vmatprep.subr.bf16.mxu0 %v6938_v39  ;;  %1511 = vmatprep.subr.bf16.mxu1 %v6940_v40  ;;  %v7861_v39 = vld [vmem:[#allocation7] ss:$16 sps:$4 sm:$0xff]  }
  0xf4   : > { %v7864_v40 = vld [vmem:[#allocation7 + $0x200] ss:$16 sps:$4 sm:$0xff]  }
  0xf6   : > { %1469 = vmatpush1.bf16.msra.mxu0 %v6937_v43  ;;  %1512 = vmatpush1.bf16.msra.mxu1 %v6939_v46  ;;  %v7867_v43 = vld [vmem:[#allocation7 + $0x1e0] ss:$16 sps:$4 sm:$0xff]   ;;  %v7878_v46 = vld [vmem:[#allocation7 + $0x3c4] ss:$16 sps:$4 sm:$0xff]  }
  0xf7   : > { %1470 = vmatprep.subr.bf16.mxu0 %v6922_v0  ;;  %1513 = vmatprep.subr.bf16.mxu1 %v6924_v47  ;;  %v7873_v0 = vld [vmem:[#allocation7 + $0x1c0] ss:$16 sps:$4 sm:$0xff]  }
  0xf8   : > { %v7876_v47 = vld [vmem:[#allocation7 + $0x3c0] ss:$16 sps:$4 sm:$0xff]  }
  0xfa   : > { %1471 = vmatpush1.bf16.msra.mxu0 %v6921_v50  ;;  %1514 = vmatpush1.bf16.msra.mxu1 %v6923_v53  ;;  %v7879_v50 = vld [vmem:[#allocation7 + $0x1a0] ss:$16 sps:$4 sm:$0xff]   ;;  %v7890_v53 = vld [vmem:[#allocation7 + $0x384] ss:$16 sps:$4 sm:$0xff]  }
  0xfb   : > { %1472 = vmatprep.subr.bf16.mxu0 %v6906_v54  ;;  %1515 = vmatprep.subr.bf16.mxu1 %v6908_v55  ;;  %v7885_v54 = vld [vmem:[#allocation7 + $0x180] ss:$16 sps:$4 sm:$0xff]  }
  0xfc   : > { %v7888_v55 = vld [vmem:[#allocation7 + $0x380] ss:$16 sps:$4 sm:$0xff]  }
  0xfe   : > { %1473 = vmatpush1.bf16.msra.mxu0 %v6905_v58  ;;  %1516 = vmatpush1.bf16.msra.mxu1 %v6907_v61  ;;  %v7891_v58 = vld [vmem:[#allocation7 + $0x160] ss:$16 sps:$4 sm:$0xff]   ;;  %v7902_v61 = vld [vmem:[#allocation7 + $0x344] ss:$16 sps:$4 sm:$0xff]  }
  0xff   : > { %1474 = vmatprep.subr.bf16.mxu0 %v6890_v62  ;;  %1517 = vmatprep.subr.bf16.mxu1 %v6892_v63  ;;  %v7897_v62 = vld [vmem:[#allocation7 + $0x140] ss:$16 sps:$4 sm:$0xff]  }
 0x100   : > { %v7900_v63 = vld [vmem:[#allocation7 + $0x340] ss:$16 sps:$4 sm:$0xff]  }
 0x102   : > { %1475 = vmatpush1.bf16.msra.mxu0 %v6889_v3  ;;  %1518 = vmatpush1.bf16.msra.mxu1 %v6891_v4  ;;  %v7903_v3 = vld [vmem:[#allocation7 + $0x120] ss:$16 sps:$4 sm:$0xff]  }
 0x103   : > { %1476 = vmatprep.subr.bf16.mxu0 %v6874_v5  ;;  %1519 = vmatprep.subr.bf16.mxu1 %v6876_v6  ;;  %v7906_v4 = vld [vmem:[#allocation7 + $0x320] ss:$16 sps:$4 sm:$0xff]   ;;  %v7911_v5 = vld [vmem:[#allocation7 + $0x104] ss:$16 sps:$4 sm:$0xff]  }
 0x104   : > { %v7914_v6 = vld [vmem:[#allocation7 + $0x304] ss:$16 sps:$4 sm:$0xff]  }
 0x106   : > { %1477 = vmatpush1.bf16.msra.mxu0 %v6873_v8  ;;  %1520 = vmatpush1.bf16.msra.mxu1 %v6875_v10  ;;  %v7912_v8 = vld [vmem:[#allocation7 + $0x300] ss:$16 sps:$4 sm:$0xff]   ;;  %v7920_v10 = vld [vmem:[#allocation7 + $0x6e4] ss:$16 sps:$4 sm:$0xff]  }
 0x107   : > { %4691 = vmatprep.subr.bf16.mxu0 %v7821_v7  ;;  %4734 = vmatprep.subr.bf16.mxu1 %v7824_v9  ;;  %v7909_v7 = vld [vmem:[#allocation7 + $0x100] ss:$16 sps:$4 sm:$0xff]   ;;  %v7917_v9 = vld [vmem:[#allocation7 + $0x4e4] ss:$16 sps:$4 sm:$0xff]  }
 0x109   : > { %1495 = vmatmul.mubr.bf16.vlgmr.msra.gmra.mxu0 %v9294_v12  ;;  %1538 = vmatmul.mubr.bf16.vlgmr.msra.gmra.mxu1 %v9294_v12  ;;  %v7843_v12 = vld [vmem:[#allocation7 + $0x60] ss:$16 sps:$4 sm:$0xff]  }
 0x10a   : > { %4692 = vmatpush1.bf16.msra.mxu0 %v7819_v11  ;;  %4735 = vmatpush1.bf16.msra.mxu1 %v7822_v13  ;;  %v484_v11 = vlaneseq  ;;  %v475_v13 = vld [vmem:[#allocation11] ss:$8 sm:$0xf] }
 0x10b   : > { %4693 = vmatprep.subr.bf16.mxu0 %v7827_v14  ;;  %4736 = vmatprep.subr.bf16.mxu1 %v7830_v15  ;;  %v476_v14 = vld [vmem:[#allocation11] ss:$8 sm:$0xf0] }
 0x10c   : > { %v9310_v15 = vshrl.u32 %v484_v11, 7 }
 0x10e   : > { %4694 = vmatpush1.bf16.msra.mxu0 %v7825_v16  ;;  %4737 = vmatpush1.bf16.msra.mxu1 %v7828_v17  ;;  %v9313_v16 = vsub.s32 1, %v9310_v15  ;;  %v9315_v17 = vor.u32 %v476_v14, %v475_v13  ;;  %v7948_v13 = vld [vmem:[#allocation7 + $0x640] ss:$16 sps:$4 sm:$0xff]   ;;  %v7953_v14 = vld [vmem:[#allocation7 + $0x424] ss:$16 sps:$4 sm:$0xff]  }
 0x10f   : > { %4695 = vmatprep.subr.bf16.mxu0 %v7833_v18  ;;  %4738 = vmatprep.subr.bf16.mxu1 %v7836_v19  ;;  %v9318_v18 = vsub.s32 0, %v9310_v15  ;;  %v9321_v19 = vsub.s32 3, %v9310_v15 }
 0x112   : > { %4696 = vmatpush1.bf16.msra.mxu0 %v7831_v20  ;;  %4739 = vmatpush1.bf16.msra.mxu1 %v7834_v21  ;;  %v9324_v20 = vsub.s32 2, %v9310_v15 }
 0x113   : > { %4697 = vmatprep.subr.bf16.mxu0 %v7839_v22  ;;  %4740 = vmatprep.subr.bf16.mxu1 %v7842_v23  ;;  %v491_v23 = vrot.slane %v9315_v17, %v9313_v16 }
 0x116   : > { %4698 = vmatpush1.bf16.msra.mxu0 %v7837_v24  ;;  %4741 = vmatpush1.bf16.msra.mxu1 %v7840_v25  ;;  %v487_v24 = vrot.slane %v9315_v17, %v9318_v18 }
 0x117   : > { %4699 = vmatprep.subr.bf16.mxu0 %v7845_v26  ;;  %4742 = vmatprep.subr.bf16.mxu1 %v7848_v27  ;;  %v499_v26 = vrot.slane %v9315_v17, %v9321_v19  ;;  %v495_v27 = vrot.slane %v9315_v17, %v9324_v20 }
 0x11a   : > { %4700 = vmatpush1.bf16.msra.mxu0 %v7843_v12  ;;  %4743 = vmatpush1.bf16.msra.mxu1 %v7846_v28 }
 0x11b   : > { %4701 = vmatprep.subr.bf16.mxu0 %v7851_v29  ;;  %4744 = vmatprep.subr.bf16.mxu1 %v7854_v30 }
 0x11e   : > { %4702 = vmatpush1.bf16.msra.mxu0 %v7849_v31  ;;  %4745 = vmatpush1.bf16.msra.mxu1 %v7852_v32 }
 0x11f   : > { %4703 = vmatprep.subr.bf16.mxu0 %v7857_v33  ;;  %4746 = vmatprep.subr.bf16.mxu1 %v7860_v34 }
 0x122   : > { %4704 = vmatpush1.bf16.msra.mxu0 %v7855_v35  ;;  %4747 = vmatpush1.bf16.msra.mxu1 %v7858_v36 }
 0x123   : > { %4705 = vmatprep.subr.bf16.mxu0 %v7863_v37  ;;  %4748 = vmatprep.subr.bf16.mxu1 %v7866_v38 }
 0x126   : > { %4706 = vmatpush1.bf16.msra.mxu0 %v7861_v39  ;;  %4749 = vmatpush1.bf16.msra.mxu1 %v7864_v40 }
 0x127   : > { %4707 = vmatprep.subr.bf16.mxu0 %v7869_v41  ;;  %4750 = vmatprep.subr.bf16.mxu1 %v7872_v42 }
 0x12a   : > { %4708 = vmatpush2.bf16.msra.mxu0 %v7867_v43  ;;  %4751 = vmatpush2.bf16.msra.mxu1 %v7870_v44  ;;  %v7915_v44 = vld [vmem:[#allocation7 + $0x4e0] ss:$16 sps:$4 sm:$0xff]  }
 0x12b   : > { %4709 = vmatprep.subr.bf16.mxu0 %v7875_v45  ;;  %4752 = vmatprep.subr.bf16.mxu1 %v7878_v46 }
 0x12e   : > { %4710 = vmatpush2.bf16.msra.mxu0 %v7873_v0  ;;  %4753 = vmatpush2.bf16.msra.mxu1 %v7876_v47  ;;  %v7918_v47 = vld [vmem:[#allocation7 + $0x6e0] ss:$16 sps:$4 sm:$0xff]  }
 0x12f   : > { %4711 = vmatprep.subr.bf16.mxu0 %v7881_v48  ;;  %4754 = vmatprep.subr.bf16.mxu1 %v7884_v49  ;;  %v7923_v48 = vld [vmem:[#allocation7 + $0x4c4] ss:$16 sps:$4 sm:$0xff]  }
 0x132   : > { %4712 = vmatpush2.bf16.msra.mxu0 %v7879_v50  ;;  %4755 = vmatpush2.bf16.msra.mxu1 %v7882_v51 }
 0x133   : > { %4713 = vmatprep.subr.bf16.mxu0 %v7887_v52  ;;  %4756 = vmatprep.subr.bf16.mxu1 %v7890_v53 }
 0x136   : > { %4714 = vmatpush2.bf16.msra.mxu0 %v7885_v54  ;;  %4757 = vmatpush2.bf16.msra.mxu1 %v7888_v55  ;;  %v7926_v54 = vld [vmem:[#allocation7 + $0x6c4] ss:$16 sps:$4 sm:$0xff]   ;;  %v7921_v55 = vld [vmem:[#allocation7 + $0x4c0] ss:$16 sps:$4 sm:$0xff]  }
 0x137   : > { %4715 = vmatprep.subr.bf16.mxu0 %v7893_v56  ;;  %4758 = vmatprep.subr.bf16.mxu1 %v7896_v57  ;;  %v7924_v56 = vld [vmem:[#allocation7 + $0x6c0] ss:$16 sps:$4 sm:$0xff]   ;;  %v7929_v57 = vld [vmem:[#allocation7 + $0x4a4] ss:$16 sps:$4 sm:$0xff]  }
 0x13a   : > { %4716 = vmatpush2.bf16.msra.mxu0 %v7891_v58  ;;  %4759 = vmatpush2.bf16.msra.mxu1 %v7894_v59  ;;  %v7927_v58 = vld [vmem:[#allocation7 + $0x4a0] ss:$16 sps:$4 sm:$0xff]   ;;  %v7932_v59 = vld [vmem:[#allocation7 + $0x6a4] ss:$16 sps:$4 sm:$0xff]  }
 0x13b   : > { %4717 = vmatprep.subr.bf16.mxu0 %v7899_v60  ;;  %4760 = vmatprep.subr.bf16.mxu1 %v7902_v61  ;;  %v7930_v60 = vld [vmem:[#allocation7 + $0x6a0] ss:$16 sps:$4 sm:$0xff]   ;;  %v7935_v61 = vld [vmem:[#allocation7 + $0x484] ss:$16 sps:$4 sm:$0xff]  }
 0x13e   : > { %4718 = vmatpush2.bf16.msra.mxu0 %v7897_v62  ;;  %4761 = vmatpush2.bf16.msra.mxu1 %v7900_v63  ;;  %v7933_v62 = vld [vmem:[#allocation7 + $0x480] ss:$16 sps:$4 sm:$0xff]   ;;  %v7938_v63 = vld [vmem:[#allocation7 + $0x684] ss:$16 sps:$4 sm:$0xff]  }
 0x13f   : > { %4719 = vmatprep.subr.bf16.mxu0 %v7905_v1  ;;  %4762 = vmatprep.subr.bf16.mxu1 %v7908_v2  ;;  %v7936_v1 = vld [vmem:[#allocation7 + $0x680] ss:$16 sps:$4 sm:$0xff]   ;;  %v7941_v2 = vld [vmem:[#allocation7 + $0x464] ss:$16 sps:$4 sm:$0xff]  }
 0x142   : > { %4720 = vmatpush2.bf16.msra.mxu0 %v7903_v3  ;;  %4763 = vmatpush2.bf16.msra.mxu1 %v7906_v4  ;;  %v7939_v3 = vld [vmem:[#allocation7 + $0x460] ss:$16 sps:$4 sm:$0xff]   ;;  %v7944_v4 = vld [vmem:[#allocation7 + $0x664] ss:$16 sps:$4 sm:$0xff]  }
 0x143   : > { %4721 = vmatprep.subr.bf16.mxu0 %v7911_v5  ;;  %4764 = vmatprep.subr.bf16.mxu1 %v7914_v6  ;;  %v506_v5 = vsub.s32 5, %v9310_v15  ;;  %v7942_v6 = vld [vmem:[#allocation7 + $0x660] ss:$16 sps:$4 sm:$0xff]  }
 0x145   : > { %v507_v11 = vrot.slane %v9315_v17, %v506_v5 }
 0x146   : > { %4722 = vmatpush2.bf16.msra.mxu0 %v7909_v7  ;;  %4765 = vmatpush2.bf16.msra.mxu1 %v7912_v8  ;;  %v7947_v7 = vld [vmem:[#allocation7 + $0x444] ss:$16 sps:$4 sm:$0xff]   ;;  %v514_v8 = vsub.s32 7, %v9310_v15 }
 0x147   : > { %4777 = vmatprep.subr.bf16.mxu0 %v7917_v9  ;;  %4820 = vmatprep.subr.bf16.mxu1 %v7920_v10  ;;  %v7945_v9 = vld [vmem:[#allocation7 + $0x440] ss:$16 sps:$4 sm:$0xff]   ;;  %v7950_v10 = vld [vmem:[#allocation7 + $0x644] ss:$16 sps:$4 sm:$0xff]  }
 0x169   : > { %v1238_v21 = vpop.f32.mrf.mxu0  ;;  %v1281_v22 = vpop.f32.mrf.mxu1 }
 0x16a   : > { %v1239_v32 = vadd.f32 %v1238_v21, %v487_v24  ;;  %v1282_v36 = vadd.f32 %v1281_v22, %v495_v27  ;;  %v515_v22 = vrot.slane %v9315_v17, %v514_v8 }
 0x16b   : > { %v1240_v25 = vpop.f32.mrf.mxu0  ;;  %v1283_v12 = vpop.f32.mrf.mxu1 }
 0x16c   : > { %v1241_v29 = vadd.f32 %v1240_v25, %v491_v23  ;;  %v1284_v33 = vadd.f32 %v1283_v12, %v499_v26  ;;  %v1548_v45 = vmax.f32 %v1239_v32, 0.0  ;;  %v1550_v49 = vmax.f32 %v1282_v36, 0.0  ;;  %v7957_v32 = vld [vmem:[#allocation7 + $0x400] ss:$16 sps:$4 sm:$0xff]  }
 0x16d   : > { %v1242_v28 = vpop.f32.mrf.mxu0  ;;  %v1285_v31 = vpop.f32.mrf.mxu1 }
 0x16e   : > { %v1243_v30 = vadd.f32 %v1242_v28, %v487_v24  ;;  %v1286_v34 = vadd.f32 %v1285_v31, %v495_v27  ;;  %v1549_v41 = vmax.f32 %v1241_v29, 0.0  ;;  %v1551_v46 = vmax.f32 %v1284_v33, 0.0  ;;  %v7956_v24 = vld [vmem:[#allocation7 + $0x624] ss:$16 sps:$4 sm:$0xff]   ;;  %v7954_v28 = vld [vmem:[#allocation7 + $0x620] ss:$16 sps:$4 sm:$0xff]  }
 0x16f   : > { %v1244_v35 = vpop.f32.mrf.mxu0  ;;  %v1287_v38 = vpop.f32.mrf.mxu1  ;;  %v7959_v29 = vld [vmem:[#allocation7 + $0x404] ss:$16 sps:$4 sm:$0xff]  }
 0x170   : > { %v1245_v37 = vadd.f32 %v1244_v35, %v491_v23  ;;  %v1564_v39 = vmax.f32 %v1243_v30, 0.0  ;;  %v1288_v40 = vadd.f32 %v1287_v38, %v499_v26  ;;  %v1566_v42 = vmax.f32 %v1286_v34, 0.0  ;;  %v7951_v23 = vld [vmem:[#allocation7 + $0x420] ss:$16 sps:$4 sm:$0xff]   ;;  %v7962_v33 = vld [vmem:[#allocation7 + $0x604] ss:$16 sps:$4 sm:$0xff]  }
 0x172   : > { %v1565_v43 = vmax.f32 %v1245_v37, 0.0  ;;  %v1567_v0 = vmax.f32 %v1288_v40, 0.0  ;;  %v9336_v51 = vpack.c.bf16 %v1564_v39, %v1548_v45  ;;  %v9340_v53 = vpack.c.bf16 %v1566_v42, %v1550_v49  ;;  %v7960_v39 = vld [vmem:[#allocation7 + $0x600] ss:$16 sps:$4 sm:$0xff]   ;;  %v7965_v40 = vld [vmem:[#allocation7 + $0x5e4] ss:$16 sps:$4 sm:$0xff]  }
 0x174   : > { %v9334_v50 = vpack.c.bf16 %v1565_v43, %v1549_v41  ;;  %v9338_v52 = vpack.c.bf16 %v1567_v0, %v1551_v46  ;;  %v7963_v43 = vld [vmem:[#allocation7 + $0x5e0] ss:$16 sps:$4 sm:$0xff]  }
 0x176   : > { %4723 = vmatprep.mubr.bf16.mxu0 %v9334_v50  ;;  %4766 = vmatprep.mubr.bf16.mxu1 %v9338_v52 }
 0x177   : > { %4724 = vmatmul.mubr.bf16.vlgmr.msra.gmra.mxu0 %v9336_v51  ;;  %4767 = vmatmul.mubr.bf16.vlgmr.msra.gmra.mxu1 %v9340_v53 }
 0x178   : > { %4778 = vmatpush1.bf16.msra.mxu0 %v7915_v44  ;;  %4821 = vmatpush1.bf16.msra.mxu1 %v7918_v47  ;;  %v7968_v44 = vld [vmem:[#allocation7 + $0x7e4] ss:$16 sps:$4 sm:$0xff]   ;;  %v7966_v47 = vld [vmem:[#allocation7 + $0x7e0] ss:$16 sps:$4 sm:$0xff]  }
 0x179   : > { %4779 = vmatprep.subr.bf16.mxu0 %v7923_v48  ;;  %4822 = vmatprep.subr.bf16.mxu1 %v7926_v54  ;;  %v7971_v48 = vld [vmem:[#allocation7 + $0x5c4] ss:$16 sps:$4 sm:$0xff]   ;;  %v7969_v54 = vld [vmem:[#allocation7 + $0x5c0] ss:$16 sps:$4 sm:$0xff]  }
 0x17c   : > { %4780 = vmatpush1.bf16.msra.mxu0 %v7921_v55  ;;  %4823 = vmatpush1.bf16.msra.mxu1 %v7924_v56  ;;  %v7974_v55 = vld [vmem:[#allocation7 + $0x7c4] ss:$16 sps:$4 sm:$0xff]   ;;  %v7972_v56 = vld [vmem:[#allocation7 + $0x7c0] ss:$16 sps:$4 sm:$0xff]  }
 0x17d   : > { %4781 = vmatprep.subr.bf16.mxu0 %v7929_v57  ;;  %4824 = vmatprep.subr.bf16.mxu1 %v7932_v59  ;;  %v7977_v57 = vld [vmem:[#allocation7 + $0x5a4] ss:$16 sps:$4 sm:$0xff]  }
 0x17e   : > { %v7980_v59 = vld [vmem:[#allocation7 + $0x7a4] ss:$16 sps:$4 sm:$0xff]  }
 0x180   : > { %4782 = vmatpush1.bf16.msra.mxu0 %v7927_v58  ;;  %4825 = vmatpush1.bf16.msra.mxu1 %v7930_v60  ;;  %v7975_v58 = vld [vmem:[#allocation7 + $0x5a0] ss:$16 sps:$4 sm:$0xff]  }
 0x181   : > { %4783 = vmatprep.subr.bf16.mxu0 %v7935_v61  ;;  %4826 = vmatprep.subr.bf16.mxu1 %v7938_v63  ;;  %v7978_v60 = vld [vmem:[#allocation7 + $0x7a0] ss:$16 sps:$4 sm:$0xff]   ;;  %v7983_v61 = vld [vmem:[#allocation7 + $0x584] ss:$16 sps:$4 sm:$0xff]  }
 0x182   : > { %v7986_v63 = vld [vmem:[#allocation7 + $0x784] ss:$16 sps:$4 sm:$0xff]  }
 0x184   : > { %4784 = vmatpush1.bf16.msra.mxu0 %v7933_v62  ;;  %4827 = vmatpush1.bf16.msra.mxu1 %v7936_v1  ;;  %v7981_v62 = vld [vmem:[#allocation7 + $0x580] ss:$16 sps:$4 sm:$0xff]  }
 0x185   : > { %4785 = vmatprep.subr.bf16.mxu0 %v7941_v2  ;;  %4828 = vmatprep.subr.bf16.mxu1 %v7944_v4  ;;  %v7984_v1 = vld [vmem:[#allocation7 + $0x780] ss:$16 sps:$4 sm:$0xff]   ;;  %v7989_v2 = vld [vmem:[#allocation7 + $0x564] ss:$16 sps:$4 sm:$0xff]  }
 0x186   : > { %v479_v4 = vld [vmem:[#allocation11 + $0x40] ss:$8 sm:$0xf] }
 0x188   : > { %4786 = vmatpush1.bf16.msra.mxu0 %v7939_v3  ;;  %4829 = vmatpush1.bf16.msra.mxu1 %v7942_v6  ;;  %v7992_v3 = vld [vmem:[#allocation7 + $0x764] ss:$16 sps:$4 sm:$0xff]   ;;  %v7987_v6 = vld [vmem:[#allocation7 + $0x560] ss:$16 sps:$4 sm:$0xff]  }
 0x189   : > { %4787 = vmatprep.subr.bf16.mxu0 %v7947_v7  ;;  %v9351_v21 = vpop.f32.mrf.mxu0  ;;  %4830 = vmatprep.subr.bf16.mxu1 %v7950_v10  ;;  %v9356_v25 = vpop.f32.mrf.mxu1  ;;  %v480_v7 = vld [vmem:[#allocation11 + $0x40] ss:$8 sm:$0xf0] }
 0x18a   : > { %v7990_v10 = vld [vmem:[#allocation7 + $0x760] ss:$16 sps:$4 sm:$0xff]  }
 0x18b   : > { %v1326_v26 = vpop.f32.mrf.mxu0  ;;  %v1369_v12 = vpop.f32.mrf.mxu1 }
 0x18c   : > { %4788 = vmatpush1.bf16.msra.mxu0 %v7945_v9  ;;  %v1327_v27 = vadd.f32 %v1326_v26, %v507_v11  ;;  %4831 = vmatpush1.bf16.msra.mxu1 %v7948_v13  ;;  %v1370_v31 = vadd.f32 %v1369_v12, %v515_v22  ;;  %v502_v9 = vsub.s32 4, %v9310_v15  ;;  %v510_v13 = vsub.s32 6, %v9310_v15  ;;  %v7996_v26 = vld [vmem:[#allocation7 + $0x740] ss:$16 sps:$4 sm:$0xff]   ;;  %v8106_v15 = vld [vmem:[#allocation7 + $0xb04] ss:$16 sps:$4 sm:$0xff]  }
 0x18d   : > { %4789 = vmatprep.subr.bf16.mxu0 %v7953_v14  ;;  %v9358_v30 = vpop.f32.mrf.mxu0  ;;  %4832 = vmatprep.subr.bf16.mxu1 %v7956_v24  ;;  %v9360_v34 = vpop.f32.mrf.mxu1  ;;  %v7993_v14 = vld [vmem:[#allocation7 + $0x540] ss:$16 sps:$4 sm:$0xff]  }
 0x18e   : > { %v1553_v36 = vmax.f32 %v1327_v27, 0.0  ;;  %v1555_v41 = vmax.f32 %v1370_v31, 0.0  ;;  %v503_v24 = vrot.slane %v9315_v17, %v502_v9  ;;  %v8001_v27 = vld [vmem:[#allocation7 + $0x524] ss:$16 sps:$4 sm:$0xff]  }
 0x18f   : > { %v1330_v35 = vpop.f32.mrf.mxu0  ;;  %v1373_v38 = vpop.f32.mrf.mxu1  ;;  %v8004_v31 = vld [vmem:[#allocation7 + $0x724] ss:$16 sps:$4 sm:$0xff]  }
 0x190   : > { %4790 = vmatpush1.bf16.msra.mxu0 %v7951_v23  ;;  %v1331_v37 = vadd.f32 %v1330_v35, %v507_v11  ;;  %4833 = vmatpush1.bf16.msra.mxu1 %v7954_v28  ;;  %v1374_v42 = vadd.f32 %v1373_v38, %v515_v22  ;;  %v7995_v11 = vld [vmem:[#allocation7 + $0x544] ss:$16 sps:$4 sm:$0xff]   ;;  %v9370_v23 = vor.u32 %v480_v7, %v479_v4 }
 0x191   : > { %4791 = vmatprep.subr.bf16.mxu0 %v7959_v29  ;;  %4834 = vmatprep.subr.bf16.mxu1 %v7962_v33  ;;  %v7998_v22 = vld [vmem:[#allocation7 + $0x744] ss:$16 sps:$4 sm:$0xff]   ;;  %v511_v28 = vrot.slane %v9315_v17, %v510_v13  ;;  %v7999_v29 = vld [vmem:[#allocation7 + $0x520] ss:$16 sps:$4 sm:$0xff]   ;;  %v1325_v38 = vadd.f32 %v9351_v21, %v503_v24 }
 0x192   : > { %v1569_v45 = vmax.f32 %v1331_v37, 0.0  ;;  %v1571_v46 = vmax.f32 %v1374_v42, 0.0  ;;  %v8002_v17 = vld [vmem:[#allocation7 + $0x720] ss:$16 sps:$4 sm:$0xff]   ;;  %v8013_v21 = vld [vmem:[#allocation7 + $0x8e4] ss:$16 sps:$4 sm:$0xff]  }
 0x193   : > { %v1368_v42 = vadd.f32 %v9356_v25, %v511_v28  ;;  %v8016_v25 = vld [vmem:[#allocation7 + $0xae4] ss:$16 sps:$4 sm:$0xff]  }
 0x194   : > { %4792 = vmatpush1.bf16.msra.mxu0 %v7957_v32  ;;  %v9362_v0 = vpack.c.bf16 %v1569_v45, %v1553_v36  ;;  %4835 = vmatpush1.bf16.msra.mxu1 %v7960_v39  ;;  %v9364_v49 = vpack.c.bf16 %v1571_v46, %v1555_v41  ;;  %v523_v32 = vrot.slane %v9370_v23, %v9313_v16  ;;  %v8010_v45 = vld [vmem:[#allocation7 + $0x704] ss:$16 sps:$4 sm:$0xff]  }
 0x195   : > { %4793 = vmatprep.subr.bf16.mxu0 %v7965_v40  ;;  %4836 = vmatprep.subr.bf16.mxu1 %v7968_v44  ;;  %v531_v36 = vrot.slane %v9370_v23, %v9321_v19  ;;  %v1329_v39 = vadd.f32 %v9358_v30, %v503_v24  ;;  %v8007_v40 = vld [vmem:[#allocation7 + $0x504] ss:$16 sps:$4 sm:$0xff]   ;;  %v8005_v44 = vld [vmem:[#allocation7 + $0x500] ss:$16 sps:$4 sm:$0xff]  }
 0x196   : > { %4809 = vmatprep.mubr.bf16.mxu0 %v9362_v0  ;;  %4852 = vmatprep.mubr.bf16.mxu1 %v9364_v49  ;;  %v8025_v24 = vld [vmem:[#allocation7 + $0x8a4] ss:$16 sps:$4 sm:$0xff]  }
 0x198   : > { %4794 = vmatpush2.bf16.msra.mxu0 %v7963_v43  ;;  %4837 = vmatpush2.bf16.msra.mxu1 %v7966_v47  ;;  %v1372_v43 = vadd.f32 %v9360_v34, %v511_v28  ;;  %v1554_v34 = vmax.f32 %v1368_v42, 0.0  ;;  %v8023_v28 = vld [vmem:[#allocation7 + $0x8a0] ss:$16 sps:$4 sm:$0xff]  }
 0x199   : > { %4795 = vmatprep.subr.bf16.mxu0 %v7971_v48  ;;  %4838 = vmatprep.subr.bf16.mxu1 %v7974_v55  ;;  %v8008_v48 = vld [vmem:[#allocation7 + $0x700] ss:$16 sps:$4 sm:$0xff]  }
 0x19a   : > { %v8041_v42 = vld [vmem:[#allocation7 + $0x840] ss:$16 sps:$4 sm:$0xff]  }
 0x19c   : > { %4796 = vmatpush2.bf16.msra.mxu0 %v7969_v54  ;;  %4839 = vmatpush2.bf16.msra.mxu1 %v7972_v56 }
 0x19d   : > { %4797 = vmatprep.subr.bf16.mxu0 %v7977_v57  ;;  %4840 = vmatprep.subr.bf16.mxu1 %v7980_v59  ;;  %v1552_v57 = vmax.f32 %v1325_v38, 0.0  ;;  %v8035_v38 = vld [vmem:[#allocation7 + $0x860] ss:$16 sps:$4 sm:$0xff]  }
 0x1a0   : > { %4798 = vmatpush2.bf16.msra.mxu0 %v7975_v58  ;;  %4841 = vmatpush2.bf16.msra.mxu1 %v7978_v60  ;;  %v1568_v58 = vmax.f32 %v1329_v39, 0.0  ;;  %v1570_v60 = vmax.f32 %v1372_v43, 0.0  ;;  %v8040_v39 = vld [vmem:[#allocation7 + $0xa64] ss:$16 sps:$4 sm:$0xff]  }
 0x1a1   : > { %4799 = vmatprep.subr.bf16.mxu0 %v7983_v61  ;;  %4842 = vmatprep.subr.bf16.mxu1 %v7986_v63  ;;  %v8011_v61 = vld [vmem:[#allocation7 + $0x8e0] ss:$16 sps:$4 sm:$0xff]   ;;  %v8046_v43 = vld [vmem:[#allocation7 + $0xa44] ss:$16 sps:$4 sm:$0xff]  }
 0x1a2   : > { %v9396_v7 = vpack.c.bf16 %v1570_v60, %v1554_v34  ;;  %v8053_v34 = vld [vmem:[#allocation7 + $0x800] ss:$16 sps:$4 sm:$0xff]   ;;  %v8058_v60 = vld [vmem:[#allocation7 + $0xa04] ss:$16 sps:$4 sm:$0xff]  }
 0x1a4   : > { %4800 = vmatpush2.bf16.msra.mxu0 %v7981_v62  ;;  %4843 = vmatpush2.bf16.msra.mxu1 %v7984_v1  ;;  %v8014_v1 = vld [vmem:[#allocation7 + $0xae0] ss:$16 sps:$4 sm:$0xff]  }
 0x1a5   : > { %4801 = vmatprep.subr.bf16.mxu0 %v7989_v2  ;;  %4844 = vmatprep.subr.bf16.mxu1 %v7992_v3  ;;  %v8019_v2 = vld [vmem:[#allocation7 + $0x8c4] ss:$16 sps:$4 sm:$0xff]  }
 0x1a8   : > { %4802 = vmatpush2.bf16.msra.mxu0 %v7987_v6  ;;  %4845 = vmatpush2.bf16.msra.mxu1 %v7990_v10  ;;  %v9394_v6 = vpack.c.bf16 %v1568_v58, %v1552_v57  ;;  %v8017_v10 = vld [vmem:[#allocation7 + $0x8c0] ss:$16 sps:$4 sm:$0xff]  }
 0x1a9   : > { %4803 = vmatprep.subr.bf16.mxu0 %v7995_v11  ;;  %v9375_v12 = vpop.f32.mrf.mxu0  ;;  %4846 = vmatprep.subr.bf16.mxu1 %v7998_v22  ;;  %v9382_v33 = vpop.f32.mrf.mxu1  ;;  %v8022_v11 = vld [vmem:[#allocation7 + $0xac4] ss:$16 sps:$4 sm:$0xff]   ;;  %v8020_v22 = vld [vmem:[#allocation7 + $0xac0] ss:$16 sps:$4 sm:$0xff]  }
 0x1ab   : > { %v1412_v35 = vpop.f32.mrf.mxu0  ;;  %v1455_v37 = vpop.f32.mrf.mxu1 }
 0x1ac   : > { %4804 = vmatpush2.bf16.msra.mxu0 %v7993_v14  ;;  %4847 = vmatpush2.bf16.msra.mxu1 %v7996_v26  ;;  %v1413_v46 = vadd.f32 %v1412_v35, %v523_v32  ;;  %v1456_v54 = vadd.f32 %v1455_v37, %v531_v36  ;;  %v8029_v35 = vld [vmem:[#allocation7 + $0x880] ss:$16 sps:$4 sm:$0xff]   ;;  %v8037_v37 = vld [vmem:[#allocation7 + $0x864] ss:$16 sps:$4 sm:$0xff]  }
 0x1ad   : > { %4805 = vmatprep.subr.bf16.mxu0 %v8001_v27  ;;  %v9388_v41 = vpop.f32.mrf.mxu0  ;;  %4848 = vmatprep.subr.bf16.mxu1 %v8004_v31  ;;  %v9392_v47 = vpop.f32.mrf.mxu1  ;;  %v8028_v27 = vld [vmem:[#allocation7 + $0xaa4] ss:$16 sps:$4 sm:$0xff]  }
 0x1ae   : > { %v1557_v62 = vmax.f32 %v1413_v46, 0.0  ;;  %v1559_v3 = vmax.f32 %v1456_v54, 0.0  ;;  %v8031_v31 = vld [vmem:[#allocation7 + $0x884] ss:$16 sps:$4 sm:$0xff]   ;;  %v8044_v46 = vld [vmem:[#allocation7 + $0xa40] ss:$16 sps:$4 sm:$0xff]  }
 0x1af   : > { %v1416_v30 = vpop.f32.mrf.mxu0  ;;  %v1459_v56 = vpop.f32.mrf.mxu1  ;;  %v8047_v54 = vld [vmem:[#allocation7 + $0x820] ss:$16 sps:$4 sm:$0xff]  }
 0x1b0   : > { %4806 = vmatpush2.bf16.msra.mxu0 %v7999_v29  ;;  %v1417_v55 = vadd.f32 %v1416_v30, %v523_v32  ;;  %4849 = vmatpush2.bf16.msra.mxu1 %v8002_v17  ;;  %v1460_v59 = vadd.f32 %v1459_v56, %v531_v36  ;;  %v8026_v29 = vld [vmem:[#allocation7 + $0xaa0] ss:$16 sps:$4 sm:$0xff]   ;;  %v8034_v32 = vld [vmem:[#allocation7 + $0xa84] ss:$16 sps:$4 sm:$0xff]  }
 0x1b1   : > { %4807 = vmatprep.subr.bf16.mxu0 %v8007_v40  ;;  %4850 = vmatprep.subr.bf16.mxu1 %v8010_v45  ;;  %v8032_v36 = vld [vmem:[#allocation7 + $0xa80] ss:$16 sps:$4 sm:$0xff]   ;;  %v8043_v40 = vld [vmem:[#allocation7 + $0x844] ss:$16 sps:$4 sm:$0xff]   ;;  %v543_v45 = vrot.slane %v9370_v23, %v510_v13 }
 0x1b2   : > { %v1573_v63 = vmax.f32 %v1417_v55, 0.0  ;;  %v1575_v4 = vmax.f32 %v1460_v59, 0.0  ;;  %v8038_v17 = vld [vmem:[#allocation7 + $0xa60] ss:$16 sps:$4 sm:$0xff]   ;;  %v8052_v30 = vld [vmem:[#allocation7 + $0xa24] ss:$16 sps:$4 sm:$0xff]  }
 0x1b3   : > { %v8050_v13 = vld [vmem:[#allocation7 + $0xa20] ss:$16 sps:$4 sm:$0xff]  }
 0x1b4   : > { %4808 = vmatpush2.bf16.msra.mxu0 %v8005_v44  ;;  %4851 = vmatpush2.bf16.msra.mxu1 %v8008_v48  ;;  %v9398_v14 = vpack.c.bf16 %v1573_v63, %v1557_v62  ;;  %v9401_v26 = vpack.c.bf16 %v1575_v4, %v1559_v3  ;;  %v535_v44 = vrot.slane %v9370_v23, %v502_v9  ;;  %v8049_v48 = vld [vmem:[#allocation7 + $0x824] ss:$16 sps:$4 sm:$0xff]   ;;  %v8056_v4 = vld [vmem:[#allocation7 + $0xa00] ss:$16 sps:$4 sm:$0xff]  }
 0x1b5   : > { %4863 = vmatprep.subr.bf16.mxu0 %v8013_v21  ;;  %4906 = vmatprep.subr.bf16.mxu1 %v8016_v25  ;;  %v8055_v25 = vld [vmem:[#allocation7 + $0x804] ss:$16 sps:$4 sm:$0xff]  }
 0x1b7   : > { %4810 = vmatmul.mubr.bf16.vlgmr.msra.gmra.mxu0 %v9394_v6  ;;  %4853 = vmatmul.mubr.bf16.vlgmr.msra.gmra.mxu1 %v9396_v7 }
 0x1b8   : > { %4864 = vmatpush1.bf16.msra.mxu0 %v8011_v61  ;;  %4907 = vmatpush1.bf16.msra.mxu1 %v8014_v1 }
 0x1b9   : > { %4865 = vmatprep.subr.bf16.mxu0 %v8019_v2  ;;  %4908 = vmatprep.subr.bf16.mxu1 %v8022_v11 }
 0x1ba   : > { %4895 = vmatprep.mubr.bf16.mxu0 %v9398_v14  ;;  %4938 = vmatprep.mubr.bf16.mxu1 %v9401_v26 }
 0x1bc   : > { %4866 = vmatpush1.bf16.msra.mxu0 %v8017_v10  ;;  %4909 = vmatpush1.bf16.msra.mxu1 %v8020_v22  ;;  %v8061_v10 = vld [vmem:[#allocation7 + $0x9e4] ss:$16 sps:$4 sm:$0xff]   ;;  %v8059_v22 = vld [vmem:[#allocation7 + $0x9e0] ss:$16 sps:$4 sm:$0xff]  }
 0x1bd   : > { %4867 = vmatprep.subr.bf16.mxu0 %v8025_v24  ;;  %4910 = vmatprep.subr.bf16.mxu1 %v8028_v27  ;;  %v8064_v24 = vld [vmem:[#allocation7 + $0xbe4] ss:$16 sps:$4 sm:$0xff]  }
 0x1c0   : > { %4868 = vmatpush1.bf16.msra.mxu0 %v8023_v28  ;;  %4911 = vmatpush1.bf16.msra.mxu1 %v8026_v29  ;;  %v8062_v29 = vld [vmem:[#allocation7 + $0xbe0] ss:$16 sps:$4 sm:$0xff]  }
 0x1c1   : > { %4869 = vmatprep.subr.bf16.mxu0 %v8031_v31  ;;  %4912 = vmatprep.subr.bf16.mxu1 %v8034_v32  ;;  %v8067_v31 = vld [vmem:[#allocation7 + $0x9c4] ss:$16 sps:$4 sm:$0xff]   ;;  %v8065_v32 = vld [vmem:[#allocation7 + $0x9c0] ss:$16 sps:$4 sm:$0xff]  }
 0x1c4   : > { %4870 = vmatpush1.bf16.msra.mxu0 %v8029_v35  ;;  %4913 = vmatpush1.bf16.msra.mxu1 %v8032_v36  ;;  %v8070_v35 = vld [vmem:[#allocation7 + $0xbc4] ss:$16 sps:$4 sm:$0xff]   ;;  %v8068_v36 = vld [vmem:[#allocation7 + $0xbc0] ss:$16 sps:$4 sm:$0xff]  }
 0x1c5   : > { %4871 = vmatprep.subr.bf16.mxu0 %v8037_v37  ;;  %4914 = vmatprep.subr.bf16.mxu1 %v8040_v39  ;;  %v8073_v37 = vld [vmem:[#allocation7 + $0x9a4] ss:$16 sps:$4 sm:$0xff]  }
 0x1c6   : > { %v8076_v39 = vld [vmem:[#allocation7 + $0xba4] ss:$16 sps:$4 sm:$0xff]  }
 0x1c8   : > { %4872 = vmatpush1.bf16.msra.mxu0 %v8035_v38  ;;  %4915 = vmatpush1.bf16.msra.mxu1 %v8038_v17  ;;  %v8071_v38 = vld [vmem:[#allocation7 + $0x9a0] ss:$16 sps:$4 sm:$0xff]  }
 0x1c9   : > { %4873 = vmatprep.subr.bf16.mxu0 %v8043_v40  ;;  %v1496_v21 = vpop.f32.mrf.mxu0  ;;  %4916 = vmatprep.subr.bf16.mxu1 %v8046_v43  ;;  %v1539_v56 = vpop.f32.mrf.mxu1  ;;  %v8074_v17 = vld [vmem:[#allocation7 + $0xba0] ss:$16 sps:$4 sm:$0xff]   ;;  %v8079_v40 = vld [vmem:[#allocation7 + $0x984] ss:$16 sps:$4 sm:$0xff]  }
 0x1ca   : > { %v1497_v55 = vadd.f32 %v1496_v21, %v535_v44  ;;  %v1540_v58 = vadd.f32 %v1539_v56, %v543_v45  ;;  %v8082_v43 = vld [vmem:[#allocation7 + $0xb84] ss:$16 sps:$4 sm:$0xff]   ;;  %v8086_v21 = vld [vmem:[#allocation7 + $0xb60] ss:$16 sps:$4 sm:$0xff]   ;;  %v519_v56 = vrot.slane %v9370_v23, %v9318_v18 }
 0x1cb   : > { %v9412_v57 = vpop.f32.mrf.mxu0  ;;  %v9414_v9 = vpop.f32.mrf.mxu1 }
 0x1cc   : > { %4874 = vmatpush1.bf16.msra.mxu0 %v8041_v42  ;;  %4917 = vmatpush1.bf16.msra.mxu1 %v8044_v46  ;;  %v1560_v61 = vmax.f32 %v1497_v55, 0.0  ;;  %v1562_v1 = vmax.f32 %v1540_v58, 0.0  ;;  %v8077_v42 = vld [vmem:[#allocation7 + $0x980] ss:$16 sps:$4 sm:$0xff]   ;;  %v8094_v55 = vld [vmem:[#allocation7 + $0xb44] ss:$16 sps:$4 sm:$0xff]  }
 0x1cd   : > { %4875 = vmatprep.subr.bf16.mxu0 %v8049_v48  ;;  %v1500_v59 = vpop.f32.mrf.mxu0  ;;  %4918 = vmatprep.subr.bf16.mxu1 %v8052_v30  ;;  %v1543_v63 = vpop.f32.mrf.mxu1  ;;  %v8083_v46 = vld [vmem:[#allocation7 + $0x960] ss:$16 sps:$4 sm:$0xff]   ;;  %v8088_v48 = vld [vmem:[#allocation7 + $0xb64] ss:$16 sps:$4 sm:$0xff]  }
 0x1ce   : > { %v1501_v62 = vadd.f32 %v1500_v59, %v535_v44  ;;  %v1544_v2 = vadd.f32 %v1543_v63, %v543_v45  ;;  %v8080_v44 = vld [vmem:[#allocation7 + $0xb80] ss:$16 sps:$4 sm:$0xff]   ;;  %v8085_v45 = vld [vmem:[#allocation7 + $0x964] ss:$16 sps:$4 sm:$0xff]  }
 0x1cf   : > { %v8089_v30 = vld [vmem:[#allocation7 + $0x940] ss:$16 sps:$4 sm:$0xff]   ;;  %v1545_v63 = vpop.f32.mrf.mxu1 }
 0x1d0   : > { %4876 = vmatpush1.bf16.msra.mxu0 %v8047_v54  ;;  %v1576_v3 = vmax.f32 %v1501_v62, 0.0  ;;  %4919 = vmatpush1.bf16.msra.mxu1 %v8050_v13  ;;  %v1578_v11 = vmax.f32 %v1544_v2, 0.0  ;;  %v8091_v54 = vld [vmem:[#allocation7 + $0x944] ss:$16 sps:$4 sm:$0xff]   ;;  %v8092_v58 = vld [vmem:[#allocation7 + $0xb40] ss:$16 sps:$4 sm:$0xff]   ;;  %v1502_v62 = vpop.f32.mrf.mxu0  ;;  %v1415_v2 = vadd.f32 %v9388_v41, %v519_v56 }
 0x1d1   : > { %4877 = vmatprep.subr.bf16.mxu0 %v8055_v25  ;;  %4920 = vmatprep.subr.bf16.mxu1 %v8058_v60  ;;  %v8097_v13 = vld [vmem:[#allocation7 + $0x924] ss:$16 sps:$4 sm:$0xff]   ;;  %v527_v25 = vrot.slane %v9370_v23, %v9324_v20  ;;  %v8095_v59 = vld [vmem:[#allocation7 + $0x920] ss:$16 sps:$4 sm:$0xff]   ;;  %v539_v60 = vrot.slane %v9370_v23, %v506_v5 }
 0x1d2   : > { %v9416_v27 = vpack.c.bf16 %v1576_v3, %v1560_v61  ;;  %v9418_v28 = vpack.c.bf16 %v1578_v11, %v1562_v1  ;;  %v547_v61 = vrot.slane %v9370_v23, %v514_v8  ;;  %v1411_v1 = vadd.f32 %v9375_v12, %v519_v56  ;;  %v8098_v3 = vld [vmem:[#allocation7 + $0xb20] ss:$16 sps:$4 sm:$0xff]   ;;  %v8130_v56 = vld [vmem:[#allocation7 + $0xe84] ss:$16 sps:$4 sm:$0xff]  }
 0x1d3   : > { %v1458_v11 = vadd.f32 %v9392_v47, %v527_v25  ;;  %v8101_v5 = vld [vmem:[#allocation7 + $0x900] ss:$16 sps:$4 sm:$0xff]   ;;  %v1499_v8 = vadd.f32 %v9412_v57, %v539_v60  ;;  %v1503_v23 = vadd.f32 %v1502_v62, %v539_v60 }
 0x1d4   : > { %4878 = vmatpush1.bf16.msra.mxu0 %v8053_v34  ;;  %4921 = vmatpush1.bf16.msra.mxu1 %v8056_v4  ;;  %v8100_v34 = vld [vmem:[#allocation7 + $0xb24] ss:$16 sps:$4 sm:$0xff]   ;;  %v1546_v12 = vadd.f32 %v1545_v63, %v547_v61  ;;  %v1556_v41 = vmax.f32 %v1411_v1, 0.0  ;;  %v8110_v57 = vld [vmem:[#allocation7 + $0xee0] ss:$16 sps:$4 sm:$0xff]  }
 0x1d5   : > { %4879 = vmatprep.subr.bf16.mxu0 %v8061_v10  ;;  %4922 = vmatprep.subr.bf16.mxu1 %v8064_v24  ;;  %v8103_v4 = vld [vmem:[#allocation7 + $0x904] ss:$16 sps:$4 sm:$0xff]   ;;  %v1454_v10 = vadd.f32 %v9382_v33, %v527_v25  ;;  %v1542_v24 = vadd.f32 %v9414_v9, %v547_v61  ;;  %v1561_v47 = vmax.f32 %v1499_v8, 0.0  ;;  %v8134_v60 = vld [vmem:[#allocation7 + $0xe60] ss:$16 sps:$4 sm:$0xff]  }
 0x1d6   : > { %v8118_v9 = vld [vmem:[#allocation7 + $0xec4] ss:$16 sps:$4 sm:$0xff]   ;;  %v8137_v62 = vld [vmem:[#allocation7 + $0xc40] ss:$16 sps:$4 sm:$0xff]  }
 0x1d7   : > { %v1558_v33 = vmax.f32 %v1454_v10, 0.0  ;;  %v8133_v25 = vld [vmem:[#allocation7 + $0xc64] ss:$16 sps:$4 sm:$0xff]   ;;  %v8140_v1 = vld [vmem:[#allocation7 + $0xe40] ss:$16 sps:$4 sm:$0xff]  }
 0x1d8   : > { %4880 = vmatpush2.bf16.msra.mxu0 %v8059_v22  ;;  %4923 = vmatpush2.bf16.msra.mxu1 %v8062_v29  ;;  %v8104_v22 = vld [vmem:[#allocation7 + $0xb00] ss:$16 sps:$4 sm:$0xff]   ;;  %v1572_v29 = vmax.f32 %v1415_v2, 0.0  ;;  %v8139_v61 = vld [vmem:[#allocation7 + $0xc44] ss:$16 sps:$4 sm:$0xff]  }
 0x1d9   : > { %4881 = vmatprep.subr.bf16.mxu0 %v8067_v31  ;;  %4924 = vmatprep.subr.bf16.mxu1 %v8070_v35  ;;  %v8109_v31 = vld [vmem:[#allocation7 + $0xce4] ss:$16 sps:$4 sm:$0xff]   ;;  %v1574_v35 = vmax.f32 %v1458_v11, 0.0  ;;  %v8146_v10 = vld [vmem:[#allocation7 + $0xe20] ss:$16 sps:$4 sm:$0xff]  }
 0x1da   : > { %v8142_v63 = vld [vmem:[#allocation7 + $0xe44] ss:$16 sps:$4 sm:$0xff]   ;;  %v8152_v8 = vld [vmem:[#allocation7 + $0xe00] ss:$16 sps:$4 sm:$0xff]  }
 0x1db   : > { %v8145_v2 = vld [vmem:[#allocation7 + $0xc24] ss:$16 sps:$4 sm:$0xff]  }
 0x1dc   : > { %4882 = vmatpush2.bf16.msra.mxu0 %v8065_v32  ;;  %4925 = vmatpush2.bf16.msra.mxu1 %v8068_v36  ;;  %v8112_v32 = vld [vmem:[#allocation7 + $0xee4] ss:$16 sps:$4 sm:$0xff]   ;;  %v8107_v36 = vld [vmem:[#allocation7 + $0xce0] ss:$16 sps:$4 sm:$0xff]  }
 0x1dd   : > { %4883 = vmatprep.subr.bf16.mxu0 %v8073_v37  ;;  %4926 = vmatprep.subr.bf16.mxu1 %v8076_v39  ;;  %v1577_v37 = vmax.f32 %v1503_v23, 0.0  ;;  %v1579_v39 = vmax.f32 %v1546_v12, 0.0  ;;  %v8151_v11 = vld [vmem:[#allocation7 + $0xc04] ss:$16 sps:$4 sm:$0xff]   ;;  %v8158_v12 = vld [vmem:[#allocation7 + $0xfe0] ss:$16 sps:$4 sm:$0xff]  }
 0x1de   : > { %v8157_v23 = vld [vmem:[#allocation7 + $0xde4] ss:$16 sps:$4 sm:$0xff]  }
 0x1e0   : > { %4884 = vmatpush2.bf16.msra.mxu0 %v8071_v38  ;;  %4927 = vmatpush2.bf16.msra.mxu1 %v8074_v17  ;;  %v1563_v38 = vmax.f32 %v1542_v24, 0.0  ;;  %v8115_v17 = vld [vmem:[#allocation7 + $0xcc4] ss:$16 sps:$4 sm:$0xff]   ;;  %v8155_v24 = vld [vmem:[#allocation7 + $0xde0] ss:$16 sps:$4 sm:$0xff]  }
 0x1e1   : > { %4885 = vmatprep.subr.bf16.mxu0 %v8079_v40  ;;  %4928 = vmatprep.subr.bf16.mxu1 %v8082_v43  ;;  %v9436_v40 = vpack.c.bf16 %v1572_v29, %v1556_v41  ;;  %v9440_v43 = vpack.c.bf16 %v1577_v37, %v1561_v47  ;;  %v8163_v41 = vld [vmem:[#allocation7 + $0xdc4] ss:$16 sps:$4 sm:$0xff]   ;;  %v8167_v47 = vld [vmem:[#allocation7 + $0xda0] ss:$16 sps:$4 sm:$0xff]  }
 0x1e2   : > { %v8166_v29 = vld [vmem:[#allocation7 + $0xfc4] ss:$16 sps:$4 sm:$0xff]  }
 0x1e3   : > { %v8175_v37 = vld [vmem:[#allocation7 + $0xd84] ss:$16 sps:$4 sm:$0xff]  }
 0x1e4   : > { %4886 = vmatpush2.bf16.msra.mxu0 %v8077_v42  ;;  %4929 = vmatpush2.bf16.msra.mxu1 %v8080_v44  ;;  %v9438_v42 = vpack.c.bf16 %v1574_v35, %v1558_v33  ;;  %v9443_v44 = vpack.c.bf16 %v1579_v39, %v1563_v38  ;;  %v8169_v33 = vld [vmem:[#allocation7 + $0xda4] ss:$16 sps:$4 sm:$0xff]   ;;  %v8176_v39 = vld [vmem:[#allocation7 + $0xf80] ss:$16 sps:$4 sm:$0xff]  }
 0x1e5   : > { %4887 = vmatprep.subr.bf16.mxu0 %v8085_v45  ;;  %4930 = vmatprep.subr.bf16.mxu1 %v8088_v48  ;;  %v8113_v45 = vld [vmem:[#allocation7 + $0xcc0] ss:$16 sps:$4 sm:$0xff]   ;;  %v8121_v48 = vld [vmem:[#allocation7 + $0xca4] ss:$16 sps:$4 sm:$0xff]  }
 0x1e6   : > { %v8172_v35 = vld [vmem:[#allocation7 + $0xfa4] ss:$16 sps:$4 sm:$0xff]  }
 0x1e7   : > { %v8178_v38 = vld [vmem:[#allocation7 + $0xf84] ss:$16 sps:$4 sm:$0xff]  }
 0x1e8   : > { %4888 = vmatpush2.bf16.msra.mxu0 %v8083_v46  ;;  %4931 = vmatpush2.bf16.msra.mxu1 %v8086_v21  ;;  %v8116_v46 = vld [vmem:[#allocation7 + $0xec0] ss:$16 sps:$4 sm:$0xff]   ;;  %v8124_v21 = vld [vmem:[#allocation7 + $0xea4] ss:$16 sps:$4 sm:$0xff]  }
 0x1e9   : > { %4889 = vmatprep.subr.bf16.mxu0 %v8091_v54  ;;  %4932 = vmatprep.subr.bf16.mxu1 %v8094_v55  ;;  %v8119_v54 = vld [vmem:[#allocation7 + $0xca0] ss:$16 sps:$4 sm:$0xff]   ;;  %v8127_v55 = vld [vmem:[#allocation7 + $0xc84] ss:$16 sps:$4 sm:$0xff]  }
 0x1ec   : > { %4890 = vmatpush2.bf16.msra.mxu0 %v8089_v30  ;;  %4933 = vmatpush2.bf16.msra.mxu1 %v8092_v58  ;;  %v8122_v30 = vld [vmem:[#allocation7 + $0xea0] ss:$16 sps:$4 sm:$0xff]  }
 0x1ed   : > { %4891 = vmatprep.subr.bf16.mxu0 %v8097_v13  ;;  %4934 = vmatprep.subr.bf16.mxu1 %v8100_v34  ;;  %v8125_v58 = vld [vmem:[#allocation7 + $0xc80] ss:$16 sps:$4 sm:$0xff]   ;;  %v8136_v34 = vld [vmem:[#allocation7 + $0xe64] ss:$16 sps:$4 sm:$0xff]  }
 0x1ee   : > { %v8128_v13 = vld [vmem:[#allocation7 + $0xe80] ss:$16 sps:$4 sm:$0xff]  }
 0x1f0   : > { %4892 = vmatpush2.bf16.msra.mxu0 %v8095_v59  ;;  %4935 = vmatpush2.bf16.msra.mxu1 %v8098_v3  ;;  %v8131_v59 = vld [vmem:[#allocation7 + $0xc60] ss:$16 sps:$4 sm:$0xff]  }
 0x1f1   : > { %4893 = vmatprep.subr.bf16.mxu0 %v8103_v4  ;;  %4936 = vmatprep.subr.bf16.mxu1 %v8106_v15  ;;  %v8143_v3 = vld [vmem:[#allocation7 + $0xc20] ss:$16 sps:$4 sm:$0xff]   ;;  %v8148_v4 = vld [vmem:[#allocation7 + $0xe24] ss:$16 sps:$4 sm:$0xff]  }
 0x1f2   : > { %v8154_v15 = vld [vmem:[#allocation7 + $0xe04] ss:$16 sps:$4 sm:$0xff]  }
 0x1f4   : > { %4894 = vmatpush2.bf16.msra.mxu0 %v8101_v5  ;;  %4937 = vmatpush2.bf16.msra.mxu1 %v8104_v22  ;;  %v8149_v5 = vld [vmem:[#allocation7 + $0xc00] ss:$16 sps:$4 sm:$0xff]   ;;  %v8160_v22 = vld [vmem:[#allocation7 + $0xfe4] ss:$16 sps:$4 sm:$0xff]  }
 0x1f5   : > { %4949 = vmatprep.subr.bf16.mxu0 %v8109_v31  ;;  %4992 = vmatprep.subr.bf16.mxu1 %v8112_v32  ;;  %v8161_v31 = vld [vmem:[#allocation7 + $0xdc0] ss:$16 sps:$4 sm:$0xff]  }
 0x1f6   : > { %v8164_v32 = vld [vmem:[#allocation7 + $0xfc0] ss:$16 sps:$4 sm:$0xff]  }
 0x1f7   : > { %4896 = vmatmul.mubr.bf16.vlgmr.msra.gmra.mxu0 %v9436_v40  ;;  %4939 = vmatmul.mubr.bf16.vlgmr.msra.gmra.mxu1 %v9438_v42 }
 0x1f8   : > { %4950 = vmatpush1.bf16.msra.mxu0 %v8107_v36  ;;  %4993 = vmatpush1.bf16.msra.mxu1 %v8110_v57  ;;  %v8170_v36 = vld [vmem:[#allocation7 + $0xfa0] ss:$16 sps:$4 sm:$0xff]  }
 0x1f9   : > { %4951 = vmatprep.subr.bf16.mxu0 %v8115_v17  ;;  %4994 = vmatprep.subr.bf16.mxu1 %v8118_v9  ;;  %v8173_v57 = vld [vmem:[#allocation7 + $0xd80] ss:$16 sps:$4 sm:$0xff]   ;;  %v8181_v17 = vld [vmem:[#allocation7 + $0xd64] ss:$16 sps:$4 sm:$0xff]  }
 0x1fa   : > { %4981 = vmatprep.mubr.bf16.mxu0 %v9440_v43  ;;  %5024 = vmatprep.mubr.bf16.mxu1 %v9443_v44  ;;  %v8184_v9 = vld [vmem:[#allocation7 + $0xf64] ss:$16 sps:$4 sm:$0xff]  }
 0x1fc   : > { %4952 = vmatpush1.bf16.msra.mxu0 %v8113_v45  ;;  %4995 = vmatpush1.bf16.msra.mxu1 %v8116_v46  ;;  %v8179_v45 = vld [vmem:[#allocation7 + $0xd60] ss:$16 sps:$4 sm:$0xff]  }
 0x1fd   : > { %4953 = vmatprep.subr.bf16.mxu0 %v8121_v48  ;;  %4996 = vmatprep.subr.bf16.mxu1 %v8124_v21  ;;  %v8182_v46 = vld [vmem:[#allocation7 + $0xf60] ss:$16 sps:$4 sm:$0xff]   ;;  %v8187_v48 = vld [vmem:[#allocation7 + $0xd44] ss:$16 sps:$4 sm:$0xff]  }
 0x1fe   : > { %v8190_v21 = vld [vmem:[#allocation7 + $0xf44] ss:$16 sps:$4 sm:$0xff]  }
 0x200   : > { %4954 = vmatpush1.bf16.msra.mxu0 %v8119_v54  ;;  %4997 = vmatpush1.bf16.msra.mxu1 %v8122_v30  ;;  %v8185_v54 = vld [vmem:[#allocation7 + $0xd40] ss:$16 sps:$4 sm:$0xff]  }
 0x201   : > { %4955 = vmatprep.subr.bf16.mxu0 %v8127_v55  ;;  %4998 = vmatprep.subr.bf16.mxu1 %v8130_v56  ;;  %v8188_v30 = vld [vmem:[#allocation7 + $0xf40] ss:$16 sps:$4 sm:$0xff]   ;;  %v8193_v55 = vld [vmem:[#allocation7 + $0xd24] ss:$16 sps:$4 sm:$0xff]  }
 0x202   : > { %v8196_v56 = vld [vmem:[#allocation7 + $0xf24] ss:$16 sps:$4 sm:$0xff]  }
 0x204   : > { %4956 = vmatpush1.bf16.msra.mxu0 %v8125_v58  ;;  %4999 = vmatpush1.bf16.msra.mxu1 %v8128_v13  ;;  %v8191_v58 = vld [vmem:[#allocation7 + $0xd20] ss:$16 sps:$4 sm:$0xff]  }
 0x205   : > { %4957 = vmatprep.subr.bf16.mxu0 %v8133_v25  ;;  %5000 = vmatprep.subr.bf16.mxu1 %v8136_v34  ;;  %v8194_v13 = vld [vmem:[#allocation7 + $0xf20] ss:$16 sps:$4 sm:$0xff]   ;;  %v8199_v25 = vld [vmem:[#allocation7 + $0xd04] ss:$16 sps:$4 sm:$0xff]  }
 0x206   : > { %v8197_v34 = vld [vmem:[#allocation7 + $0xd00] ss:$16 sps:$4 sm:$0xff]  }
 0x208   : > { %4958 = vmatpush1.bf16.msra.mxu0 %v8131_v59  ;;  %5001 = vmatpush1.bf16.msra.mxu1 %v8134_v60  ;;  %v8202_v59 = vld [vmem:[#allocation7 + $0xf04] ss:$16 sps:$4 sm:$0xff]   ;;  %v8200_v60 = vld [vmem:[#allocation7 + $0xf00] ss:$16 sps:$4 sm:$0xff]  }
 0x209   : > { %4959 = vmatprep.subr.bf16.mxu0 %v8139_v61  ;;  %5002 = vmatprep.subr.bf16.mxu1 %v8142_v63  ;;  %v8205_v61 = vld [vmem:[#allocation7 + $0xec] ss:$16 sps:$4 sm:$0xff]  }
 0x20a   : > { %v8208_v63 = vld [vmem:[#allocation7 + $0x2ec] ss:$16 sps:$4 sm:$0xff]  }
 0x20c   : > { %4960 = vmatpush1.bf16.msra.mxu0 %v8137_v62  ;;  %5003 = vmatpush1.bf16.msra.mxu1 %v8140_v1  ;;  %v2109_v62 = vld [vmem:[#allocation11 + $0x1] ss:$8 sm:$0xf] }
 0x20d   : > { %4961 = vmatprep.subr.bf16.mxu0 %v8145_v2  ;;  %5004 = vmatprep.subr.bf16.mxu1 %v8148_v4  ;;  %v8203_v1 = vld [vmem:[#allocation7 + $0xe8] ss:$16 sps:$4 sm:$0xff]   ;;  %v2114_v2 = vrot.slane %v2109_v62, %v9318_v18  ;;  %v8211_v4 = vld [vmem:[#allocation7 + $0xcc] ss:$16 sps:$4 sm:$0xff]  }
 0x20e   : > { %v8254_v62 = vld [vmem:[#allocation7 + $0x3e8] ss:$16 sps:$4 sm:$0xff]  }
 0x210   : > { %4962 = vmatpush1.bf16.msra.mxu0 %v8143_v3  ;;  %5005 = vmatpush1.bf16.msra.mxu1 %v8146_v10  ;;  %v8206_v3 = vld [vmem:[#allocation7 + $0x2e8] ss:$16 sps:$4 sm:$0xff]  }
 0x211   : > { %4963 = vmatprep.subr.bf16.mxu0 %v8151_v11  ;;  %5006 = vmatprep.subr.bf16.mxu1 %v8154_v15  ;;  %v8214_v11 = vld [vmem:[#allocation7 + $0x2cc] ss:$16 sps:$4 sm:$0xff]  }
 0x214   : > { %4964 = vmatpush1.bf16.msra.mxu0 %v8149_v5  ;;  %5007 = vmatpush1.bf16.msra.mxu1 %v8152_v8  ;;  %v8209_v8 = vld [vmem:[#allocation7 + $0xc8] ss:$16 sps:$4 sm:$0xff]  }
 0x215   : > { %4965 = vmatprep.subr.bf16.mxu0 %v8157_v23  ;;  %5008 = vmatprep.subr.bf16.mxu1 %v8160_v22  ;;  %v8212_v22 = vld [vmem:[#allocation7 + $0x2c8] ss:$16 sps:$4 sm:$0xff]  }
 0x218   : > { %4966 = vmatpush2.bf16.msra.mxu0 %v8155_v24  ;;  %5009 = vmatpush2.bf16.msra.mxu1 %v8158_v12  ;;  %v8217_v24 = vld [vmem:[#allocation7 + $0xac] ss:$16 sps:$4 sm:$0xff]  }
 0x219   : > { %4967 = vmatprep.subr.bf16.mxu0 %v8163_v41  ;;  %5010 = vmatprep.subr.bf16.mxu1 %v8166_v29  ;;  %v8220_v29 = vld [vmem:[#allocation7 + $0x2ac] ss:$16 sps:$4 sm:$0xff]  }
 0x21c   : > { %4968 = vmatpush2.bf16.msra.mxu0 %v8161_v31  ;;  %5011 = vmatpush2.bf16.msra.mxu1 %v8164_v32 }
 0x21d   : > { %4969 = vmatprep.subr.bf16.mxu0 %v8169_v33  ;;  %5012 = vmatprep.subr.bf16.mxu1 %v8172_v35  ;;  %v8215_v33 = vld [vmem:[#allocation7 + $0xa8] ss:$16 sps:$4 sm:$0xff]  }
 0x220   : > { %4970 = vmatpush2.bf16.msra.mxu0 %v8167_v47  ;;  %5013 = vmatpush2.bf16.msra.mxu1 %v8170_v36  ;;  %v8223_v47 = vld [vmem:[#allocation7 + $0x8c] ss:$16 sps:$4 sm:$0xff]  }
 0x221   : > { %4971 = vmatprep.subr.bf16.mxu0 %v8175_v37  ;;  %5014 = vmatprep.subr.bf16.mxu1 %v8178_v38  ;;  %v8226_v37 = vld [vmem:[#allocation7 + $0x28c] ss:$16 sps:$4 sm:$0xff]   ;;  %v8224_v38 = vld [vmem:[#allocation7 + $0x288] ss:$16 sps:$4 sm:$0xff]  }
 0x224   : > { %4972 = vmatpush2.bf16.msra.mxu0 %v8173_v57  ;;  %5015 = vmatpush2.bf16.msra.mxu1 %v8176_v39  ;;  %v8229_v57 = vld [vmem:[#allocation7 + $0x6c] ss:$16 sps:$4 sm:$0xff]  }
 0x225   : > { %4973 = vmatprep.subr.bf16.mxu0 %v8181_v17  ;;  %5016 = vmatprep.subr.bf16.mxu1 %v8184_v9  ;;  %v8232_v39 = vld [vmem:[#allocation7 + $0x26c] ss:$16 sps:$4 sm:$0xff]   ;;  %v8227_v17 = vld [vmem:[#allocation7 + $0x68] ss:$16 sps:$4 sm:$0xff]  }
 0x226   : > { %v8230_v9 = vld [vmem:[#allocation7 + $0x268] ss:$16 sps:$4 sm:$0xff]  }
 0x228   : > { %4974 = vmatpush2.bf16.msra.mxu0 %v8179_v45  ;;  %5017 = vmatpush2.bf16.msra.mxu1 %v8182_v46  ;;  %v8235_v45 = vld [vmem:[#allocation7 + $0x4c] ss:$16 sps:$4 sm:$0xff]  }
 0x229   : > { %4975 = vmatprep.subr.bf16.mxu0 %v8187_v48  ;;  %5018 = vmatprep.subr.bf16.mxu1 %v8190_v21  ;;  %v8238_v46 = vld [vmem:[#allocation7 + $0x24c] ss:$16 sps:$4 sm:$0xff]   ;;  %v8233_v48 = vld [vmem:[#allocation7 + $0x48] ss:$16 sps:$4 sm:$0xff]  }
 0x22a   : > { %v8236_v21 = vld [vmem:[#allocation7 + $0x248] ss:$16 sps:$4 sm:$0xff]  }
 0x22c   : > { %4976 = vmatpush2.bf16.msra.mxu0 %v8185_v54  ;;  %5019 = vmatpush2.bf16.msra.mxu1 %v8188_v30  ;;  %v8241_v54 = vld [vmem:[#allocation7 + $0x2c] ss:$16 sps:$4 sm:$0xff]  }
 0x22d   : > { %4977 = vmatprep.subr.bf16.mxu0 %v8193_v55  ;;  %5020 = vmatprep.subr.bf16.mxu1 %v8196_v56  ;;  %v8244_v30 = vld [vmem:[#allocation7 + $0x22c] ss:$16 sps:$4 sm:$0xff]   ;;  %v8239_v55 = vld [vmem:[#allocation7 + $0x28] ss:$16 sps:$4 sm:$0xff]  }
 0x22e   : > { %v8242_v56 = vld [vmem:[#allocation7 + $0x228] ss:$16 sps:$4 sm:$0xff]  }
 0x230   : > { %4978 = vmatpush2.bf16.msra.mxu0 %v8191_v58  ;;  %5021 = vmatpush2.bf16.msra.mxu1 %v8194_v13  ;;  %v8247_v58 = vld [vmem:[#allocation7 + $0xc] ss:$16 sps:$4 sm:$0xff]  }
 0x231   : > { %4979 = vmatprep.subr.bf16.mxu0 %v8199_v25  ;;  %5022 = vmatprep.subr.bf16.mxu1 %v8202_v59  ;;  %v8250_v13 = vld [vmem:[#allocation7 + $0x20c] ss:$16 sps:$4 sm:$0xff]   ;;  %v8245_v25 = vld [vmem:[#allocation7 + $0x8] ss:$16 sps:$4 sm:$0xff]  }
 0x232   : > { %v8248_v59 = vld [vmem:[#allocation7 + $0x208] ss:$16 sps:$4 sm:$0xff]  }
 0x234   : > { %4980 = vmatpush2.bf16.msra.mxu0 %v8197_v34  ;;  %5023 = vmatpush2.bf16.msra.mxu1 %v8200_v60  ;;  %v8253_v34 = vld [vmem:[#allocation7 + $0x1ec] ss:$16 sps:$4 sm:$0xff]  }
 0x235   : > { %5035 = vmatprep.subr.bf16.mxu0 %v8205_v61  ;;  %5078 = vmatprep.subr.bf16.mxu1 %v8208_v63  ;;  %v8256_v60 = vld [vmem:[#allocation7 + $0x3ec] ss:$16 sps:$4 sm:$0xff]   ;;  %v8251_v61 = vld [vmem:[#allocation7 + $0x1e8] ss:$16 sps:$4 sm:$0xff]  }
 0x236   : > { %v8259_v63 = vld [vmem:[#allocation7 + $0x1cc] ss:$16 sps:$4 sm:$0xff]  }
 0x237   : > { %4982 = vmatmul.mubr.bf16.vlgmr.msra.gmra.mxu0 %v9416_v27  ;;  %v4725_v10 = vpop.f32.mrf.mxu0  ;;  %5025 = vmatmul.mubr.bf16.vlgmr.msra.gmra.mxu1 %v9418_v28  ;;  %v4768_v15 = vpop.f32.mrf.mxu1 }
 0x238   : > { %v4726_v5 = vadd.f32 %v4725_v10, %v2114_v2  ;;  %5036 = vmatpush1.bf16.msra.mxu0 %v8203_v1  ;;  %5067 = vmatprep.mubr.bf16.mxu0 %v9334_v50  ;;  %v8218_v50 = vld [vmem:[#allocation7 + $0x2a8] ss:$16 sps:$4 sm:$0xff]   ;;  %v8262_v1 = vld [vmem:[#allocation7 + $0x3cc] ss:$16 sps:$4 sm:$0xff]  }
 0x239   : > { %5079 = vmatpush1.bf16.msra.mxu1 %v8206_v3  ;;  %v9452_v23 = vpop.f32.mrf.mxu0  ;;  %5110 = vmatprep.mubr.bf16.mxu1 %v9338_v52  ;;  %v9457_v41 = vpop.f32.mrf.mxu1  ;;  %v8221_v52 = vld [vmem:[#allocation7 + $0x88] ss:$16 sps:$4 sm:$0xff]   ;;  %v8268_v10 = vld [vmem:[#allocation7 + $0x3ac] ss:$16 sps:$4 sm:$0xff]  }
 0x23a   : > { %v9454_v12 = vadd.f32 %v4768_v15, %v4726_v5  ;;  %5037 = vmatprep.subr.bf16.mxu0 %v8211_v4  ;;  %5080 = vmatprep.subr.bf16.mxu1 %v8214_v11  ;;  %v8260_v3 = vld [vmem:[#allocation7 + $0x3c8] ss:$16 sps:$4 sm:$0xff]   ;;  %v8265_v4 = vld [vmem:[#allocation7 + $0x1ac] ss:$16 sps:$4 sm:$0xff]  }
 0x23b   : > { %v4729_v31 = vpop.f32.mrf.mxu0  ;;  %v4772_v35 = vpop.f32.mrf.mxu1  ;;  %v8263_v11 = vld [vmem:[#allocation7 + $0x1a8] ss:$16 sps:$4 sm:$0xff]   ;;  %v8271_v15 = vld [vmem:[#allocation7 + $0x18c] ss:$16 sps:$4 sm:$0xff]  }
 0x23c   : > { %v4730_v32 = vadd.f32 %v4729_v31, %v2114_v2  ;;  %5038 = vmatpush1.bf16.msra.mxu0 %v8209_v8  ;;  %v8257_v2 = vld [vmem:[#allocation7 + $0x1c8] ss:$16 sps:$4 sm:$0xff]   ;;  %v8274_v8 = vld [vmem:[#allocation7 + $0x38c] ss:$16 sps:$4 sm:$0xff]  }
 0x23d   : > { %5081 = vmatpush1.bf16.msra.mxu1 %v8212_v22  ;;  %5039 = vmatprep.subr.bf16.mxu0 %v8217_v24  ;;  %v8266_v5 = vld [vmem:[#allocation7 + $0x3a8] ss:$16 sps:$4 sm:$0xff]   ;;  %v8280_v31 = vld [vmem:[#allocation7 + $0x36c] ss:$16 sps:$4 sm:$0xff]  }
 0x23e   : > { %v9459_v36 = vadd.f32 %v4772_v35, %v4730_v32  ;;  %5082 = vmatprep.subr.bf16.mxu1 %v8220_v29  ;;  %v8269_v22 = vld [vmem:[#allocation7 + $0x188] ss:$16 sps:$4 sm:$0xff]   ;;  %v8277_v29 = vld [vmem:[#allocation7 + $0x16c] ss:$16 sps:$4 sm:$0xff]  }
 0x23f   : > { %v8272_v24 = vld [vmem:[#allocation7 + $0x388] ss:$16 sps:$4 sm:$0xff]   ;;  %v8283_v35 = vld [vmem:[#allocation7 + $0x14c] ss:$16 sps:$4 sm:$0xff]  }
 0x240   : > { %5040 = vmatpush1.bf16.msra.mxu0 %v8215_v33  ;;  %v8275_v32 = vld [vmem:[#allocation7 + $0x168] ss:$16 sps:$4 sm:$0xff]  }
 0x241   : > { %5083 = vmatpush1.bf16.msra.mxu1 %v8218_v50  ;;  %5041 = vmatprep.subr.bf16.mxu0 %v8223_v47  ;;  %v8278_v33 = vld [vmem:[#allocation7 + $0x368] ss:$16 sps:$4 sm:$0xff]   ;;  %v8286_v50 = vld [vmem:[#allocation7 + $0x34c] ss:$16 sps:$4 sm:$0xff]  }
 0x242   : > { %5084 = vmatprep.subr.bf16.mxu1 %v8226_v37  ;;  %v8281_v47 = vld [vmem:[#allocation7 + $0x148] ss:$16 sps:$4 sm:$0xff]  }
 0x243   : > { %v8284_v37 = vld [vmem:[#allocation7 + $0x348] ss:$16 sps:$4 sm:$0xff]  }
 0x244   : > { %5042 = vmatpush1.bf16.msra.mxu0 %v8221_v52  ;;  %v8289_v52 = vld [vmem:[#allocation7 + $0x12c] ss:$16 sps:$4 sm:$0xff]  }
 0x245   : > { %5085 = vmatpush1.bf16.msra.mxu1 %v8224_v38  ;;  %5043 = vmatprep.subr.bf16.mxu0 %v8229_v57  ;;  %v8292_v38 = vld [vmem:[#allocation7 + $0x32c] ss:$16 sps:$4 sm:$0xff]   ;;  %v8287_v57 = vld [vmem:[#allocation7 + $0x128] ss:$16 sps:$4 sm:$0xff]  }
 0x246   : > { %5086 = vmatprep.subr.bf16.mxu1 %v8232_v39  ;;  %v8290_v39 = vld [vmem:[#allocation7 + $0x328] ss:$16 sps:$4 sm:$0xff]  }
 0x248   : > { %5044 = vmatpush1.bf16.msra.mxu0 %v8227_v17  ;;  %v8295_v17 = vld [vmem:[#allocation7 + $0x10c] ss:$16 sps:$4 sm:$0xff]  }
 0x249   : > { %5087 = vmatpush1.bf16.msra.mxu1 %v8230_v9  ;;  %5045 = vmatprep.subr.bf16.mxu0 %v8235_v45  ;;  %v8298_v9 = vld [vmem:[#allocation7 + $0x30c] ss:$16 sps:$4 sm:$0xff]   ;;  %v8293_v45 = vld [vmem:[#allocation7 + $0x108] ss:$16 sps:$4 sm:$0xff]  }
 0x24a   : > { %5088 = vmatprep.subr.bf16.mxu1 %v8238_v46  ;;  %v8296_v46 = vld [vmem:[#allocation7 + $0x308] ss:$16 sps:$4 sm:$0xff]  }
 0x24c   : > { %5046 = vmatpush1.bf16.msra.mxu0 %v8233_v48  ;;  %v8301_v48 = vld [vmem:[#allocation7 + $0x4ec] ss:$16 sps:$4 sm:$0xff]  }
 0x24d   : > { %5089 = vmatpush1.bf16.msra.mxu1 %v8236_v21  ;;  %5047 = vmatprep.subr.bf16.mxu0 %v8241_v54  ;;  %v8304_v21 = vld [vmem:[#allocation7 + $0x6ec] ss:$16 sps:$4 sm:$0xff]   ;;  %v8299_v54 = vld [vmem:[#allocation7 + $0x4e8] ss:$16 sps:$4 sm:$0xff]  }
 0x24e   : > { %5090 = vmatprep.subr.bf16.mxu1 %v8244_v30  ;;  %v9461_v30 = vpop.f32.mrf.mxu0 }
 0x250   : > { %5048 = vmatpush1.bf16.msra.mxu0 %v8239_v55  ;;  %v8302_v55 = vld [vmem:[#allocation7 + $0x6e8] ss:$16 sps:$4 sm:$0xff]  }
 0x251   : > { %5091 = vmatpush1.bf16.msra.mxu1 %v8242_v56  ;;  %5049 = vmatprep.subr.bf16.mxu0 %v8247_v58  ;;  %v9463_v56 = vpop.f32.mrf.mxu1  ;;  %v8307_v58 = vld [vmem:[#allocation7 + $0x4cc] ss:$16 sps:$4 sm:$0xff]  }
 0x252   : > { %5092 = vmatprep.subr.bf16.mxu1 %v8250_v13 }
 0x254   : > { %5050 = vmatpush1.bf16.msra.mxu0 %v8245_v25  ;;  %v8310_v25 = vld [vmem:[#allocation7 + $0x6cc] ss:$16 sps:$4 sm:$0xff]  }
 0x255   : > { %5093 = vmatpush1.bf16.msra.mxu1 %v8248_v59  ;;  %5051 = vmatprep.subr.bf16.mxu0 %v8253_v34 }
 0x256   : > { %5094 = vmatprep.subr.bf16.mxu1 %v8256_v60  ;;  %v8305_v60 = vld [vmem:[#allocation7 + $0x4c8] ss:$16 sps:$4 sm:$0xff]  }
 0x258   : > { %5052 = vmatpush2.bf16.msra.mxu0 %v8251_v61 }
 0x259   : > { %5095 = vmatpush2.bf16.msra.mxu1 %v8254_v62  ;;  %5053 = vmatprep.subr.bf16.mxu0 %v8259_v63  ;;  %v8308_v62 = vld [vmem:[#allocation7 + $0x6c8] ss:$16 sps:$4 sm:$0xff]   ;;  %v8313_v63 = vld [vmem:[#allocation7 + $0x4ac] ss:$16 sps:$4 sm:$0xff]  }
 0x25a   : > { %5096 = vmatprep.subr.bf16.mxu1 %v8262_v1 }
 0x25c   : > { %5054 = vmatpush2.bf16.msra.mxu0 %v8257_v2 }
 0x25d   : > { %5097 = vmatpush2.bf16.msra.mxu1 %v8260_v3  ;;  %5055 = vmatprep.subr.bf16.mxu0 %v8265_v4  ;;  %v8311_v3 = vld [vmem:[#allocation7 + $0x4a8] ss:$16 sps:$4 sm:$0xff]  }
 0x25e   : > { %5098 = vmatprep.subr.bf16.mxu1 %v8268_v10  ;;  %v8314_v4 = vld [vmem:[#allocation7 + $0x6a8] ss:$16 sps:$4 sm:$0xff]   ;;  %v8319_v10 = vld [vmem:[#allocation7 + $0x48c] ss:$16 sps:$4 sm:$0xff]  }
 0x260   : > { %5056 = vmatpush2.bf16.msra.mxu0 %v8263_v11 }
 0x261   : > { %5099 = vmatpush2.bf16.msra.mxu1 %v8266_v5  ;;  %5057 = vmatprep.subr.bf16.mxu0 %v8271_v15  ;;  %v8322_v5 = vld [vmem:[#allocation7 + $0x68c] ss:$16 sps:$4 sm:$0xff]   ;;  %v8320_v15 = vld [vmem:[#allocation7 + $0x688] ss:$16 sps:$4 sm:$0xff]  }
 0x262   : > { %5100 = vmatprep.subr.bf16.mxu1 %v8274_v8  ;;  %v8325_v8 = vld [vmem:[#allocation7 + $0x46c] ss:$16 sps:$4 sm:$0xff]  }
 0x264   : > { %5058 = vmatpush2.bf16.msra.mxu0 %v8269_v22  ;;  %v8328_v22 = vld [vmem:[#allocation7 + $0x66c] ss:$16 sps:$4 sm:$0xff]  }
 0x265   : > { %5101 = vmatpush2.bf16.msra.mxu1 %v8272_v24  ;;  %5059 = vmatprep.subr.bf16.mxu0 %v8277_v29  ;;  %v8326_v24 = vld [vmem:[#allocation7 + $0x668] ss:$16 sps:$4 sm:$0xff]   ;;  %v8331_v29 = vld [vmem:[#allocation7 + $0x44c] ss:$16 sps:$4 sm:$0xff]  }
 0x266   : > { %5102 = vmatprep.subr.bf16.mxu1 %v8280_v31  ;;  %v8334_v31 = vld [vmem:[#allocation7 + $0x64c] ss:$16 sps:$4 sm:$0xff]  }
 0x268   : > { %5060 = vmatpush2.bf16.msra.mxu0 %v8275_v32  ;;  %v8329_v32 = vld [vmem:[#allocation7 + $0x448] ss:$16 sps:$4 sm:$0xff]  }
 0x269   : > { %5103 = vmatpush2.bf16.msra.mxu1 %v8278_v33  ;;  %5061 = vmatprep.subr.bf16.mxu0 %v8283_v35  ;;  %v8332_v33 = vld [vmem:[#allocation7 + $0x648] ss:$16 sps:$4 sm:$0xff]   ;;  %v8337_v35 = vld [vmem:[#allocation7 + $0x42c] ss:$16 sps:$4 sm:$0xff]  }
 0x26a   : > { %5104 = vmatprep.subr.bf16.mxu1 %v8286_v50  ;;  %v8340_v50 = vld [vmem:[#allocation7 + $0x62c] ss:$16 sps:$4 sm:$0xff]  }
 0x26c   : > { %5062 = vmatpush2.bf16.msra.mxu0 %v8281_v47  ;;  %v8335_v47 = vld [vmem:[#allocation7 + $0x428] ss:$16 sps:$4 sm:$0xff]  }
 0x26d   : > { %5105 = vmatpush2.bf16.msra.mxu1 %v8284_v37  ;;  %5063 = vmatprep.subr.bf16.mxu0 %v8289_v52  ;;  %v8338_v37 = vld [vmem:[#allocation7 + $0x628] ss:$16 sps:$4 sm:$0xff]   ;;  %v8343_v52 = vld [vmem:[#allocation7 + $0x40c] ss:$16 sps:$4 sm:$0xff]  }
 0x26e   : > { %5106 = vmatprep.subr.bf16.mxu1 %v8292_v38  ;;  %v8346_v38 = vld [vmem:[#allocation7 + $0x60c] ss:$16 sps:$4 sm:$0xff]  }
 0x270   : > { %5064 = vmatpush2.bf16.msra.mxu0 %v8287_v57  ;;  %v8341_v57 = vld [vmem:[#allocation7 + $0x408] ss:$16 sps:$4 sm:$0xff]  }
 0x271   : > { %5107 = vmatpush2.bf16.msra.mxu1 %v8290_v39  ;;  %5065 = vmatprep.subr.bf16.mxu0 %v8295_v17  ;;  %v8344_v39 = vld [vmem:[#allocation7 + $0x608] ss:$16 sps:$4 sm:$0xff]   ;;  %v8349_v17 = vld [vmem:[#allocation7 + $0x5ec] ss:$16 sps:$4 sm:$0xff]  }
 0x272   : > { %5108 = vmatprep.subr.bf16.mxu1 %v8298_v9  ;;  %v8352_v9 = vld [vmem:[#allocation7 + $0x7ec] ss:$16 sps:$4 sm:$0xff]  }
 0x274   : > { %5066 = vmatpush2.bf16.msra.mxu0 %v8293_v45  ;;  %v8347_v45 = vld [vmem:[#allocation7 + $0x5e8] ss:$16 sps:$4 sm:$0xff]  }
 0x275   : > { %5109 = vmatpush2.bf16.msra.mxu1 %v8296_v46  ;;  %5121 = vmatprep.subr.bf16.mxu0 %v8301_v48  ;;  %v8350_v46 = vld [vmem:[#allocation7 + $0x7e8] ss:$16 sps:$4 sm:$0xff]   ;;  %v8355_v48 = vld [vmem:[#allocation7 + $0x5cc] ss:$16 sps:$4 sm:$0xff]  }
 0x276   : > { %5164 = vmatprep.subr.bf16.mxu1 %v8304_v21  ;;  %v8358_v21 = vld [vmem:[#allocation7 + $0x7cc] ss:$16 sps:$4 sm:$0xff]  }
 0x277   : > { %v4811_v13 = vpop.f32.mrf.mxu0  ;;  %5068 = vmatmul.mubr.bf16.vlgmr.msra.gmra.mxu0 %v9336_v51  ;;  %v4854_v34 = vpop.f32.mrf.mxu1 }
 0x278   : > { %v4812_v59 = vadd.f32 %v4811_v13, %v9454_v12  ;;  %5111 = vmatmul.mubr.bf16.vlgmr.msra.gmra.mxu1 %v9340_v53  ;;  %5122 = vmatpush1.bf16.msra.mxu0 %v8299_v54  ;;  %v8316_v12 = vld [vmem:[#allocation7 + $0x6ac] ss:$16 sps:$4 sm:$0xff]   ;;  %v8353_v54 = vld [vmem:[#allocation7 + $0x5c8] ss:$16 sps:$4 sm:$0xff]  }
 0x279   : > { %5153 = vmatprep.mubr.bf16.mxu0 %v9362_v0  ;;  %5165 = vmatpush1.bf16.msra.mxu1 %v8302_v55  ;;  %v9469_v61 = vpop.f32.mrf.mxu0  ;;  %v9474_v51 = vpop.f32.mrf.mxu1  ;;  %v8356_v55 = vld [vmem:[#allocation7 + $0x7c8] ss:$16 sps:$4 sm:$0xff]   ;;  %v8364_v13 = vld [vmem:[#allocation7 + $0x7ac] ss:$16 sps:$4 sm:$0xff]  }
 0x27a   : > { %v9471_v1 = vadd.f32 %v4854_v34, %v4812_v59  ;;  %5196 = vmatprep.mubr.bf16.mxu1 %v9364_v49  ;;  %5123 = vmatprep.subr.bf16.mxu0 %v8307_v58  ;;  %v8317_v49 = vld [vmem:[#allocation7 + $0x488] ss:$16 sps:$4 sm:$0xff]   ;;  %v8361_v58 = vld [vmem:[#allocation7 + $0x5ac] ss:$16 sps:$4 sm:$0xff]  }
 0x27b   : > { %v4815_v2 = vpop.f32.mrf.mxu0  ;;  %5166 = vmatprep.subr.bf16.mxu1 %v8310_v25  ;;  %v4858_v0 = vpop.f32.mrf.mxu1  ;;  %v8359_v25 = vld [vmem:[#allocation7 + $0x5a8] ss:$16 sps:$4 sm:$0xff]   ;;  %v8367_v34 = vld [vmem:[#allocation7 + $0x58c] ss:$16 sps:$4 sm:$0xff]  }
 0x27c   : > { %v4816_v53 = vadd.f32 %v4815_v2, %v9459_v36  ;;  %5124 = vmatpush1.bf16.msra.mxu0 %v8305_v60  ;;  %v8323_v36 = vld [vmem:[#allocation7 + $0x468] ss:$16 sps:$4 sm:$0xff]   ;;  %v8370_v60 = vld [vmem:[#allocation7 + $0x78c] ss:$16 sps:$4 sm:$0xff]  }
 0x27d   : > { %5167 = vmatpush1.bf16.msra.mxu1 %v8308_v62  ;;  %5125 = vmatprep.subr.bf16.mxu0 %v8313_v63  ;;  %v8362_v59 = vld [vmem:[#allocation7 + $0x7a8] ss:$16 sps:$4 sm:$0xff]   ;;  %v8376_v2 = vld [vmem:[#allocation7 + $0x76c] ss:$16 sps:$4 sm:$0xff]  }
 0x27e   : > { %v9477_v11 = vadd.f32 %v4858_v0, %v4816_v53  ;;  %5168 = vmatprep.subr.bf16.mxu1 %v8316_v12  ;;  %v8365_v62 = vld [vmem:[#allocation7 + $0x588] ss:$16 sps:$4 sm:$0xff]   ;;  %v8373_v12 = vld [vmem:[#allocation7 + $0x56c] ss:$16 sps:$4 sm:$0xff]  }
 0x27f   : > { %v8368_v63 = vld [vmem:[#allocation7 + $0x788] ss:$16 sps:$4 sm:$0xff]   ;;  %v8379_v0 = vld [vmem:[#allocation7 + $0x54c] ss:$16 sps:$4 sm:$0xff]  }
 0x280   : > { %5126 = vmatpush1.bf16.msra.mxu0 %v8311_v3  ;;  %v8371_v53 = vld [vmem:[#allocation7 + $0x568] ss:$16 sps:$4 sm:$0xff]  }
 0x281   : > { %5169 = vmatpush1.bf16.msra.mxu1 %v8314_v4  ;;  %5127 = vmatprep.subr.bf16.mxu0 %v8319_v10  ;;  %v8374_v3 = vld [vmem:[#allocation7 + $0x768] ss:$16 sps:$4 sm:$0xff]   ;;  %v8382_v4 = vld [vmem:[#allocation7 + $0x74c] ss:$16 sps:$4 sm:$0xff]  }
 0x282   : > { %5170 = vmatprep.subr.bf16.mxu1 %v8322_v5  ;;  %v8377_v10 = vld [vmem:[#allocation7 + $0x548] ss:$16 sps:$4 sm:$0xff]  }
 0x283   : > { %v8380_v5 = vld [vmem:[#allocation7 + $0x748] ss:$16 sps:$4 sm:$0xff]  }
 0x284   : > { %5128 = vmatpush1.bf16.msra.mxu0 %v8317_v49  ;;  %v8385_v49 = vld [vmem:[#allocation7 + $0x52c] ss:$16 sps:$4 sm:$0xff]  }
 0x285   : > { %5171 = vmatpush1.bf16.msra.mxu1 %v8320_v15  ;;  %5129 = vmatprep.subr.bf16.mxu0 %v8325_v8  ;;  %v8388_v15 = vld [vmem:[#allocation7 + $0x72c] ss:$16 sps:$4 sm:$0xff]   ;;  %v8383_v8 = vld [vmem:[#allocation7 + $0x528] ss:$16 sps:$4 sm:$0xff]  }
 0x286   : > { %5172 = vmatprep.subr.bf16.mxu1 %v8328_v22  ;;  %v8386_v22 = vld [vmem:[#allocation7 + $0x728] ss:$16 sps:$4 sm:$0xff]  }
 0x288   : > { %5130 = vmatpush1.bf16.msra.mxu0 %v8323_v36  ;;  %v8391_v36 = vld [vmem:[#allocation7 + $0x50c] ss:$16 sps:$4 sm:$0xff]  }
 0x289   : > { %5173 = vmatpush1.bf16.msra.mxu1 %v8326_v24  ;;  %5131 = vmatprep.subr.bf16.mxu0 %v8331_v29  ;;  %v8394_v24 = vld [vmem:[#allocation7 + $0x70c] ss:$16 sps:$4 sm:$0xff]   ;;  %v8389_v29 = vld [vmem:[#allocation7 + $0x508] ss:$16 sps:$4 sm:$0xff]  }
 0x28a   : > { %5174 = vmatprep.subr.bf16.mxu1 %v8334_v31  ;;  %v8392_v31 = vld [vmem:[#allocation7 + $0x708] ss:$16 sps:$4 sm:$0xff]  }
 0x28c   : > { %5132 = vmatpush1.bf16.msra.mxu0 %v8329_v32  ;;  %v8397_v32 = vld [vmem:[#allocation7 + $0x8ec] ss:$16 sps:$4 sm:$0xff]  }
 0x28d   : > { %5175 = vmatpush1.bf16.msra.mxu1 %v8332_v33  ;;  %5133 = vmatprep.subr.bf16.mxu0 %v8337_v35  ;;  %v8400_v33 = vld [vmem:[#allocation7 + $0xaec] ss:$16 sps:$4 sm:$0xff]   ;;  %v8395_v35 = vld [vmem:[#allocation7 + $0x8e8] ss:$16 sps:$4 sm:$0xff]  }
 0x28e   : > { %5176 = vmatprep.subr.bf16.mxu1 %v8340_v50  ;;  %v9479_v50 = vpop.f32.mrf.mxu0 }
 0x290   : > { %5134 = vmatpush1.bf16.msra.mxu0 %v8335_v47  ;;  %v8398_v47 = vld [vmem:[#allocation7 + $0xae8] ss:$16 sps:$4 sm:$0xff]  }
 0x291   : > { %5177 = vmatpush1.bf16.msra.mxu1 %v8338_v37  ;;  %5135 = vmatprep.subr.bf16.mxu0 %v8343_v52  ;;  %v9481_v37 = vpop.f32.mrf.mxu1  ;;  %v8403_v52 = vld [vmem:[#allocation7 + $0x8cc] ss:$16 sps:$4 sm:$0xff]  }
 0x292   : > { %5178 = vmatprep.subr.bf16.mxu1 %v8346_v38 }
 0x294   : > { %5136 = vmatpush1.bf16.msra.mxu0 %v8341_v57  ;;  %v8406_v57 = vld [vmem:[#allocation7 + $0xacc] ss:$16 sps:$4 sm:$0xff]  }
 0x295   : > { %5179 = vmatpush1.bf16.msra.mxu1 %v8344_v39  ;;  %5137 = vmatprep.subr.bf16.mxu0 %v8349_v17 }
 0x296   : > { %5180 = vmatprep.subr.bf16.mxu1 %v8352_v9  ;;  %v8401_v9 = vld [vmem:[#allocation7 + $0x8c8] ss:$16 sps:$4 sm:$0xff]  }
 0x298   : > { %5138 = vmatpush2.bf16.msra.mxu0 %v8347_v45 }
 0x299   : > { %5181 = vmatpush2.bf16.msra.mxu1 %v8350_v46  ;;  %5139 = vmatprep.subr.bf16.mxu0 %v8355_v48  ;;  %v8404_v46 = vld [vmem:[#allocation7 + $0xac8] ss:$16 sps:$4 sm:$0xff]   ;;  %v8409_v48 = vld [vmem:[#allocation7 + $0x8ac] ss:$16 sps:$4 sm:$0xff]  }
 0x29a   : > { %5182 = vmatprep.subr.bf16.mxu1 %v8358_v21 }
 0x29c   : > { %5140 = vmatpush2.bf16.msra.mxu0 %v8353_v54 }
 0x29d   : > { %5183 = vmatpush2.bf16.msra.mxu1 %v8356_v55  ;;  %5141 = vmatprep.subr.bf16.mxu0 %v8361_v58  ;;  %v8407_v55 = vld [vmem:[#allocation7 + $0x8a8] ss:$16 sps:$4 sm:$0xff]  }
 0x29e   : > { %5184 = vmatprep.subr.bf16.mxu1 %v8364_v13  ;;  %v8410_v58 = vld [vmem:[#allocation7 + $0xaa8] ss:$16 sps:$4 sm:$0xff]   ;;  %v8415_v13 = vld [vmem:[#allocation7 + $0x88c] ss:$16 sps:$4 sm:$0xff]  }
 0x2a0   : > { %5142 = vmatpush2.bf16.msra.mxu0 %v8359_v25 }
 0x2a1   : > { %5185 = vmatpush2.bf16.msra.mxu1 %v8362_v59  ;;  %5143 = vmatprep.subr.bf16.mxu0 %v8367_v34  ;;  %v8418_v59 = vld [vmem:[#allocation7 + $0xa8c] ss:$16 sps:$4 sm:$0xff]   ;;  %v8416_v34 = vld [vmem:[#allocation7 + $0xa88] ss:$16 sps:$4 sm:$0xff]  }
 0x2a2   : > { %5186 = vmatprep.subr.bf16.mxu1 %v8370_v60  ;;  %v8421_v60 = vld [vmem:[#allocation7 + $0x86c] ss:$16 sps:$4 sm:$0xff]  }
 0x2a4   : > { %5144 = vmatpush2.bf16.msra.mxu0 %v8365_v62  ;;  %v8424_v62 = vld [vmem:[#allocation7 + $0xa6c] ss:$16 sps:$4 sm:$0xff]  }
 0x2a5   : > { %5187 = vmatpush2.bf16.msra.mxu1 %v8368_v63  ;;  %5145 = vmatprep.subr.bf16.mxu0 %v8373_v12  ;;  %v8422_v63 = vld [vmem:[#allocation7 + $0xa68] ss:$16 sps:$4 sm:$0xff]   ;;  %v8427_v12 = vld [vmem:[#allocation7 + $0x84c] ss:$16 sps:$4 sm:$0xff]  }
 0x2a6   : > { %5188 = vmatprep.subr.bf16.mxu1 %v8376_v2  ;;  %v8430_v2 = vld [vmem:[#allocation7 + $0xa4c] ss:$16 sps:$4 sm:$0xff]  }
 0x2a8   : > { %5146 = vmatpush2.bf16.msra.mxu0 %v8371_v53  ;;  %v8425_v53 = vld [vmem:[#allocation7 + $0x848] ss:$16 sps:$4 sm:$0xff]  }
 0x2a9   : > { %5189 = vmatpush2.bf16.msra.mxu1 %v8374_v3  ;;  %5147 = vmatprep.subr.bf16.mxu0 %v8379_v0  ;;  %v8428_v3 = vld [vmem:[#allocation7 + $0xa48] ss:$16 sps:$4 sm:$0xff]   ;;  %v8433_v0 = vld [vmem:[#allocation7 + $0x82c] ss:$16 sps:$4 sm:$0xff]  }
 0x2aa   : > { %5190 = vmatprep.subr.bf16.mxu1 %v8382_v4  ;;  %v8436_v4 = vld [vmem:[#allocation7 + $0xa2c] ss:$16 sps:$4 sm:$0xff]  }
 0x2ac   : > { %5148 = vmatpush2.bf16.msra.mxu0 %v8377_v10  ;;  %v8431_v10 = vld [vmem:[#allocation7 + $0x828] ss:$16 sps:$4 sm:$0xff]  }
 0x2ad   : > { %5191 = vmatpush2.bf16.msra.mxu1 %v8380_v5  ;;  %5149 = vmatprep.subr.bf16.mxu0 %v8385_v49  ;;  %v8434_v5 = vld [vmem:[#allocation7 + $0xa28] ss:$16 sps:$4 sm:$0xff]   ;;  %v8439_v49 = vld [vmem:[#allocation7 + $0x80c] ss:$16 sps:$4 sm:$0xff]  }
 0x2ae   : > { %5192 = vmatprep.subr.bf16.mxu1 %v8388_v15  ;;  %v8442_v15 = vld [vmem:[#allocation7 + $0xa0c] ss:$16 sps:$4 sm:$0xff]  }
 0x2b0   : > { %5150 = vmatpush2.bf16.msra.mxu0 %v8383_v8  ;;  %v8437_v8 = vld [vmem:[#allocation7 + $0x808] ss:$16 sps:$4 sm:$0xff]  }
 0x2b1   : > { %5193 = vmatpush2.bf16.msra.mxu1 %v8386_v22  ;;  %5151 = vmatprep.subr.bf16.mxu0 %v8391_v36  ;;  %v8440_v22 = vld [vmem:[#allocation7 + $0xa08] ss:$16 sps:$4 sm:$0xff]   ;;  %v8445_v36 = vld [vmem:[#allocation7 + $0x9ec] ss:$16 sps:$4 sm:$0xff]  }
 0x2b2   : > { %5194 = vmatprep.subr.bf16.mxu1 %v8394_v24  ;;  %v8448_v24 = vld [vmem:[#allocation7 + $0xbec] ss:$16 sps:$4 sm:$0xff]  }
 0x2b4   : > { %5152 = vmatpush2.bf16.msra.mxu0 %v8389_v29  ;;  %v8443_v29 = vld [vmem:[#allocation7 + $0x9e8] ss:$16 sps:$4 sm:$0xff]  }
 0x2b5   : > { %5195 = vmatpush2.bf16.msra.mxu1 %v8392_v31  ;;  %5207 = vmatprep.subr.bf16.mxu0 %v8397_v32  ;;  %v8446_v31 = vld [vmem:[#allocation7 + $0xbe8] ss:$16 sps:$4 sm:$0xff]   ;;  %v8451_v32 = vld [vmem:[#allocation7 + $0x9cc] ss:$16 sps:$4 sm:$0xff]  }
 0x2b6   : > { %5250 = vmatprep.subr.bf16.mxu1 %v8400_v33  ;;  %v8454_v33 = vld [vmem:[#allocation7 + $0xbcc] ss:$16 sps:$4 sm:$0xff]  }
 0x2b7   : > { %v4897_v38 = vpop.f32.mrf.mxu0  ;;  %5154 = vmatmul.mubr.bf16.vlgmr.msra.gmra.mxu0 %v9394_v6  ;;  %v4940_v17 = vpop.f32.mrf.mxu1 }
 0x2b8   : > { %v4898_v39 = vadd.f32 %v4897_v38, %v9471_v1  ;;  %5197 = vmatmul.mubr.bf16.vlgmr.msra.gmra.mxu1 %v9396_v7  ;;  %5208 = vmatpush1.bf16.msra.mxu0 %v8395_v35  ;;  %v8412_v1 = vld [vmem:[#allocation7 + $0xaac] ss:$16 sps:$4 sm:$0xff]   ;;  %v8449_v35 = vld [vmem:[#allocation7 + $0x9c8] ss:$16 sps:$4 sm:$0xff]  }
 0x2b9   : > { %5239 = vmatprep.mubr.bf16.mxu0 %v9398_v14  ;;  %5251 = vmatpush1.bf16.msra.mxu1 %v8398_v47  ;;  %v9487_v45 = vpop.f32.mrf.mxu0  ;;  %v9492_v6 = vpop.f32.mrf.mxu1  ;;  %v8452_v47 = vld [vmem:[#allocation7 + $0xbc8] ss:$16 sps:$4 sm:$0xff]   ;;  %v8460_v38 = vld [vmem:[#allocation7 + $0xbac] ss:$16 sps:$4 sm:$0xff]  }
 0x2ba   : > { %v9489_v21 = vadd.f32 %v4940_v17, %v4898_v39  ;;  %5282 = vmatprep.mubr.bf16.mxu1 %v9401_v26  ;;  %5209 = vmatprep.subr.bf16.mxu0 %v8403_v52  ;;  %v8413_v26 = vld [vmem:[#allocation7 + $0x888] ss:$16 sps:$4 sm:$0xff]   ;;  %v8457_v52 = vld [vmem:[#allocation7 + $0x9ac] ss:$16 sps:$4 sm:$0xff]  }
 0x2bb   : > { %v4901_v54 = vpop.f32.mrf.mxu0  ;;  %5252 = vmatprep.subr.bf16.mxu1 %v8406_v57  ;;  %v4944_v14 = vpop.f32.mrf.mxu1  ;;  %v8455_v57 = vld [vmem:[#allocation7 + $0x9a8] ss:$16 sps:$4 sm:$0xff]   ;;  %v8463_v17 = vld [vmem:[#allocation7 + $0x98c] ss:$16 sps:$4 sm:$0xff]  }
 0x2bc   : > { %v4902_v7 = vadd.f32 %v4901_v54, %v9477_v11  ;;  %5210 = vmatpush1.bf16.msra.mxu0 %v8401_v9  ;;  %v8419_v11 = vld [vmem:[#allocation7 + $0x868] ss:$16 sps:$4 sm:$0xff]   ;;  %v8466_v9 = vld [vmem:[#allocation7 + $0xb8c] ss:$16 sps:$4 sm:$0xff]  }
 0x2bd   : > { %5253 = vmatpush1.bf16.msra.mxu1 %v8404_v46  ;;  %5211 = vmatprep.subr.bf16.mxu0 %v8409_v48  ;;  %v8458_v39 = vld [vmem:[#allocation7 + $0xba8] ss:$16 sps:$4 sm:$0xff]   ;;  %v8472_v54 = vld [vmem:[#allocation7 + $0xb6c] ss:$16 sps:$4 sm:$0xff]  }
 0x2be   : > { %v9495_v25 = vadd.f32 %v4944_v14, %v4902_v7  ;;  %5254 = vmatprep.subr.bf16.mxu1 %v8412_v1  ;;  %v8461_v46 = vld [vmem:[#allocation7 + $0x988] ss:$16 sps:$4 sm:$0xff]   ;;  %v8469_v1 = vld [vmem:[#allocation7 + $0x96c] ss:$16 sps:$4 sm:$0xff]  }
 0x2bf   : > { %v8464_v48 = vld [vmem:[#allocation7 + $0xb88] ss:$16 sps:$4 sm:$0xff]   ;;  %v8475_v14 = vld [vmem:[#allocation7 + $0x94c] ss:$16 sps:$4 sm:$0xff]  }
 0x2c0   : > { %5212 = vmatpush1.bf16.msra.mxu0 %v8407_v55  ;;  %v8467_v7 = vld [vmem:[#allocation7 + $0x968] ss:$16 sps:$4 sm:$0xff]  }
 0x2c1   : > { %5255 = vmatpush1.bf16.msra.mxu1 %v8410_v58  ;;  %5213 = vmatprep.subr.bf16.mxu0 %v8415_v13  ;;  %v8470_v55 = vld [vmem:[#allocation7 + $0xb68] ss:$16 sps:$4 sm:$0xff]   ;;  %v8478_v58 = vld [vmem:[#allocation7 + $0xb4c] ss:$16 sps:$4 sm:$0xff]  }
 0x2c2   : > { %5256 = vmatprep.subr.bf16.mxu1 %v8418_v59  ;;  %v8473_v13 = vld [vmem:[#allocation7 + $0x948] ss:$16 sps:$4 sm:$0xff]  }
 0x2c3   : > { %v8476_v59 = vld [vmem:[#allocation7 + $0xb48] ss:$16 sps:$4 sm:$0xff]  }
 0x2c4   : > { %5214 = vmatpush1.bf16.msra.mxu0 %v8413_v26  ;;  %v8481_v26 = vld [vmem:[#allocation7 + $0x92c] ss:$16 sps:$4 sm:$0xff]  }
 0x2c5   : > { %5257 = vmatpush1.bf16.msra.mxu1 %v8416_v34  ;;  %5215 = vmatprep.subr.bf16.mxu0 %v8421_v60  ;;  %v8484_v34 = vld [vmem:[#allocation7 + $0xb2c] ss:$16 sps:$4 sm:$0xff]   ;;  %v8479_v60 = vld [vmem:[#allocation7 + $0x928] ss:$16 sps:$4 sm:$0xff]  }
 0x2c6   : > { %5258 = vmatprep.subr.bf16.mxu1 %v8424_v62  ;;  %v8482_v62 = vld [vmem:[#allocation7 + $0xb28] ss:$16 sps:$4 sm:$0xff]  }
 0x2c8   : > { %5216 = vmatpush1.bf16.msra.mxu0 %v8419_v11  ;;  %v8487_v11 = vld [vmem:[#allocation7 + $0x90c] ss:$16 sps:$4 sm:$0xff]  }
 0x2c9   : > { %5259 = vmatpush1.bf16.msra.mxu1 %v8422_v63  ;;  %5217 = vmatprep.subr.bf16.mxu0 %v8427_v12  ;;  %v8490_v63 = vld [vmem:[#allocation7 + $0xb0c] ss:$16 sps:$4 sm:$0xff]   ;;  %v8485_v12 = vld [vmem:[#allocation7 + $0x908] ss:$16 sps:$4 sm:$0xff]  }
 0x2ca   : > { %5260 = vmatprep.subr.bf16.mxu1 %v8430_v2  ;;  %v8488_v2 = vld [vmem:[#allocation7 + $0xb08] ss:$16 sps:$4 sm:$0xff]  }
 0x2cc   : > { %5218 = vmatpush1.bf16.msra.mxu0 %v8425_v53  ;;  %v8493_v53 = vld [vmem:[#allocation7 + $0xcec] ss:$16 sps:$4 sm:$0xff]  }
 0x2cd   : > { %5261 = vmatpush1.bf16.msra.mxu1 %v8428_v3  ;;  %5219 = vmatprep.subr.bf16.mxu0 %v8433_v0  ;;  %v8496_v3 = vld [vmem:[#allocation7 + $0xeec] ss:$16 sps:$4 sm:$0xff]   ;;  %v8491_v0 = vld [vmem:[#allocation7 + $0xce8] ss:$16 sps:$4 sm:$0xff]  }
 0x2ce   : > { %5262 = vmatprep.subr.bf16.mxu1 %v8436_v4  ;;  %v9497_v4 = vpop.f32.mrf.mxu0 }
 0x2d0   : > { %5220 = vmatpush1.bf16.msra.mxu0 %v8431_v10  ;;  %v8494_v10 = vld [vmem:[#allocation7 + $0xee8] ss:$16 sps:$4 sm:$0xff]  }
 0x2d1   : > { %5263 = vmatpush1.bf16.msra.mxu1 %v8434_v5  ;;  %5221 = vmatprep.subr.bf16.mxu0 %v8439_v49  ;;  %v9499_v5 = vpop.f32.mrf.mxu1  ;;  %v8499_v49 = vld [vmem:[#allocation7 + $0xccc] ss:$16 sps:$4 sm:$0xff]  }
 0x2d2   : > { %5264 = vmatprep.subr.bf16.mxu1 %v8442_v15 }
 0x2d4   : > { %5222 = vmatpush1.bf16.msra.mxu0 %v8437_v8  ;;  %v8502_v8 = vld [vmem:[#allocation7 + $0xecc] ss:$16 sps:$4 sm:$0xff]  }
 0x2d5   : > { %5265 = vmatpush1.bf16.msra.mxu1 %v8440_v22  ;;  %5223 = vmatprep.subr.bf16.mxu0 %v8445_v36 }
 0x2d6   : > { %5266 = vmatprep.subr.bf16.mxu1 %v8448_v24  ;;  %v8497_v24 = vld [vmem:[#allocation7 + $0xcc8] ss:$16 sps:$4 sm:$0xff]  }
 0x2d8   : > { %5224 = vmatpush2.bf16.msra.mxu0 %v8443_v29 }
 0x2d9   : > { %5267 = vmatpush2.bf16.msra.mxu1 %v8446_v31  ;;  %5225 = vmatprep.subr.bf16.mxu0 %v8451_v32  ;;  %v8500_v31 = vld [vmem:[#allocation7 + $0xec8] ss:$16 sps:$4 sm:$0xff]   ;;  %v8505_v32 = vld [vmem:[#allocation7 + $0xcac] ss:$16 sps:$4 sm:$0xff]  }
 0x2da   : > { %5268 = vmatprep.subr.bf16.mxu1 %v8454_v33 }
 0x2dc   : > { %5226 = vmatpush2.bf16.msra.mxu0 %v8449_v35 }
 0x2dd   : > { %5269 = vmatpush2.bf16.msra.mxu1 %v8452_v47  ;;  %5227 = vmatprep.subr.bf16.mxu0 %v8457_v52  ;;  %v8503_v47 = vld [vmem:[#allocation7 + $0xca8] ss:$16 sps:$4 sm:$0xff]  }
 0x2de   : > { %5270 = vmatprep.subr.bf16.mxu1 %v8460_v38  ;;  %v8511_v38 = vld [vmem:[#allocation7 + $0xc8c] ss:$16 sps:$4 sm:$0xff]  }
 0x2e0   : > { %5228 = vmatpush2.bf16.msra.mxu0 %v8455_v57 }
 0x2e1   : > { %5271 = vmatpush2.bf16.msra.mxu1 %v8458_v39  ;;  %5229 = vmatprep.subr.bf16.mxu0 %v8463_v17  ;;  %v8514_v39 = vld [vmem:[#allocation7 + $0xe8c] ss:$16 sps:$4 sm:$0xff]  }
 0x2e2   : > { %5272 = vmatprep.subr.bf16.mxu1 %v8466_v9  ;;  %v8509_v9 = vld [vmem:[#allocation7 + $0xc88] ss:$16 sps:$4 sm:$0xff]  }
 0x2e4   : > { %5230 = vmatpush2.bf16.msra.mxu0 %v8461_v46  ;;  %v8512_v46 = vld [vmem:[#allocation7 + $0xe88] ss:$16 sps:$4 sm:$0xff]  }
 0x2e5   : > { %5273 = vmatpush2.bf16.msra.mxu1 %v8464_v48  ;;  %5231 = vmatprep.subr.bf16.mxu0 %v8469_v1  ;;  %v8517_v48 = vld [vmem:[#allocation7 + $0xc6c] ss:$16 sps:$4 sm:$0xff]  }
 0x2e6   : > { %5274 = vmatprep.subr.bf16.mxu1 %v8472_v54  ;;  %v8515_v54 = vld [vmem:[#allocation7 + $0xc68] ss:$16 sps:$4 sm:$0xff]  }
 0x2e8   : > { %5232 = vmatpush2.bf16.msra.mxu0 %v8467_v7  ;;  %v8518_v7 = vld [vmem:[#allocation7 + $0xe68] ss:$16 sps:$4 sm:$0xff]  }
 0x2e9   : > { %5275 = vmatpush2.bf16.msra.mxu1 %v8470_v55  ;;  %5233 = vmatprep.subr.bf16.mxu0 %v8475_v14  ;;  %v8523_v55 = vld [vmem:[#allocation7 + $0xc4c] ss:$16 sps:$4 sm:$0xff]  }
 0x2ea   : > { %5276 = vmatprep.subr.bf16.mxu1 %v8478_v58  ;;  %v8526_v14 = vld [vmem:[#allocation7 + $0xe4c] ss:$16 sps:$4 sm:$0xff]   ;;  %v8521_v58 = vld [vmem:[#allocation7 + $0xc48] ss:$16 sps:$4 sm:$0xff]  }
 0x2ec   : > { %5234 = vmatpush2.bf16.msra.mxu0 %v8473_v13  ;;  %v8524_v13 = vld [vmem:[#allocation7 + $0xe48] ss:$16 sps:$4 sm:$0xff]  }
 0x2ed   : > { %5277 = vmatpush2.bf16.msra.mxu1 %v8476_v59  ;;  %5235 = vmatprep.subr.bf16.mxu0 %v8481_v26  ;;  %v8529_v59 = vld [vmem:[#allocation7 + $0xc2c] ss:$16 sps:$4 sm:$0xff]  }
 0x2ee   : > { %5278 = vmatprep.subr.bf16.mxu1 %v8484_v34  ;;  %v8532_v26 = vld [vmem:[#allocation7 + $0xe2c] ss:$16 sps:$4 sm:$0xff]   ;;  %v8527_v34 = vld [vmem:[#allocation7 + $0xc28] ss:$16 sps:$4 sm:$0xff]  }
 0x2f0   : > { %5236 = vmatpush2.bf16.msra.mxu0 %v8479_v60  ;;  %v8530_v60 = vld [vmem:[#allocation7 + $0xe28] ss:$16 sps:$4 sm:$0xff]  }
 0x2f1   : > { %5279 = vmatpush2.bf16.msra.mxu1 %v8482_v62  ;;  %5237 = vmatprep.subr.bf16.mxu0 %v8487_v11  ;;  %v8535_v62 = vld [vmem:[#allocation7 + $0xc0c] ss:$16 sps:$4 sm:$0xff]  }
 0x2f2   : > { %5280 = vmatprep.subr.bf16.mxu1 %v8490_v63  ;;  %v8538_v11 = vld [vmem:[#allocation7 + $0xe0c] ss:$16 sps:$4 sm:$0xff]   ;;  %v8533_v63 = vld [vmem:[#allocation7 + $0xc08] ss:$16 sps:$4 sm:$0xff]  }
 0x2f4   : > { %5238 = vmatpush2.bf16.msra.mxu0 %v8485_v12  ;;  %v8536_v12 = vld [vmem:[#allocation7 + $0xe08] ss:$16 sps:$4 sm:$0xff]  }
 0x2f5   : > { %5281 = vmatpush2.bf16.msra.mxu1 %v8488_v2  ;;  %5293 = vmatprep.subr.bf16.mxu0 %v8493_v53  ;;  %v8541_v2 = vld [vmem:[#allocation7 + $0xdec] ss:$16 sps:$4 sm:$0xff]  }
 0x2f6   : > { %5336 = vmatprep.subr.bf16.mxu1 %v8496_v3  ;;  %v8544_v53 = vld [vmem:[#allocation7 + $0xfec] ss:$16 sps:$4 sm:$0xff]   ;;  %v8539_v3 = vld [vmem:[#allocation7 + $0xde8] ss:$16 sps:$4 sm:$0xff]  }
 0x2f7   : > { %v4983_v15 = vpop.f32.mrf.mxu0  ;;  %5240 = vmatmul.mubr.bf16.vlgmr.msra.gmra.mxu0 %v9436_v40  ;;  %v5026_v36 = vpop.f32.mrf.mxu1  ;;  %v8508_v40 = vld [vmem:[#allocation7 + $0xeac] ss:$16 sps:$4 sm:$0xff]  }
 0x2f8   : > { %v4984_v22 = vadd.f32 %v4983_v15, %v9489_v21  ;;  %5283 = vmatmul.mubr.bf16.vlgmr.msra.gmra.mxu1 %v9438_v42  ;;  %5294 = vmatpush1.bf16.msra.mxu0 %v8491_v0  ;;  %v8542_v0 = vld [vmem:[#allocation7 + $0xfe8] ss:$16 sps:$4 sm:$0xff]  }
 0x2f9   : > { %5325 = vmatprep.mubr.bf16.mxu0 %v9440_v43  ;;  %5337 = vmatpush1.bf16.msra.mxu1 %v8494_v10  ;;  %v9505_v29 = vpop.f32.mrf.mxu0  ;;  %v9508_v35 = vpop.f32.mrf.mxu1  ;;  %v8506_v43 = vld [vmem:[#allocation7 + $0xea8] ss:$16 sps:$4 sm:$0xff]   ;;  %v8547_v10 = vld [vmem:[#allocation7 + $0xdcc] ss:$16 sps:$4 sm:$0xff]  }
 0x2fa   : > { %v5027_v33 = vadd.f32 %v5026_v36, %v4984_v22  ;;  %5368 = vmatprep.mubr.bf16.mxu1 %v9443_v44  ;;  %5295 = vmatprep.subr.bf16.mxu0 %v8499_v49  ;;  %v8550_v49 = vld [vmem:[#allocation7 + $0xfcc] ss:$16 sps:$4 sm:$0xff]   ;;  %v9513_v15 = vld [vmem:[#allocation11 + $0x1] ss:$8 sm:$0xf] }
 0x2fb   : > { %v4987_v21 = vpop.f32.mrf.mxu0  ;;  %5338 = vmatprep.subr.bf16.mxu1 %v8502_v8  ;;  %v5030_v52 = vpop.f32.mrf.mxu1  ;;  %v2118_v8 = vrot.slane %v9513_v15, %v9313_v16  ;;  %v8545_v22 = vld [vmem:[#allocation7 + $0xdc8] ss:$16 sps:$4 sm:$0xff]  }
 0x2fc   : > { %v4988_v42 = vadd.f32 %v4987_v21, %v9495_v25  ;;  %5296 = vmatpush1.bf16.msra.mxu0 %v8497_v24  ;;  %v5379_v17 = vmax.f32 %v5027_v33, 0.0  ;;  %v8520_v25 = vld [vmem:[#allocation7 + $0xe6c] ss:$16 sps:$4 sm:$0xff]   ;;  %v8548_v24 = vld [vmem:[#allocation7 + $0xfc8] ss:$16 sps:$4 sm:$0xff]  }
 0x2fd   : > { %5339 = vmatpush1.bf16.msra.mxu1 %v8500_v31  ;;  %5297 = vmatprep.subr.bf16.mxu0 %v8505_v32  ;;  %v4732_v36 = vadd.f32 %v9461_v30, %v2118_v8  ;;  %v8553_v31 = vld [vmem:[#allocation7 + $0xdac] ss:$16 sps:$4 sm:$0xff]   ;;  %v4728_v33 = vadd.f32 %v9452_v23, %v2118_v8  ;;  %v8560_v23 = vld [vmem:[#allocation7 + $0xf88] ss:$16 sps:$4 sm:$0xff]   ;;  %v8683_v8 = vld [vmem:[#allocation8 + $0x2e0] ss:$16 sps:$4 sm:$0xff]  }
 0x2fe   : > { %v5031_v57 = vadd.f32 %v5030_v52, %v4988_v42  ;;  %5340 = vmatprep.subr.bf16.mxu1 %v8508_v40  ;;  %v8556_v32 = vld [vmem:[#allocation7 + $0xfac] ss:$16 sps:$4 sm:$0xff]   ;;  %v8551_v40 = vld [vmem:[#allocation7 + $0xda8] ss:$16 sps:$4 sm:$0xff]  }
 0x2ff   : > { %v4775_v21 = vadd.f32 %v9463_v56, %v4732_v36  ;;  %v8554_v42 = vld [vmem:[#allocation7 + $0xfa8] ss:$16 sps:$4 sm:$0xff]   ;;  %v8562_v52 = vld [vmem:[#allocation7 + $0xf8c] ss:$16 sps:$4 sm:$0xff]   ;;  %v4771_v30 = vadd.f32 %v9457_v41, %v4728_v33  ;;  %v8601_v36 = vld [vmem:[#allocation8 + $0x64] ss:$16 sps:$4 sm:$0xff]  }
 0x300   : > { %v5383_v44 = vmax.f32 %v5031_v57, 0.0  ;;  %5298 = vmatpush1.bf16.msra.mxu0 %v8503_v47  ;;  %v8559_v47 = vld [vmem:[#allocation7 + $0xd8c] ss:$16 sps:$4 sm:$0xff]   ;;  %v8689_v33 = vld [vmem:[#allocation8 + $0x2a0] ss:$16 sps:$4 sm:$0xff]  }
 0x301   : > { %5341 = vmatpush1.bf16.msra.mxu1 %v8506_v43  ;;  %5299 = vmatprep.subr.bf16.mxu0 %v8511_v38  ;;  %v4818_v43 = vadd.f32 %v9479_v50, %v4775_v21  ;;  %v8557_v38 = vld [vmem:[#allocation7 + $0xd88] ss:$16 sps:$4 sm:$0xff]   ;;  %v4814_v57 = vadd.f32 %v9469_v61, %v4771_v30  ;;  %v8568_v56 = vld [vmem:[#allocation7 + $0xf6c] ss:$16 sps:$4 sm:$0xff]   ;;  %v8694_v21 = vld [vmem:[#allocation8 + $0x284] ss:$16 sps:$4 sm:$0xff]  }
 0x302   : > { %v9511_v1 = vpack.c.bf16 %v5383_v44, %v5379_v17  ;;  %5342 = vmatprep.subr.bf16.mxu1 %v8514_v39  ;;  %v8565_v39 = vld [vmem:[#allocation7 + $0xd6c] ss:$16 sps:$4 sm:$0xff]   ;;  %v8563_v44 = vld [vmem:[#allocation7 + $0xd68] ss:$16 sps:$4 sm:$0xff]   ;;  %v8697_v30 = vld [vmem:[#allocation8 + $0x264] ss:$16 sps:$4 sm:$0xff]  }
 0x303   : > { %v4861_v17 = vadd.f32 %v9481_v37, %v4818_v43  ;;  %v8566_v50 = vld [vmem:[#allocation7 + $0xf68] ss:$16 sps:$4 sm:$0xff]   ;;  %v8574_v61 = vld [vmem:[#allocation7 + $0xf4c] ss:$16 sps:$4 sm:$0xff]   ;;  %v8610_v43 = vld [vmem:[#allocation8 + $0x4] ss:$16 sps:$4 sm:$0xff]  }
 0x304   : > { %5300 = vmatpush1.bf16.msra.mxu0 %v8509_v9  ;;  %v4857_v9 = vadd.f32 %v9474_v51, %v4814_v57  ;;  %v8572_v37 = vld [vmem:[#allocation7 + $0xf48] ss:$16 sps:$4 sm:$0xff]   ;;  %v8580_v51 = vld [vmem:[#allocation7 + $0xf2c] ss:$16 sps:$4 sm:$0xff]   ;;  %v8608_v57 = vld [vmem:[#allocation8] ss:$16 sps:$4 sm:$0xff]  }
 0x305   : > { %5343 = vmatpush1.bf16.msra.mxu1 %v8512_v46  ;;  %5301 = vmatprep.subr.bf16.mxu0 %v8517_v48  ;;  %v4904_v41 = vadd.f32 %v9497_v4, %v4861_v17  ;;  %v8571_v46 = vld [vmem:[#allocation7 + $0xd4c] ss:$16 sps:$4 sm:$0xff]   ;;  %v8611_v17 = vld [vmem:[#allocation8 + $0x1e0] ss:$16 sps:$4 sm:$0xff]  }
 0x306   : > { %5344 = vmatprep.subr.bf16.mxu1 %v8520_v25  ;;  %v4900_v48 = vadd.f32 %v9487_v45, %v4857_v9  ;;  %v4989_v25 = vpop.f32.mrf.mxu0  ;;  %v8578_v45 = vld [vmem:[#allocation7 + $0xf28] ss:$16 sps:$4 sm:$0xff]   ;;  %v8616_v9 = vld [vmem:[#allocation8 + $0x1c4] ss:$16 sps:$4 sm:$0xff]  }
 0x308   : > { %5302 = vmatpush1.bf16.msra.mxu0 %v8515_v54  ;;  %v8569_v54 = vld [vmem:[#allocation7 + $0xd48] ss:$16 sps:$4 sm:$0xff]   ;;  %v4943_v4 = vadd.f32 %v9492_v6, %v4900_v48  ;;  %v8704_v48 = vld [vmem:[#allocation8 + $0x200] ss:$16 sps:$4 sm:$0xff]  }
 0x309   : > { %5345 = vmatpush1.bf16.msra.mxu1 %v8518_v7  ;;  %5303 = vmatprep.subr.bf16.mxu0 %v8523_v55  ;;  %v4947_v7 = vadd.f32 %v9499_v5, %v4904_v41  ;;  %v8577_v55 = vld [vmem:[#allocation7 + $0xd2c] ss:$16 sps:$4 sm:$0xff]   ;;  %v8584_v6 = vld [vmem:[#allocation7 + $0xf08] ss:$16 sps:$4 sm:$0xff]   ;;  %v8701_v41 = vld [vmem:[#allocation8 + $0x220] ss:$16 sps:$4 sm:$0xff]  }
 0x30a   : > { %5346 = vmatprep.subr.bf16.mxu1 %v8526_v14  ;;  %v8586_v5 = vld [vmem:[#allocation7 + $0xf0c] ss:$16 sps:$4 sm:$0xff]  }
 0x30b   : > { %v4990_v14 = vadd.f32 %v4989_v25, %v4947_v7  ;;  %v8617_v25 = vld [vmem:[#allocation8 + $0x1a0] ss:$16 sps:$4 sm:$0xff]   ;;  %v8622_v7 = vld [vmem:[#allocation8 + $0x184] ss:$16 sps:$4 sm:$0xff]  }
 0x30c   : > { %5304 = vmatpush1.bf16.msra.mxu0 %v8521_v58  ;;  %v8575_v58 = vld [vmem:[#allocation7 + $0xd28] ss:$16 sps:$4 sm:$0xff]  }
 0x30d   : > { %5347 = vmatpush1.bf16.msra.mxu1 %v8524_v13  ;;  %5305 = vmatprep.subr.bf16.mxu0 %v8529_v59  ;;  %v4986_v13 = vadd.f32 %v9505_v29, %v4943_v4  ;;  %v8583_v59 = vld [vmem:[#allocation7 + $0xd0c] ss:$16 sps:$4 sm:$0xff]   ;;  %v8587_v29 = vld [vmem:[#allocation8 + $0xe0] ss:$16 sps:$4 sm:$0xff]   ;;  %v8625_v4 = vld [vmem:[#allocation8 + $0x164] ss:$16 sps:$4 sm:$0xff]  }
 0x30e   : > { %5348 = vmatprep.subr.bf16.mxu1 %v8532_v26  ;;  %v5032_v26 = vpop.f32.mrf.mxu1 }
 0x310   : > { %5306 = vmatpush1.bf16.msra.mxu0 %v8527_v34  ;;  %v5033_v34 = vadd.f32 %v5032_v26, %v4990_v14  ;;  %v8710_v14 = vld [vmem:[#allocation8 + $0x3c0] ss:$16 sps:$4 sm:$0xff]  }
 0x311   : > { %5349 = vmatpush1.bf16.msra.mxu1 %v8530_v60  ;;  %5307 = vmatprep.subr.bf16.mxu0 %v8535_v62  ;;  %v8581_v60 = vld [vmem:[#allocation7 + $0xd08] ss:$16 sps:$4 sm:$0xff]   ;;  %v5029_v62 = vadd.f32 %v9508_v35, %v4986_v13  ;;  %v8590_v35 = vld [vmem:[#allocation8 + $0xc0] ss:$16 sps:$4 sm:$0xff]   ;;  %v8715_v13 = vld [vmem:[#allocation8 + $0x3a4] ss:$16 sps:$4 sm:$0xff]  }
 0x312   : > { %5350 = vmatprep.subr.bf16.mxu1 %v8538_v11  ;;  %v8589_v11 = vld [vmem:[#allocation8 + $0xe4] ss:$16 sps:$4 sm:$0xff]   ;;  %v8626_v26 = vld [vmem:[#allocation8 + $0x140] ss:$16 sps:$4 sm:$0xff]  }
 0x314   : > { %5308 = vmatpush1.bf16.msra.mxu0 %v8533_v63  ;;  %v5384_v63 = vmax.f32 %v5033_v34, 0.0  ;;  %v8631_v34 = vld [vmem:[#allocation8 + $0x124] ss:$16 sps:$4 sm:$0xff]  }
 0x315   : > { %5351 = vmatpush1.bf16.msra.mxu1 %v8536_v12  ;;  %5309 = vmatprep.subr.bf16.mxu0 %v8541_v2  ;;  %v5380_v12 = vmax.f32 %v5029_v62, 0.0  ;;  %v8592_v2 = vld [vmem:[#allocation8 + $0xc4] ss:$16 sps:$4 sm:$0xff]   ;;  %v8629_v62 = vld [vmem:[#allocation8 + $0x120] ss:$16 sps:$4 sm:$0xff]  }
 0x316   : > { %5352 = vmatprep.subr.bf16.mxu1 %v8544_v53 }
 0x317   : > { %v9531_v53 = vpack.c.bf16 %v5384_v63, %v5380_v12  ;;  %v8719_v63 = vld [vmem:[#allocation8 + $0x360] ss:$16 sps:$4 sm:$0xff]   ;;  %v8637_v12 = vld [vmem:[#allocation8 + $0xec] ss:$16 sps:$4 sm:$0xff]  }
 0x318   : > { %5310 = vmatpush2.bf16.msra.mxu0 %v8539_v3  ;;  %v8595_v3 = vld [vmem:[#allocation8 + $0xa4] ss:$16 sps:$4 sm:$0xff]  }
 0x319   : > { %5353 = vmatpush2.bf16.msra.mxu1 %v8542_v0  ;;  %5311 = vmatprep.subr.bf16.mxu0 %v8547_v10  ;;  %v8593_v0 = vld [vmem:[#allocation8 + $0xa0] ss:$16 sps:$4 sm:$0xff]   ;;  %v8598_v10 = vld [vmem:[#allocation8 + $0x84] ss:$16 sps:$4 sm:$0xff]  }
 0x31a   : > { %5354 = vmatprep.subr.bf16.mxu1 %v8550_v49  ;;  %v8596_v49 = vld [vmem:[#allocation8 + $0x80] ss:$16 sps:$4 sm:$0xff]  }
 0x31c   : > { %5312 = vmatpush2.bf16.msra.mxu0 %v8545_v22  ;;  %v8685_v22 = vld [vmem:[#allocation8 + $0x2e4] ss:$16 sps:$4 sm:$0xff]  }
 0x31d   : > { %5355 = vmatpush2.bf16.msra.mxu1 %v8548_v24  ;;  %5313 = vmatprep.subr.bf16.mxu0 %v8553_v31  ;;  %v8688_v24 = vld [vmem:[#allocation8 + $0x2c4] ss:$16 sps:$4 sm:$0xff]  }
 0x31e   : > { %5356 = vmatprep.subr.bf16.mxu1 %v8556_v32  ;;  %v8691_v31 = vld [vmem:[#allocation8 + $0x2a4] ss:$16 sps:$4 sm:$0xff]  }
 0x31f   : > { %v8604_v32 = vld [vmem:[#allocation8 + $0x44] ss:$16 sps:$4 sm:$0xff]  }
 0x320   : > { %5314 = vmatpush2.bf16.msra.mxu0 %v8551_v40  ;;  %v8602_v40 = vld [vmem:[#allocation8 + $0x40] ss:$16 sps:$4 sm:$0xff]  }
 0x321   : > { %5357 = vmatpush2.bf16.msra.mxu1 %v8554_v42  ;;  %5315 = vmatprep.subr.bf16.mxu0 %v8559_v47  ;;  %v8607_v42 = vld [vmem:[#allocation8 + $0x24] ss:$16 sps:$4 sm:$0xff]   ;;  %v8692_v47 = vld [vmem:[#allocation8 + $0x280] ss:$16 sps:$4 sm:$0xff]  }
 0x322   : > { %5358 = vmatprep.subr.bf16.mxu1 %v8562_v52  ;;  %v8605_v52 = vld [vmem:[#allocation8 + $0x20] ss:$16 sps:$4 sm:$0xff]  }
 0x324   : > { %5316 = vmatpush2.bf16.msra.mxu0 %v8557_v38  ;;  %v8695_v38 = vld [vmem:[#allocation8 + $0x260] ss:$16 sps:$4 sm:$0xff]  }
 0x325   : > { %5359 = vmatpush2.bf16.msra.mxu1 %v8560_v23  ;;  %5317 = vmatprep.subr.bf16.mxu0 %v8565_v39  ;;  %v8700_v23 = vld [vmem:[#allocation8 + $0x244] ss:$16 sps:$4 sm:$0xff]  }
 0x326   : > { %5360 = vmatprep.subr.bf16.mxu1 %v8568_v56  ;;  %v8613_v39 = vld [vmem:[#allocation8 + $0x1e4] ss:$16 sps:$4 sm:$0xff]   ;;  %v8698_v56 = vld [vmem:[#allocation8 + $0x240] ss:$16 sps:$4 sm:$0xff]  }
 0x328   : > { %5318 = vmatpush2.bf16.msra.mxu0 %v8563_v44  ;;  %v8703_v44 = vld [vmem:[#allocation8 + $0x224] ss:$16 sps:$4 sm:$0xff]  }
 0x329   : > { %5361 = vmatpush2.bf16.msra.mxu1 %v8566_v50  ;;  %5319 = vmatprep.subr.bf16.mxu0 %v8571_v46  ;;  %v8614_v50 = vld [vmem:[#allocation8 + $0x1c0] ss:$16 sps:$4 sm:$0xff]   ;;  %v8706_v46 = vld [vmem:[#allocation8 + $0x204] ss:$16 sps:$4 sm:$0xff]  }
 0x32a   : > { %5362 = vmatprep.subr.bf16.mxu1 %v8574_v61  ;;  %v8619_v61 = vld [vmem:[#allocation8 + $0x1a4] ss:$16 sps:$4 sm:$0xff]  }
 0x32c   : > { %5320 = vmatpush2.bf16.msra.mxu0 %v8569_v54  ;;  %v8709_v54 = vld [vmem:[#allocation8 + $0x3e4] ss:$16 sps:$4 sm:$0xff]  }
 0x32d   : > { %5363 = vmatpush2.bf16.msra.mxu1 %v8572_v37  ;;  %5321 = vmatprep.subr.bf16.mxu0 %v8577_v55  ;;  %v8707_v37 = vld [vmem:[#allocation8 + $0x3e0] ss:$16 sps:$4 sm:$0xff]  }
 0x32e   : > { %5364 = vmatprep.subr.bf16.mxu1 %v8580_v51  ;;  %v8620_v55 = vld [vmem:[#allocation8 + $0x180] ss:$16 sps:$4 sm:$0xff]   ;;  %v8712_v51 = vld [vmem:[#allocation8 + $0x3c4] ss:$16 sps:$4 sm:$0xff]  }
 0x330   : > { %5322 = vmatpush2.bf16.msra.mxu0 %v8575_v58  ;;  %v8623_v58 = vld [vmem:[#allocation8 + $0x160] ss:$16 sps:$4 sm:$0xff]  }
 0x331   : > { %5365 = vmatpush2.bf16.msra.mxu1 %v8578_v45  ;;  %5323 = vmatprep.subr.bf16.mxu0 %v8583_v59  ;;  %v8628_v45 = vld [vmem:[#allocation8 + $0x144] ss:$16 sps:$4 sm:$0xff]   ;;  %v8713_v59 = vld [vmem:[#allocation8 + $0x3a0] ss:$16 sps:$4 sm:$0xff]  }
 0x332   : > { %5366 = vmatprep.subr.bf16.mxu1 %v8586_v5  ;;  %v8718_v5 = vld [vmem:[#allocation8 + $0x384] ss:$16 sps:$4 sm:$0xff]  }
 0x334   : > { %5324 = vmatpush2.bf16.msra.mxu0 %v8581_v60  ;;  %v8716_v60 = vld [vmem:[#allocation8 + $0x380] ss:$16 sps:$4 sm:$0xff]  }
 0x335   : > { %5367 = vmatpush2.bf16.msra.mxu1 %v8584_v6  ;;  %6182 = vmatprep.subr.bf16.mxu0 %v8589_v11  ;;  %v8721_v6 = vld [vmem:[#allocation8 + $0x364] ss:$16 sps:$4 sm:$0xff]  }
 0x336   : > { %6225 = vmatprep.subr.bf16.mxu1 %v8685_v22  ;;  %v8634_v11 = vld [vmem:[#allocation8 + $0x104] ss:$16 sps:$4 sm:$0xff]   ;;  %v8646_v22 = vld [vmem:[#allocation8 + $0x8c] ss:$16 sps:$4 sm:$0xff]  }
 0x337   : > { %5326 = vmatmul.mubr.bf16.vlgmr.msra.gmra.mxu0 %v9416_v27  ;;  %v8686_v27 = vld [vmem:[#allocation8 + $0x2c0] ss:$16 sps:$4 sm:$0xff]  }
 0x338   : > { %5369 = vmatmul.mubr.bf16.vlgmr.msra.gmra.mxu1 %v9418_v28  ;;  %6183 = vmatpush1.bf16.msra.mxu0 %v8587_v29  ;;  %v8599_v28 = vld [vmem:[#allocation8 + $0x60] ss:$16 sps:$4 sm:$0xff]  }
 0x339   : > { %6214 = vmatprep.mubr.bf16.mxu0 %v9531_v53  ;;  %6184 = vmatprep.subr.bf16.mxu0 %v8592_v2  ;;  %v8632_v29 = vld [vmem:[#allocation8 + $0x100] ss:$16 sps:$4 sm:$0xff]   ;;  %v8635_v2 = vld [vmem:[#allocation8 + $0xe8] ss:$16 sps:$4 sm:$0xff]  }
 0x33a   : > { %6226 = vmatpush1.bf16.msra.mxu1 %v8683_v8  ;;  %v8641_v8 = vld [vmem:[#allocation8 + $0xa8] ss:$16 sps:$4 sm:$0xff]  }
 0x33b   : > { %6227 = vmatprep.subr.bf16.mxu1 %v8688_v24  ;;  %v8725_v24 = vld [vmem:[#allocation8 + $0x320] ss:$16 sps:$4 sm:$0xff]  }
 0x33c   : > { %6185 = vmatpush1.bf16.msra.mxu0 %v8590_v35  ;;  %v8640_v35 = vld [vmem:[#allocation8 + $0xcc] ss:$16 sps:$4 sm:$0xff]  }
 0x33d   : > { %6186 = vmatprep.subr.bf16.mxu0 %v8595_v3  ;;  %v8638_v3 = vld [vmem:[#allocation8 + $0xc8] ss:$16 sps:$4 sm:$0xff]  }
 0x33e   : > { %6228 = vmatpush1.bf16.msra.mxu1 %v8686_v27  ;;  %v8644_v27 = vld [vmem:[#allocation8 + $0x88] ss:$16 sps:$4 sm:$0xff]  }
 0x33f   : > { %6229 = vmatprep.subr.bf16.mxu1 %v8691_v31  ;;  %v8728_v31 = vld [vmem:[#allocation8 + $0x300] ss:$16 sps:$4 sm:$0xff]  }
 0x340   : > { %6187 = vmatpush1.bf16.msra.mxu0 %v8593_v0  ;;  %v8643_v0 = vld [vmem:[#allocation8 + $0xac] ss:$16 sps:$4 sm:$0xff]  }
 0x341   : > { %6188 = vmatprep.subr.bf16.mxu0 %v8598_v10  ;;  %v8724_v10 = vld [vmem:[#allocation8 + $0x344] ss:$16 sps:$4 sm:$0xff]  }
 0x342   : > { %6230 = vmatpush1.bf16.msra.mxu1 %v8689_v33  ;;  %v8652_v33 = vld [vmem:[#allocation8 + $0x4c] ss:$16 sps:$4 sm:$0xff]  }
 0x343   : > { %6231 = vmatprep.subr.bf16.mxu1 %v8694_v21  ;;  %v8650_v21 = vld [vmem:[#allocation8 + $0x48] ss:$16 sps:$4 sm:$0xff]  }
 0x344   : > { %6189 = vmatpush1.bf16.msra.mxu0 %v8596_v49  ;;  %v8722_v49 = vld [vmem:[#allocation8 + $0x340] ss:$16 sps:$4 sm:$0xff]  }
 0x345   : > { %6190 = vmatprep.subr.bf16.mxu0 %v8601_v36  ;;  %v8727_v36 = vld [vmem:[#allocation8 + $0x324] ss:$16 sps:$4 sm:$0xff]  }
 0x346   : > { %6232 = vmatpush1.bf16.msra.mxu1 %v8692_v47  ;;  %v8653_v47 = vld [vmem:[#allocation8 + $0x28] ss:$16 sps:$4 sm:$0xff]  }
 0x347   : > { %6233 = vmatprep.subr.bf16.mxu1 %v8697_v30  ;;  %v8656_v30 = vld [vmem:[#allocation8 + $0x8] ss:$16 sps:$4 sm:$0xff]  }
 0x348   : > { %6191 = vmatpush1.bf16.msra.mxu0 %v8599_v28  ;;  %v8649_v28 = vld [vmem:[#allocation8 + $0x6c] ss:$16 sps:$4 sm:$0xff]  }
 0x349   : > { %6192 = vmatprep.subr.bf16.mxu0 %v8604_v32  ;;  %v8647_v32 = vld [vmem:[#allocation8 + $0x68] ss:$16 sps:$4 sm:$0xff]  }
 0x34a   : > { %6234 = vmatpush1.bf16.msra.mxu1 %v8695_v38  ;;  %v8659_v38 = vld [vmem:[#allocation8 + $0x1e8] ss:$16 sps:$4 sm:$0xff]  }
 0x34b   : > { %6235 = vmatprep.subr.bf16.mxu1 %v8700_v23  ;;  %v8662_v23 = vld [vmem:[#allocation8 + $0x1c8] ss:$16 sps:$4 sm:$0xff]  }
 0x34c   : > { %6193 = vmatpush1.bf16.msra.mxu0 %v8602_v40  ;;  %v8733_v40 = vld [vmem:[#allocation8 + $0x2ec] ss:$16 sps:$4 sm:$0xff]  }
 0x34d   : > { %6194 = vmatprep.subr.bf16.mxu0 %v8607_v42  ;;  %v8655_v42 = vld [vmem:[#allocation8 + $0x2c] ss:$16 sps:$4 sm:$0xff]  }
 0x34e   : > { %6236 = vmatpush1.bf16.msra.mxu1 %v8698_v56  ;;  %v8665_v56 = vld [vmem:[#allocation8 + $0x1a8] ss:$16 sps:$4 sm:$0xff]  }
 0x34f   : > { %6237 = vmatprep.subr.bf16.mxu1 %v8703_v44  ;;  %v8668_v44 = vld [vmem:[#allocation8 + $0x188] ss:$16 sps:$4 sm:$0xff]  }
 0x350   : > { %6195 = vmatpush1.bf16.msra.mxu0 %v8605_v52  ;;  %v8658_v52 = vld [vmem:[#allocation8 + $0xc] ss:$16 sps:$4 sm:$0xff]  }
 0x351   : > { %6196 = vmatprep.subr.bf16.mxu0 %v8610_v43  ;;  %v8661_v43 = vld [vmem:[#allocation8 + $0x1ec] ss:$16 sps:$4 sm:$0xff]  }
 0x352   : > { %6238 = vmatpush1.bf16.msra.mxu1 %v8701_v41  ;;  %v8671_v41 = vld [vmem:[#allocation8 + $0x168] ss:$16 sps:$4 sm:$0xff]  }
 0x353   : > { %6239 = vmatprep.subr.bf16.mxu1 %v8706_v46  ;;  %v8674_v46 = vld [vmem:[#allocation8 + $0x148] ss:$16 sps:$4 sm:$0xff]  }
 0x354   : > { %6197 = vmatpush1.bf16.msra.mxu0 %v8608_v57  ;;  %v8664_v57 = vld [vmem:[#allocation8 + $0x1cc] ss:$16 sps:$4 sm:$0xff]  }
 0x355   : > { %6198 = vmatprep.subr.bf16.mxu0 %v8613_v39  ;;  %v8667_v39 = vld [vmem:[#allocation8 + $0x1ac] ss:$16 sps:$4 sm:$0xff]  }
 0x356   : > { %6240 = vmatpush1.bf16.msra.mxu1 %v8704_v48  ;;  %v8677_v48 = vld [vmem:[#allocation8 + $0x128] ss:$16 sps:$4 sm:$0xff]  }
 0x357   : > { %6241 = vmatprep.subr.bf16.mxu1 %v8709_v54  ;;  %v8680_v54 = vld [vmem:[#allocation8 + $0x108] ss:$16 sps:$4 sm:$0xff]  }
 0x358   : > { %6199 = vmatpush2.bf16.msra.mxu0 %v8611_v17  ;;  %v8670_v17 = vld [vmem:[#allocation8 + $0x18c] ss:$16 sps:$4 sm:$0xff]  }
 0x359   : > { %6200 = vmatprep.subr.bf16.mxu0 %v8616_v9  ;;  %v8673_v9 = vld [vmem:[#allocation8 + $0x16c] ss:$16 sps:$4 sm:$0xff]  }
 0x35a   : > { %6242 = vmatpush2.bf16.msra.mxu1 %v8707_v37  ;;  %v5112_v37 = vpop.f32.mrf.mxu1 }
 0x35b   : > { %6243 = vmatprep.subr.bf16.mxu1 %v8712_v51 }
 0x35c   : > { %6201 = vmatpush2.bf16.msra.mxu0 %v8614_v50  ;;  %v8676_v50 = vld [vmem:[#allocation8 + $0x14c] ss:$16 sps:$4 sm:$0xff]   ;;  %v5114_v51 = vpop.f32.mrf.mxu1 }
 0x35d   : > { %6202 = vmatprep.subr.bf16.mxu0 %v8619_v61  ;;  %v8679_v61 = vld [vmem:[#allocation8 + $0x12c] ss:$16 sps:$4 sm:$0xff]  }
 0x35e   : > { %6244 = vmatpush2.bf16.msra.mxu1 %v8710_v14  ;;  %v5116_v14 = vpop.f32.mrf.mxu1 }
 0x35f   : > { %6245 = vmatprep.subr.bf16.mxu1 %v8715_v13 }
 0x360   : > { %6203 = vmatpush2.bf16.msra.mxu0 %v8617_v25  ;;  %v8682_v25 = vld [vmem:[#allocation8 + $0x10c] ss:$16 sps:$4 sm:$0xff]   ;;  %v5118_v13 = vpop.f32.mrf.mxu1 }
 0x361   : > { %6204 = vmatprep.subr.bf16.mxu0 %v8622_v7  ;;  %v5069_v7 = vpop.f32.mrf.mxu0 }
 0x362   : > { %6246 = vmatpush2.bf16.msra.mxu1 %v8713_v59 }
 0x363   : > { %6247 = vmatprep.subr.bf16.mxu1 %v8718_v5 }
 0x364   : > { %6205 = vmatpush2.bf16.msra.mxu0 %v8620_v55  ;;  %v5071_v55 = vpop.f32.mrf.mxu0 }
 0x365   : > { %6206 = vmatprep.subr.bf16.mxu0 %v8625_v4 }
 0x366   : > { %6248 = vmatpush2.bf16.msra.mxu1 %v8716_v60  ;;  %v5073_v4 = vpop.f32.mrf.mxu0  ;;  %v2126_v60 = vrot.slane %v9513_v15, %v9321_v19 }
 0x367   : > { %6249 = vmatprep.subr.bf16.mxu1 %v8721_v6 }
 0x368   : > { %6207 = vmatpush2.bf16.msra.mxu0 %v8623_v58  ;;  %v5075_v58 = vpop.f32.mrf.mxu0 }
 0x369   : > { %6208 = vmatprep.subr.bf16.mxu0 %v8628_v45 }
 0x36a   : > { %6250 = vmatpush2.bf16.msra.mxu1 %v8719_v63 }
 0x36b   : > { %6251 = vmatprep.subr.bf16.mxu1 %v8724_v10 }
 0x36c   : > { %6209 = vmatpush2.bf16.msra.mxu0 %v8626_v26 }
 0x36d   : > { %6210 = vmatprep.subr.bf16.mxu0 %v8631_v34 }
 0x36e   : > { %6252 = vmatpush2.bf16.msra.mxu1 %v8722_v49 }
 0x36f   : > { %6253 = vmatprep.subr.bf16.mxu1 %v8727_v36 }
 0x370   : > { %6211 = vmatpush2.bf16.msra.mxu0 %v8629_v62 }
 0x371   : > { %6212 = vmatprep.subr.bf16.mxu0 %v8634_v11  ;;  %v5072_v11 = vadd.f32 %v5071_v55, %v2126_v60 }
 0x372   : > { %6254 = vmatpush2.bf16.msra.mxu1 %v8725_v24 }
 0x374   : > { %6213 = vmatpush2.bf16.msra.mxu0 %v8632_v29 }
 0x375   : > { %6268 = vmatprep.subr.bf16.mxu0 %v8637_v12 }
 0x377   : > { %6215 = vmatmul.mubr.bf16.vlgmr.msra.gmra.mxu0 %v9511_v1  ;;  %v5155_v45 = vpop.f32.mrf.mxu0 }
 0x378   : > { %6269 = vmatpush1.bf16.msra.mxu0 %v8635_v2  ;;  %6300 = vmatprep.mubr.bf16.mxu0 %v9531_v53  ;;  %v8730_v53 = vld [vmem:[#allocation8 + $0x304] ss:$16 sps:$4 sm:$0xff]   ;;  %v5198_v59 = vpop.f32.mrf.mxu1 }
 0x379   : > { %6270 = vmatprep.subr.bf16.mxu0 %v8640_v35  ;;  %6255 = vmatprep.subr.bf16.mxu1 %v8730_v53  ;;  %v5157_v26 = vpop.f32.mrf.mxu0 }
 0x37a   : > { %6256 = vmatpush2.bf16.msra.mxu1 %v8728_v31  ;;  %v5200_v5 = vpop.f32.mrf.mxu1 }
 0x37b   : > { %6311 = vmatprep.subr.bf16.mxu1 %v8733_v40  ;;  %v5159_v34 = vpop.f32.mrf.mxu0 }
 0x37c   : > { %6271 = vmatpush1.bf16.msra.mxu0 %v8638_v3  ;;  %v5202_v62 = vpop.f32.mrf.mxu1  ;;  %v5115_v3 = vadd.f32 %v5114_v51, %v5072_v11  ;;  %v8779_v51 = vld [vmem:[#allocation10 + $0x78] sm:$0xff]  }
 0x37d   : > { %6272 = vmatprep.subr.bf16.mxu0 %v8643_v0  ;;  %v5161_v6 = vpop.f32.mrf.mxu0  ;;  %v5076_v0 = vadd.f32 %v5075_v58, %v2126_v60  ;;  %v8783_v60 = vld [vmem:[#allocation10 + $0x68] sm:$0xff]  }
 0x37e   : > { %v5204_v63 = vpop.f32.mrf.mxu1 }
 0x380   : > { %6273 = vmatpush1.bf16.msra.mxu0 %v8641_v8 }
 0x381   : > { %6274 = vmatprep.subr.bf16.mxu0 %v8646_v22  ;;  %v5158_v22 = vadd.f32 %v5157_v26, %v5115_v3  ;;  %v8782_v26 = vld [vmem:[#allocation10 + $0x30] sm:$0xff]   ;;  %v8786_v3 = vld [vmem:[#allocation10 + $0x20] sm:$0xff]  }
 0x383   : > { %v5201_v31 = vadd.f32 %v5200_v5, %v5158_v22  ;;  %v8740_v22 = vld [vmem:[#allocation8 + $0x288] ss:$16 sps:$4 sm:$0xff]  }
 0x384   : > { %6275 = vmatpush1.bf16.msra.mxu0 %v8644_v27  ;;  %v5119_v27 = vadd.f32 %v5118_v13, %v5076_v0  ;;  %v8787_v0 = vld [vmem:[#allocation10 + $0x58] sm:$0xff]  }
 0x385   : > { %6276 = vmatprep.subr.bf16.mxu0 %v8649_v28 }
 0x388   : > { %6277 = vmatpush1.bf16.msra.mxu0 %v8647_v32 }
 0x389   : > { %6278 = vmatprep.subr.bf16.mxu0 %v8652_v33 }
 0x38c   : > { %6279 = vmatpush1.bf16.msra.mxu0 %v8650_v21 }
 0x38d   : > { %6280 = vmatprep.subr.bf16.mxu0 %v8655_v42 }
 0x390   : > { %6281 = vmatpush1.bf16.msra.mxu0 %v8653_v47 }
 0x391   : > { %6282 = vmatprep.subr.bf16.mxu0 %v8658_v52 }
 0x394   : > { %6283 = vmatpush1.bf16.msra.mxu0 %v8656_v30 }
 0x395   : > { %6284 = vmatprep.subr.bf16.mxu0 %v8661_v43 }
 0x398   : > { %6285 = vmatpush2.bf16.msra.mxu0 %v8659_v38 }
 0x399   : > { %6286 = vmatprep.subr.bf16.mxu0 %v8664_v57 }
 0x39c   : > { %6287 = vmatpush2.bf16.msra.mxu0 %v8662_v23 }
 0x39d   : > { %6288 = vmatprep.subr.bf16.mxu0 %v8667_v39 }
 0x3a0   : > { %6289 = vmatpush2.bf16.msra.mxu0 %v8665_v56 }
 0x3a1   : > { %6290 = vmatprep.subr.bf16.mxu0 %v8670_v17 }
 0x3a4   : > { %6291 = vmatpush2.bf16.msra.mxu0 %v8668_v44 }
 0x3a5   : > { %6292 = vmatprep.subr.bf16.mxu0 %v8673_v9 }
 0x3a8   : > { %6293 = vmatpush2.bf16.msra.mxu0 %v8671_v41 }
 0x3a9   : > { %6294 = vmatprep.subr.bf16.mxu0 %v8676_v50 }
 0x3ac   : > { %6295 = vmatpush2.bf16.msra.mxu0 %v8674_v46 }
 0x3ad   : > { %6296 = vmatprep.subr.bf16.mxu0 %v8679_v61 }
 0x3b0   : > { %6297 = vmatpush2.bf16.msra.mxu0 %v8677_v48 }
 0x3b1   : > { %6298 = vmatprep.subr.bf16.mxu0 %v8682_v25 }
 0x3b4   : > { %6299 = vmatpush2.bf16.msra.mxu0 %v8680_v54 }
 0x3b5   : > { %7668 = vmatprep.subr.bf16.mxu0 %v8779_v51  ;;  %v8799_v51 = vld [vmem:[#allocation10 + $0xe8] sm:$0xff]  }
 0x3b7   : > { %6301 = vmatmul.mubr.bf16.vlgmr.msra.gmra.mxu0 %v9511_v1  ;;  %v2122_v1 = vrot.slane %v9513_v15, %v9324_v20  ;;  %v5241_v12 = vpop.f32.mrf.mxu0  ;;  %v5162_v15 = vadd.f32 %v5161_v6, %v5119_v27  ;;  %v8731_v6 = vld [vmem:[#allocation8 + $0x2e8] ss:$16 sps:$4 sm:$0xff]   ;;  %v8748_v27 = vld [vmem:[#allocation8 + $0x24c] ss:$16 sps:$4 sm:$0xff]  }
 0x3b8   : > { %v5284_v35 = vpop.f32.mrf.mxu1 }
 0x3b9   : > { %v5070_v29 = vadd.f32 %v5069_v7, %v2122_v1  ;;  %v5074_v2 = vadd.f32 %v5073_v4, %v2122_v1  ;;  %v5243_v49 = vpop.f32.mrf.mxu0  ;;  %v5205_v52 = vadd.f32 %v5204_v63, %v5162_v15  ;;  %v8780_v4 = vld [vmem:[#allocation10 + $0x38] sm:$0xff]  }
 0x3ba   : > { %v5286_v36 = vpop.f32.mrf.mxu1  ;;  %v5244_v21 = vadd.f32 %v5243_v49, %v5201_v31  ;;  %7669 = vmatpush3.bf16.msra.mxu0 %v8780_v4  ;;  %v8736_v63 = vld [vmem:[#allocation8 + $0x2cc] ss:$16 sps:$4 sm:$0xff]   ;;  %v8749_v31 = vld [vmem:[#allocation8 + $0x228] ss:$16 sps:$4 sm:$0xff]  }
 0x3bb   : > { %v5113_v10 = vadd.f32 %v5112_v37, %v5070_v29  ;;  %v5117_v8 = vadd.f32 %v5116_v14, %v5074_v2  ;;  %v5245_v53 = vpop.f32.mrf.mxu0  ;;  %v8781_v14 = vld [vmem:[#allocation10 + $0x70] sm:$0xff]   ;;  %v8784_v29 = vld [vmem:[#allocation10 + $0x28] sm:$0xff]  }
 0x3bc   : > { %v5288_v32 = vpop.f32.mrf.mxu1  ;;  %v5287_v57 = vadd.f32 %v5286_v36, %v5244_v21  ;;  %7670 = vmatprep.subr.bf16.mxu0 %v8781_v14  ;;  %v8734_v2 = vld [vmem:[#allocation8 + $0x2c8] ss:$16 sps:$4 sm:$0xff]   ;;  %v8742_v49 = vld [vmem:[#allocation8 + $0x28c] ss:$16 sps:$4 sm:$0xff]   ;;  %v8801_v14 = vld [vmem:[#allocation10 + $0xe0] sm:$0xff]  }
 0x3bd   : > { %v5156_v24 = vadd.f32 %v5155_v45, %v5113_v10  ;;  %v5160_v28 = vadd.f32 %v5159_v34, %v5117_v8  ;;  %v5247_v47 = vpop.f32.mrf.mxu0  ;;  %v8737_v10 = vld [vmem:[#allocation8 + $0x2a8] ss:$16 sps:$4 sm:$0xff]   ;;  %v8745_v36 = vld [vmem:[#allocation8 + $0x26c] ss:$16 sps:$4 sm:$0xff]  }
 0x3be   : > { %v5290_v43 = vpop.f32.mrf.mxu1  ;;  %v5248_v23 = vadd.f32 %v5247_v47, %v5205_v52  ;;  %7671 = vmatpush3.bf16.msra.mxu0 %v8782_v26  ;;  %v8788_v8 = vld [vmem:[#allocation10 + $0x18] sm:$0xff]   ;;  %v8800_v4 = vld [vmem:[#allocation10 + $0xa8] sm:$0xff]   ;;  %v8806_v26 = vld [vmem:[#allocation10 + $0x90] sm:$0xff]  }
 0x3bf   : > { %v5199_v33 = vadd.f32 %v5198_v59, %v5156_v24  ;;  %v5203_v40 = vadd.f32 %v5202_v62, %v5160_v28  ;;  %7672 = vmatprep.subr.bf16.mxu0 %v8783_v60  ;;  %v8743_v24 = vld [vmem:[#allocation8 + $0x268] ss:$16 sps:$4 sm:$0xff]   ;;  %v8754_v15 = vld [vmem:[#allocation8 + $0x20c] ss:$16 sps:$4 sm:$0xff]   ;;  %v8809_v60 = vld [vmem:[#allocation10 + $0xc0] sm:$0xff]  }
 0x3c0   : > { %v5291_v61 = vadd.f32 %v5290_v43, %v5248_v23  ;;  %v8746_v28 = vld [vmem:[#allocation8 + $0x248] ss:$16 sps:$4 sm:$0xff]   ;;  %v8760_v21 = vld [vmem:[#allocation8 + $0x3cc] ss:$16 sps:$4 sm:$0xff]  }
 0x3c1   : > { %v5242_v42 = vadd.f32 %v5241_v12, %v5199_v33  ;;  %v5246_v30 = vadd.f32 %v5245_v53, %v5203_v40  ;;  %v8785_v12 = vld [vmem:[#allocation10 + $0x60] sm:$0xff]   ;;  %v8751_v53 = vld [vmem:[#allocation8 + $0x22c] ss:$16 sps:$4 sm:$0xff]   ;;  %v8755_v40 = vld [vmem:[#allocation8 + $0x3e8] ss:$16 sps:$4 sm:$0xff]  }
 0x3c2   : > { %7673 = vmatpush3.bf16.msra.mxu0 %v8784_v29  ;;  %v8757_v33 = vld [vmem:[#allocation8 + $0x3ec] ss:$16 sps:$4 sm:$0xff]   ;;  %v8761_v52 = vld [vmem:[#allocation8 + $0x3a8] ss:$16 sps:$4 sm:$0xff]  }
 0x3c3   : > { %v5285_v56 = vadd.f32 %v5284_v35, %v5242_v42  ;;  %v5289_v44 = vadd.f32 %v5288_v32, %v5246_v30  ;;  %v8739_v35 = vld [vmem:[#allocation8 + $0x2ac] ss:$16 sps:$4 sm:$0xff]   ;;  %7674 = vmatprep.subr.bf16.mxu0 %v8785_v12  ;;  %v8752_v32 = vld [vmem:[#allocation8 + $0x208] ss:$16 sps:$4 sm:$0xff]  }
 0x3c4   : > { %v8758_v42 = vld [vmem:[#allocation8 + $0x3c8] ss:$16 sps:$4 sm:$0xff]   ;;  %v8763_v47 = vld [vmem:[#allocation8 + $0x3ac] ss:$16 sps:$4 sm:$0xff]  }
 0x3c5   : > { %v8766_v30 = vld [vmem:[#allocation8 + $0x38c] ss:$16 sps:$4 sm:$0xff]   ;;  %v8764_v43 = vld [vmem:[#allocation8 + $0x388] ss:$16 sps:$4 sm:$0xff]  }
 0x3c6   : > { %7675 = vmatpush3.bf16.msra.mxu0 %v8786_v3  ;;  %v8772_v23 = vld [vmem:[#allocation8 + $0x34c] ss:$16 sps:$4 sm:$0xff]  }
 0x3c7   : > { %7676 = vmatprep.subr.bf16.mxu0 %v8787_v0 }
 0x3ca   : > { %7677 = vmatpush3.bf16.msra.mxu0 %v8788_v8 }
 0x3f7   : > { %v5327_v38 = vpop.f32.mrf.mxu0 }
 0x3f8   : > { %v5370_v39 = vpop.f32.mrf.mxu1  ;;  %v5328_v50 = vadd.f32 %v5327_v38, %v5285_v56  ;;  %v8769_v38 = vld [vmem:[#allocation8 + $0x36c] ss:$16 sps:$4 sm:$0xff]  }
 0x3f9   : > { %v5329_v17 = vpop.f32.mrf.mxu0  ;;  %v8775_v56 = vld [vmem:[#allocation8 + $0x32c] ss:$16 sps:$4 sm:$0xff]  }
 0x3fa   : > { %v5330_v9 = vadd.f32 %v5329_v17, %v5287_v57  ;;  %v5372_v41 = vpop.f32.mrf.mxu1  ;;  %v5371_v58 = vadd.f32 %v5370_v39, %v5328_v50  ;;  %v8767_v57 = vld [vmem:[#allocation8 + $0x368] ss:$16 sps:$4 sm:$0xff]   ;;  %v8790_v50 = vld [vmem:[#allocation10 + $0x10] sm:$0xff]  }
 0x3fb   : > { %v5331_v46 = vpop.f32.mrf.mxu0  ;;  %v8770_v39 = vld [vmem:[#allocation8 + $0x348] ss:$16 sps:$4 sm:$0xff]  }
 0x3fc   : > { %v5332_v48 = vadd.f32 %v5331_v46, %v5289_v44  ;;  %v5374_v25 = vpop.f32.mrf.mxu1  ;;  %v5373_v7 = vadd.f32 %v5372_v41, %v5330_v9  ;;  %v5381_v62 = vmax.f32 %v5371_v58, 0.0  ;;  %v8773_v17 = vld [vmem:[#allocation8 + $0x328] ss:$16 sps:$4 sm:$0xff]   ;;  %v8778_v44 = vld [vmem:[#allocation8 + $0x30c] ss:$16 sps:$4 sm:$0xff]   ;;  %v8789_v41 = vld [vmem:[#allocation10 + $0x50] sm:$0xff]  }
 0x3fd   : > { %v5333_v54 = vpop.f32.mrf.mxu0  ;;  %v8776_v9 = vld [vmem:[#allocation8 + $0x308] ss:$16 sps:$4 sm:$0xff]   ;;  %7678 = vmatprep.subr.bf16.mxu0 %v8789_v41  ;;  %v8802_v58 = vld [vmem:[#allocation10 + $0xa0] sm:$0xff]  }
 0x3fe   : > { %v5375_v37 = vadd.f32 %v5374_v25, %v5332_v48  ;;  %v5334_v55 = vadd.f32 %v5333_v54, %v5291_v61  ;;  %v5376_v13 = vpop.f32.mrf.mxu1  ;;  %v5382_v5 = vmax.f32 %v5373_v7, 0.0  ;;  %7679 = vmatpush3.bf16.msra.mxu0 %v8790_v50  ;;  %v8791_v46 = vld [vmem:[#allocation10 + $0x48] sm:$0xff]   ;;  %v8793_v48 = vld [vmem:[#allocation10 + $0x40] sm:$0xff]   ;;  %v8795_v54 = vld [vmem:[#allocation10 + $0xf8] sm:$0xff]  }
 0x3ff   : > { %v8792_v61 = vld [vmem:[#allocation10 + $0x8] sm:$0xff]   ;;  %7680 = vmatprep.subr.bf16.mxu0 %v8791_v46  ;;  %v8794_v25 = vld [vmem:[#allocation10] sm:$0xff]   ;;  %v8796_v7 = vld [vmem:[#allocation10 + $0xb8] sm:$0xff]  }
 0x400   : > { %v5377_v45 = vadd.f32 %v5376_v13, %v5334_v55  ;;  %v5385_v59 = vmax.f32 %v5375_v37, 0.0  ;;  %v8797_v37 = vld [vmem:[#allocation10 + $0xf0] sm:$0xff]   ;;  %v8803_v13 = vld [vmem:[#allocation10 + $0xd8] sm:$0xff]  }
 0x401   : > { %v8798_v55 = vld [vmem:[#allocation10 + $0xb0] sm:$0xff]  }
 0x402   : > { %v5386_v34 = vmax.f32 %v5377_v45, 0.0  ;;  %v9543_v11 = vpack.c.bf16 %v5385_v59, %v5381_v62  ;;  %7681 = vmatpush3.bf16.msra.mxu0 %v8792_v61  ;;  %v8804_v45 = vld [vmem:[#allocation10 + $0x98] sm:$0xff]   ;;  %v8805_v59 = vld [vmem:[#allocation10 + $0xd0] sm:$0xff]   ;;  %v8810_v62 = vld [vmem:[#allocation10 + $0x80] sm:$0xff]  }
 0x403   : > { %7682 = vmatprep.subr.bf16.mxu0 %v8793_v48 }
 0x404   : > { %v5390_v1 = vpack.c.bf16 %v5386_v34, %v5382_v5  ;;  %v8807_v5 = vld [vmem:[#allocation10 + $0xc8] sm:$0xff]  }
 0x405   : > { %v8808_v34 = vld [vmem:[#allocation10 + $0x88] sm:$0xff]  }
 0x406   : > { %6257 = vmatprep.mubr.bf16.mxu1 %v5390_v1  ;;  %7683 = vmatpush3.bf16.msra.mxu0 %v8794_v25 }
 0x407   : > { %6258 = vmatmul.mubr.bf16.vlgmr.msra.gmra.mxu1 %v9543_v11 }
 0x408   : > { %6312 = vmatpush1.bf16.msra.mxu1 %v8731_v6  ;;  %6343 = vmatprep.mubr.bf16.mxu1 %v5390_v1 }
 0x409   : > { %6313 = vmatprep.subr.bf16.mxu1 %v8736_v63 }
 0x40c   : > { %6314 = vmatpush1.bf16.msra.mxu1 %v8734_v2 }
 0x40d   : > { %6315 = vmatprep.subr.bf16.mxu1 %v8739_v35 }
 0x410   : > { %6316 = vmatpush1.bf16.msra.mxu1 %v8737_v10 }
 0x411   : > { %6317 = vmatprep.subr.bf16.mxu1 %v8742_v49 }
 0x414   : > { %6318 = vmatpush1.bf16.msra.mxu1 %v8740_v22 }
 0x415   : > { %6319 = vmatprep.subr.bf16.mxu1 %v8745_v36 }
 0x418   : > { %6320 = vmatpush1.bf16.msra.mxu1 %v8743_v24 }
 0x419   : > { %6321 = vmatprep.subr.bf16.mxu1 %v8748_v27 }
 0x41c   : > { %6322 = vmatpush1.bf16.msra.mxu1 %v8746_v28 }
 0x41d   : > { %6323 = vmatprep.subr.bf16.mxu1 %v8751_v53 }
 0x420   : > { %6324 = vmatpush1.bf16.msra.mxu1 %v8749_v31 }
 0x421   : > { %6325 = vmatprep.subr.bf16.mxu1 %v8754_v15 }
 0x424   : > { %6326 = vmatpush1.bf16.msra.mxu1 %v8752_v32 }
 0x425   : > { %6327 = vmatprep.subr.bf16.mxu1 %v8757_v33 }
 0x428   : > { %6328 = vmatpush2.bf16.msra.mxu1 %v8755_v40 }
 0x429   : > { %6329 = vmatprep.subr.bf16.mxu1 %v8760_v21 }
 0x42c   : > { %6330 = vmatpush2.bf16.msra.mxu1 %v8758_v42 }
 0x42d   : > { %6331 = vmatprep.subr.bf16.mxu1 %v8763_v47 }
 0x430   : > { %6332 = vmatpush2.bf16.msra.mxu1 %v8761_v52 }
 0x431   : > { %6333 = vmatprep.subr.bf16.mxu1 %v8766_v30 }
 0x434   : > { %6334 = vmatpush2.bf16.msra.mxu1 %v8764_v43 }
 0x435   : > { %6335 = vmatprep.subr.bf16.mxu1 %v8769_v38 }
 0x437   : > { %v6216_v1 = vpop.f32.mrf.mxu0 }
 0x438   : > { %6336 = vmatpush2.bf16.msra.mxu1 %v8767_v57 }
 0x439   : > { %6337 = vmatprep.subr.bf16.mxu1 %v8772_v23  ;;  %v6218_v6 = vpop.f32.mrf.mxu0 }
 0x43b   : > { %v6220_v63 = vpop.f32.mrf.mxu0 }
 0x43c   : > { %6338 = vmatpush2.bf16.msra.mxu1 %v8770_v39 }
 0x43d   : > { %6339 = vmatprep.subr.bf16.mxu1 %v8775_v56  ;;  %v6222_v35 = vpop.f32.mrf.mxu0 }
 0x440   : > { %6340 = vmatpush2.bf16.msra.mxu1 %v8773_v17 }
 0x441   : > { %6341 = vmatprep.subr.bf16.mxu1 %v8778_v44 }
 0x444   : > { %6342 = vmatpush2.bf16.msra.mxu1 %v8776_v9 }
 0x445   : > { %7690 = vmatprep.subr.bf16.mxu1 %v8795_v54 }
 0x447   : > { %6344 = vmatmul.mubr.bf16.vlgmr.msra.gmra.mxu1 %v9543_v11  ;;  %v5520_v11 = vld [vmem:[#allocation11 + $0x2] ss:$8 sm:$0xf] }
 0x448   : > { %7691 = vmatpush3.bf16.msra.mxu1 %v8796_v7  ;;  %v5529_v29 = vrot.slane %v5520_v11, %v9313_v16  ;;  %v5525_v12 = vrot.slane %v5520_v11, %v9318_v18  ;;  %v5537_v47 = vrot.slane %v5520_v11, %v9321_v19  ;;  %v5533_v52 = vrot.slane %v5520_v11, %v9324_v20 }
 0x449   : > { %7692 = vmatprep.subr.bf16.mxu1 %v8797_v37 }
 0x44a   : > { %v6219_v0 = vadd.f32 %v6218_v6, %v5529_v29  ;;  %v6221_v10 = vadd.f32 %v6220_v63, %v5525_v12  ;;  %v6217_v49 = vadd.f32 %v6216_v1, %v5525_v12  ;;  %v6223_v22 = vadd.f32 %v6222_v35, %v5529_v29 }
 0x44c   : > { %7693 = vmatpush3.bf16.msra.mxu1 %v8798_v55 }
 0x44d   : > { %7694 = vmatprep.subr.bf16.mxu1 %v8799_v51 }
 0x450   : > { %7695 = vmatpush3.bf16.msra.mxu1 %v8800_v4  ;;  %v6430_v4 = vld [vmem:[#allocation11 + $0x3] ss:$0 sm:$0xff] }
 0x451   : > { %7696 = vmatprep.subr.bf16.mxu1 %v8801_v14 }
 0x454   : > { %7697 = vmatpush3.bf16.msra.mxu1 %v8802_v58 }
 0x455   : > { %7698 = vmatprep.subr.bf16.mxu1 %v8803_v13 }
 0x458   : > { %7699 = vmatpush3.bf16.msra.mxu1 %v8804_v45 }
 0x459   : > { %7700 = vmatprep.subr.bf16.mxu1 %v8805_v59 }
 0x45c   : > { %7701 = vmatpush3.bf16.msra.mxu1 %v8806_v26 }
 0x45d   : > { %7702 = vmatprep.subr.bf16.mxu1 %v8807_v5 }
 0x460   : > { %7703 = vmatpush3.bf16.msra.mxu1 %v8808_v34 }
 0x461   : > { %7704 = vmatprep.subr.bf16.mxu1 %v8809_v60 }
 0x464   : > { %7705 = vmatpush3.bf16.msra.mxu1 %v8810_v62 }
 0x477   : > { %v6302_v18 = vpop.f32.mrf.mxu0 }
 0x478   : > { %v6303_v39 = vadd.f32 %v6302_v18, %v5533_v52 }
 0x479   : > { %v6304_v21 = vpop.f32.mrf.mxu0 }
 0x47a   : > { %v6305_v57 = vadd.f32 %v6304_v21, %v5537_v47 }
 0x47b   : > { %v6306_v42 = vpop.f32.mrf.mxu0 }
 0x47c   : > { %v6307_v23 = vadd.f32 %v6306_v42, %v5533_v52 }
 0x47d   : > { %v6308_v43 = vpop.f32.mrf.mxu0 }
 0x47e   : > { %v6309_v17 = vadd.f32 %v6308_v43, %v5537_v47 }
 0x4c7   : > { %v6259_v2 = vpop.f32.mrf.mxu1 }
 0x4c8   : > { %v6260_v27 = vadd.f32 %v6259_v2, %v6217_v49 }
 0x4c9   : > { %v6261_v3 = vpop.f32.mrf.mxu1 }
 0x4ca   : > { %v6262_v36 = vadd.f32 %v6261_v3, %v6219_v0  ;;  %v6354_v33 = vmax.f32 %v6260_v27, 0.0 }
 0x4cb   : > { %v6263_v8 = vpop.f32.mrf.mxu1 }
 0x4cc   : > { %v6264_v24 = vadd.f32 %v6263_v8, %v6221_v10  ;;  %v6355_v15 = vmax.f32 %v6262_v36, 0.0 }
 0x4cd   : > { %v6265_v28 = vpop.f32.mrf.mxu1 }
 0x4ce   : > { %v6266_v53 = vadd.f32 %v6265_v28, %v6223_v22  ;;  %v6358_v31 = vmax.f32 %v6264_v24, 0.0 }
 0x4d0   : > { %v6359_v32 = vmax.f32 %v6266_v53, 0.0  ;;  %v6362_v40 = vpack.c.bf16 %v6358_v31, %v6354_v33 }
 0x4d2   : > { %v6363_v16 = vpack.c.bf16 %v6359_v32, %v6355_v15 }
 0x4d4   : > { %6655 = vmatprep.mubr.bf16.mxu0 %v6363_v16 }
 0x4d5   : > { %6656 = vmatmul.mubr.bf16.vlgmr.msra.gmra.mxu0 %v6362_v40 }
 0x507   : > { %v6345_v30 = vpop.f32.mrf.mxu1 }
 0x508   : > { %v6346_v41 = vadd.f32 %v6345_v30, %v6303_v39 }
 0x509   : > { %v6347_v38 = vpop.f32.mrf.mxu1 }
 0x50a   : > { %v6348_v44 = vadd.f32 %v6347_v38, %v6305_v57  ;;  %v6356_v54 = vmax.f32 %v6346_v41, 0.0 }
 0x50b   : > { %v6349_v56 = vpop.f32.mrf.mxu1 }
 0x50c   : > { %v6350_v9 = vadd.f32 %v6349_v56, %v6307_v23  ;;  %v6357_v48 = vmax.f32 %v6348_v44, 0.0 }
 0x50d   : > { %v6351_v50 = vpop.f32.mrf.mxu1 }
 0x50e   : > { %v6352_v46 = vadd.f32 %v6351_v50, %v6309_v17  ;;  %v6360_v61 = vmax.f32 %v6350_v9, 0.0 }
 0x510   : > { %v6361_v25 = vmax.f32 %v6352_v46, 0.0  ;;  %v6364_v20 = vpack.c.bf16 %v6360_v61, %v6356_v54 }
 0x512   : > { %v6365_v19 = vpack.c.bf16 %v6361_v25, %v6357_v48 }
 0x514   : > { %6696 = vmatprep.mubr.bf16.mxu1 %v6365_v19 }
 0x515   : > { %6697 = vmatmul.mubr.bf16.vlgmr.msra.gmra.mxu1 %v6364_v20 }
 0x595   : > { %v7684_v7 = vpop.f32.mrf.mxu0 }
 0x597   : > { %v7685_v37 = vpop.f32.mrf.mxu0 }
 0x598   : > { %v7686_v51 = vadd.f32 %v7685_v37, %v7684_v7 }
 0x599   : > { %v7687_v55 = vpop.f32.mrf.mxu0 }
 0x59a   : > { %v6658_v45 = vadd.f32 %v7686_v51, %v6430_v4 }
 0x59b   : > { %v7688_v14 = vpop.f32.mrf.mxu0 }
 0x59c   : > { %v7689_v59 = vadd.f32 %v7688_v14, %v7687_v55 }
 0x59e   : > { %v6661_v62 = vadd.f32 %v7689_v59, %v6430_v4 }
 0x5d5   : > { %v7706_v58 = vpop.f32.mrf.mxu1 }
 0x5d7   : > { %v7707_v13 = vpop.f32.mrf.mxu1 }
 0x5d8   : > { %v7708_v26 = vadd.f32 %v7707_v13, %v7706_v58 }
 0x5d9   : > { %v7709_v5 = vpop.f32.mrf.mxu1 }
 0x5da   : > { %v6699_v34 = vadd.f32 %v7708_v26, %v6658_v45 }
 0x5db   : > { %v7710_v60 = vpop.f32.mrf.mxu1 }
 0x5dc   : > { %6705 = vst [vmem:[%s340_s28] sm:$0xff] %v6699_v34  ;;  %v7711_v1 = vadd.f32 %v7710_v60, %v7709_v5 }
 0x5de   : > { %v6702_v6 = vadd.f32 %v7711_v1, %v6661_v62 }
 0x5e0   : > { %6706 = vst [vmem:[%s340_s28 + $0x8] sm:$0xff] %v6702_v6 }
 0x5e1   : > { %8983 = shalt.err (!%p8980_p3)
}
 0x5e2   : > { %s8984_s14 = scalar_lea.hbm %s9559_s10, 256  ;;  %s8988_s26 = scalar_lea.hbm %s9607_s6, 768 }
 0x5e3   : > { %p8985_p5 = scmp.ne.s32.totalorder %s9559_s10, %s8984_s14  ;;  %p8989_p11 = scmp.lt.s32.totalorder %s9559_s10, %s9607_s6 }
 0x5e4   : > { %p8990_p12 = scmp.lt.s32.totalorder %s8988_s26, %s8984_s14 }
 0x5e5   : > { %p8986_p9 = pnand %p8985_p5, %p9628_p4 }
 0x5e6   : > { %p8991_p13 = por %p8990_p12, %p8989_p11 }
 0x5e7   : > { %p8987_p10 = pneg %p8986_p9 }
 0x5e9   : > { %p8992_p2 = pnand %p8991_p13, %p8987_p10 }
 0x5eb   : > { %8995 = shalt.err (!%p8992_p2)
}
 0x5ec   : > { %s9063_s18 = smov 128   ;;  %s9064_s19 = smov 8  }
 0x5ed   : > { %7734 = dma.vmem_to_hbm [thread:$0]  (%p9628_p4), %s9554_s30, 256, %s9559_s10, %s6708_s8, %s9063_s18, %s9063_s18, %s9064_s19  }
 0x5ee PF: > { %p7771_p7 = scmp.ge.s32.totalorder %s9046_s24, 2  ;;  %s6736_s17 = sand.u32 1, %s9034_s21  }
 0x5ef   : > { %p9629_p8 = scmp.ne.s32.totalorder %s9618_s11, 0  ;;  %s6737_s27 = scalar_lea.sflag [#allocation4], %s6736_s17 }
 0x5f1   : > { %p7757_p6 = pnand %p7771_p7, %p9629_p8 }
 0x5f3   : > { %p7758_p0 = pneg %p7757_p6 }
 0x5f5   : > { %9029 = dma.done.wait (%p7758_p0), %s6737_s27, 256  }
 0x5f6   : > { %9031 = vsyncadd (%p7758_p0), %s6737_s27, 4294967040  ;;  %p22_p1 = scmp.ge.s32.totalorder %s9194_s29, 5   ;;  %s9630_s21 = smov %s9038_s22 }
 0x5f7   : > { %s9631_s22 = smov %s9042_s23  ;;  %s9632_s23 = smov %s9205_s25 }
 0x5f8   : > { %s9633_s24 = smov %s9194_s29  ;;  %24 = sbr.rel (!%p22_p1) target bundleno = 8 (0x8), region = 112 }
 0x5fd   :  { %6742 = vsyncpa [#allocation3], 1 }
 0x5fe   :  { %6744 = vsyncpa [#allocation3 + $0x1], 1 }
 0x5ff   :  { %6745 = vsyncpa [#allocation6], 1 }
 0x600   :  { %6746 = vsyncpa [#allocation9], 1 }
 0x601   :  { %6747 = vsyncpa [#allocation12], 1 }
 0x602   :  { %6748 = vsyncpa [#allocation4], 1 }
 0x603   :  { %6750 = vsyncpa [#allocation4 + $0x1], 1 }

</bundles_post_ra>
